<compile_context>
chip_gen: v7x
topology: tpu7x:2x2x1
jax: 0.10.0
libtpu: 0.0.40
codegen_flags: <defaults>
</compile_context>

<pallas_src>
import functools

import jax
import jax.numpy as jnp
from jax import lax
from jax.experimental import pallas as pl
from jax.experimental.pallas import tpu as pltpu


def _round_up(x, m):
    return ((x + m - 1) // m) * m


# ---------------------------------------------------------------------------
# Relative-bound representations
# ---------------------------------------------------------------------------
class DenseRB:
    """Dense relative bound: lb/ub are (rows, cols) f32, last column = bias."""
    kind = "dense"

    def __init__(self, lb, ub):
        self.lb = lb.astype(jnp.float32)
        self.ub = ub.astype(jnp.float32)
        self.rows, self.cols = self.lb.shape


class DiagRB:
    """Diagonal relative bound (ReLU relaxation / Identity): the weight block
    is diag(d_*) (n x n) and the bias column is b_* (n,).  rows=n, cols=n+1."""
    kind = "diag"

    def __init__(self, d_lb, b_lb, d_ub, b_ub):
        self.d_lb = d_lb.astype(jnp.float32)
        self.b_lb = b_lb.astype(jnp.float32)
        self.d_ub = d_ub.astype(jnp.float32)
        self.b_ub = b_ub.astype(jnp.float32)
        n = self.d_lb.shape[0]
        self.rows, self.cols = n, n + 1

    def to_dense(self):
        lb = jnp.concatenate([jnp.diag(self.d_lb), self.b_lb.reshape(-1, 1)], axis=1)
        ub = jnp.concatenate([jnp.diag(self.d_ub), self.b_ub.reshape(-1, 1)], axis=1)
        return DenseRB(lb, ub)


# ---------------------------------------------------------------------------
# Pallas kernel: fused DeepPoly back-substitution over a whole rel-bound chain
# ---------------------------------------------------------------------------
def _make_chain_kernel(layer_meta, P):
    """Build the fused back-substitution kernel for one rel-bound chain.

    layer_meta: static tuple, one entry per chain layer
      ("dense",)  -> the (P,P) slot holds the padded matrix with the implicit
                     e_last bias row already baked in at [rows, cols-1] = 1.
      ("diag", K) -> row 0 of the slot holds the diagonal (with a 1 at column
                     K standing in for the bias row), row 1 holds the bias
                     column values; K is the (static) bias-column index.
    The chain is unrolled at trace time; every intermediate matrix stays in
    VMEM/vregs, so there is zero HBM traffic between steps.
    """
    num_layers = len(layer_meta)

    def kernel(lb_ref, ub_ref, out_lb_ref, out_ub_ref):
        cur_lb = lb_ref[num_layers - 1]
        cur_ub = ub_ref[num_layers - 1]
        for i in range(num_layers - 1, 0, -1):
            # VPU max/min stacking (no XLA concatenates, stays in vregs).
            pos_l = jnp.maximum(cur_lb, 0.0)
            neg_l = jnp.maximum(-cur_lb, 0.0)
            pos_u = jnp.maximum(cur_ub, 0.0)
            neg_u = jnp.maximum(-cur_ub, 0.0)
            prev_lb = lb_ref[i - 1]
            prev_ub = ub_ref[i - 1]
            if layer_meta[i - 1][0] == "diag":
                # Diagonal prev layer: VPU column scale + one XLU reduction
                # for the bias column (replaces a dense MXU contraction).
                K = layer_meta[i - 1][1]
                d_lb, b_lb = prev_lb[0:1, :], prev_lb[1:2, :]
                d_ub, b_ub = prev_ub[0:1, :], prev_ub[1:2, :]
                col_mask = (lax.broadcasted_iota(jnp.int32, (1, P), 1) == K
                            ).astype(jnp.float32)
                bias_l = jnp.sum(pos_l * b_lb - neg_l * b_ub, axis=1, keepdims=True)
                bias_u = jnp.sum(pos_u * b_ub - neg_u * b_lb, axis=1, keepdims=True)
                cur_lb = pos_l * d_lb - neg_l * d_ub + bias_l * col_mask
                cur_ub = pos_u * d_ub - neg_u * d_lb + bias_u * col_mask
            else:
                # Dense prev layer: whole-tile MXU matmuls (no K grid /
                # accumulator scratch needed at these sizes).
                cur_lb = (jnp.dot(pos_l, prev_lb, preferred_element_type=jnp.float32)
                          - jnp.dot(neg_l, prev_ub, preferred_element_type=jnp.float32))
                cur_ub = (jnp.dot(pos_u, prev_ub, preferred_element_type=jnp.float32)
                          - jnp.dot(neg_u, prev_lb, preferred_element_type=jnp.float32))
        out_lb_ref[...] = cur_lb
        out_ub_ref[...] = cur_ub

    return kernel


def fused_chain_backsub(rel_bounds):
    """One pallas_call that back-substitutes the whole rel-bound chain.

    All matrices are padded ONCE to a common (P, P) layout (P a multiple of
    128), the implicit e_last bias row is baked into each padded prev matrix,
    and the chain runs fully VMEM-resident inside a single kernel.
    Returns (lb, ub) of shape (rows_last, cols_first).
    """
    L = len(rel_bounds)
    assert L >= 2
    assert rel_bounds[-1].kind == "dense", "last chain element must be dense"

    max_dim = 0
    for rb in rel_bounds:
        max_dim = max(max_dim, rb.rows + 1, rb.cols)
    P = max(128, _round_up(max_dim, 128))
    M = rel_bounds[-1].rows
    N = rel_bounds[0].cols

    lb_slots, ub_slots, meta = [], [], []
    for i, rb in enumerate(rel_bounds):
        is_prev = i < L - 1
        if rb.kind == "diag" and is_prev and i > 0:
            K = rb.rows  # bias-column index of the consuming layer
            d_lb = jnp.zeros((P,), jnp.float32).at[:K].set(rb.d_lb).at[K].set(1.0)
            d_ub = jnp.zeros((P,), jnp.float32).at[:K].set(rb.d_ub).at[K].set(1.0)
            b_lb = jnp.zeros((P,), jnp.float32).at[:K].set(rb.b_lb)
            b_ub = jnp.zeros((P,), jnp.float32).at[:K].set(rb.b_ub)
            slot_lb = jnp.zeros((P, P), jnp.float32).at[0, :].set(d_lb).at[1, :].set(b_lb)
            slot_ub = jnp.zeros((P, P), jnp.float32).at[0, :].set(d_ub).at[1, :].set(b_ub)
            meta.append(("diag", K))
        else:
            dense = rb if rb.kind == "dense" else rb.to_dense()
            slot_lb = jnp.pad(dense.lb, ((0, P - dense.rows), (0, P - dense.cols)))
            slot_ub = jnp.pad(dense.ub, ((0, P - dense.rows), (0, P - dense.cols)))
            if is_prev:
                # Bake the implicit e_last bias row of prev_ext into the pad.
                slot_lb = slot_lb.at[dense.rows, dense.cols - 1].set(1.0)
                slot_ub = slot_ub.at[dense.rows, dense.cols - 1].set(1.0)
            meta.append(("dense",))
        lb_slots.append(slot_lb)
        ub_slots.append(slot_ub)

    lb_stack = jnp.stack(lb_slots)   # (L, P, P) f32, VMEM-resident in the kernel
    ub_stack = jnp.stack(ub_slots)

    # Tight-but-safe VMEM budget computed from the actual footprint (v7x has
    # only 64 MiB physical VMEM; this chain needs only a few MiB).
    footprint = (2 * L + 2) * P * P * 4
    vmem_limit = min(48 * 1024 * 1024, max(16 * 1024 * 1024, 6 * footprint))

    kernel = _make_chain_kernel(tuple(meta), P)
    out_lb, out_ub = pl.pallas_call(
        kernel,
        out_shape=(jax.ShapeDtypeStruct((P, P), jnp.float32),
                   jax.ShapeDtypeStruct((P, P), jnp.float32)),
        compiler_params=pltpu.CompilerParams(vmem_limit_bytes=vmem_limit),
    )(lb_stack, ub_stack)
    return out_lb[:M, :N], out_ub[:M, :N]


def _chain_backsub_reference(rel_bounds):
    """Pure-jnp, torch-faithful back-substitution (for a sanity check)."""
    dense = []
    for rb in rel_bounds:
        d = rb if rb.kind == "dense" else rb.to_dense()
        dense.append((d.lb, d.ub))
    cur_lb, cur_ub = dense[-1]
    for i in range(len(dense) - 1, 0, -1):
        prev_lb, prev_ub = dense[i - 1]
        bias_row = jnp.zeros((1, prev_lb.shape[-1]), jnp.float32).at[0, -1].set(1.0)
        prev_lb_e = jnp.concatenate([prev_lb, bias_row], axis=0)
        prev_ub_e = jnp.concatenate([prev_ub, bias_row], axis=0)
        wp, wn = jnp.maximum(cur_lb, 0.0), jnp.maximum(-cur_lb, 0.0)
        new_lb = wp @ prev_lb_e - wn @ prev_ub_e
        wp, wn = jnp.maximum(cur_ub, 0.0), jnp.maximum(-cur_ub, 0.0)
        new_ub = wp @ prev_ub_e - wn @ prev_lb_e
        cur_lb, cur_ub = new_lb, new_ub
    return cur_lb, cur_ub


# ---------------------------------------------------------------------------
# DeepPoly objects (glue traced under one jax.jit around the Pallas kernel)
# ---------------------------------------------------------------------------
class DPObject:
    def __init__(self, lb, ub, use_pallas=True):
        lb = lb.reshape(-1, 1).astype(jnp.float32)
        ub = ub.reshape(-1, 1).astype(jnp.float32)
        self.use_pallas = use_pallas
        self.rel_bounds = [DenseRB(lb, ub)]
        self.abs_bounds = [(lb, ub)]

    def append_relbound(self, rb):
        self.rel_bounds.append(rb)

    def backsub(self):
        if len(self.rel_bounds) == 1:
            return self.rel_bounds[0]
        if self.use_pallas:
            lb, ub = fused_chain_backsub(self.rel_bounds)
        else:
            lb, ub = _chain_backsub_reference(self.rel_bounds)
        self.abs_bounds.append((lb, ub))


class DeepIdentity:
    def __init__(self, in_features):
        self.in_features = in_features
        self.out_features = in_features
        ones = jnp.ones((in_features,), jnp.float32)
        zeros = jnp.zeros((in_features,), jnp.float32)
        self.rel_bound = DiagRB(ones, zeros, ones, zeros)

    def __call__(self, x):
        x.append_relbound(self.rel_bound)
        return x


class DeepPLinear:
    def __init__(self, weight, bias):
        weight = weight.astype(jnp.float32)
        bias = bias.astype(jnp.float32)
        self.out_features = weight.shape[0]
        constr = jnp.concatenate([weight, bias.reshape(-1, 1)], axis=1)
        self.rel_bound = DenseRB(constr, constr)

    def __call__(self, x):
        x.append_relbound(self.rel_bound)
        return x


class DeepPReLU:
    def __init__(self, in_features):
        self.in_features = in_features
        self.out_features = in_features

    def __call__(self, x):
        x.backsub()                 # exact abs bounds via the fused Pallas chain
        prev_lb, prev_ub = x.abs_bounds[-1]
        lbv = prev_lb[:, 0]
        ubv = prev_ub[:, 0]
        # alpha heuristic + clamps (matches the torch reference)
        alpha = jnp.where(jnp.abs(lbv) > jnp.abs(ubv), 0.0, 1.0)
        alpha = jnp.where(lbv > 0.0, 1.0, alpha)
        alpha = jnp.where(ubv <= 0.0, 0.0, alpha)
        # Exact divide (soundness: an approx reciprocal could push the upper
        # relaxation line below relu(ub) in the crossing case).
        eps = jnp.float32(jnp.finfo(jnp.float32).eps)
        slope = ubv / (ubv - lbv + eps)
        slope = jnp.where(lbv > 0.0, 1.0, slope)
        slope = jnp.where(ubv < 0.0, 0.0, slope)
        bias_ub = -lbv * slope
        bias_ub = jnp.where((lbv > 0.0) | (ubv < 0.0), 0.0, bias_ub)
        # Diagonal rel-bound: backsub treats it as a VPU column scale instead
        # of a dense jnp.diag() MXU contraction.
        self.rel_bound = DiagRB(alpha, jnp.zeros_like(alpha), slope, bias_ub)
        x.append_relbound(self.rel_bound)
        return x


def _block_diag2(a, b):
    m, n = a.shape
    p, q = b.shape
    top = jnp.concatenate([a, jnp.zeros((m, q), a.dtype)], axis=1)
    bot = jnp.concatenate([jnp.zeros((p, n), b.dtype), b], axis=1)
    return jnp.concatenate([top, bot], axis=0)


def _merge_paths(rb_a, rb_b):
    """Diagonal stacking of two per-layer rel-bounds (DeepBlock forward)."""
    if rb_a.kind == "diag" and rb_b.kind == "diag":
        return DiagRB(jnp.concatenate([rb_a.d_lb, rb_b.d_lb]),
                      jnp.concatenate([rb_a.b_lb, rb_b.b_lb]),
                      jnp.concatenate([rb_a.d_ub, rb_b.d_ub]),
                      jnp.concatenate([rb_a.b_ub, rb_b.b_ub]))
    da = rb_a if rb_a.kind == "dense" else rb_a.to_dense()
    db = rb_b if rb_b.kind == "dense" else rb_b.to_dense()
    lb_w = _block_diag2(da.lb[:, :-1], db.lb[:, :-1])
    lb_b = jnp.concatenate([da.lb[:, -1], db.lb[:, -1]]).reshape(-1, 1)
    ub_w = _block_diag2(da.ub[:, :-1], db.ub[:, :-1])
    ub_b = jnp.concatenate([da.ub[:, -1], db.ub[:, -1]]).reshape(-1, 1)
    return DenseRB(jnp.concatenate([lb_w, lb_b], axis=1),
                   jnp.concatenate([ub_w, ub_b], axis=1))


class DeepBlock:
    """JAX/Pallas version of the PyTorch DeepBlock forward pass."""

    def __init__(self, path_a_layers, path_b_layers, in_features):
        self.in_features = in_features
        self.path_a_layers = list(path_a_layers)
        self.path_b_layers = list(path_b_layers)
        self.block_length = max(len(self.path_a_layers), len(self.path_b_layers))
        self._padder(self.path_a_layers, self.block_length)
        self._padder(self.path_b_layers, self.block_length)
        assert (self.path_a_layers[-1].out_features
                == self.path_b_layers[-1].out_features), \
            "Blocks don't have same output dimension!"
        self.out_features = self.path_a_layers[-1].out_features

    @staticmethod
    def _padder(path_list, max_length):
        while len(path_list) < max_length:
            path_list.append(DeepIdentity(path_list[-1].out_features))

    @staticmethod
    def block_padder(in_features, before_block):
        if before_block:
            weights = jnp.concatenate([jnp.eye(in_features, dtype=jnp.float32),
                                       jnp.eye(in_features, dtype=jnp.float32)], axis=0)
            bias = jnp.zeros((2 * in_features, 1), jnp.float32)
        else:
            out_features = in_features // 2
            weights = jnp.concatenate([jnp.eye(out_features, dtype=jnp.float32),
                                       jnp.eye(out_features, dtype=jnp.float32)], axis=1)
            bias = jnp.zeros((out_features, 1), jnp.float32)
        matrix = jnp.concatenate([weights, bias], axis=1)
        return DenseRB(matrix, matrix)

    def __call__(self, x: DPObject):
        # path a (ReLU layers trigger the fused Pallas backsub)
        for layer in self.path_a_layers:
            layer(x)
        list_a = x.rel_bounds[-self.block_length:]
        x.rel_bounds = x.rel_bounds[:-self.block_length]
        # path b
        for layer in self.path_b_layers:
            layer(x)
        list_b = x.rel_bounds[-self.block_length:]
        x.rel_bounds = x.rel_bounds[:-self.block_length]
        # input doubling
        x.append_relbound(self.block_padder(self.in_features, before_block=True))
        # diagonally stacked per-layer matrices (diag x diag stays diagonal)
        for i in range(self.block_length):
            x.append_relbound(_merge_paths(list_a[i], list_b[i]))
        # output summation (residual add)
        x.append_relbound(self.block_padder(2 * self.out_features, before_block=False))
        return x


# ---------------------------------------------------------------------------
# Single jitted forward pass: all glue + Pallas kernels in one program.
# ---------------------------------------------------------------------------
def _forward(lb0, ub0, W1, b1, W2, b2, W3, b3, use_pallas):
    f_in = W1.shape[1]
    hid = W1.shape[0]
    x = DPObject(lb0, ub0, use_pallas=use_pallas)
    path_a = [DeepPLinear(W1, b1), DeepPReLU(hid), DeepPLinear(W2, b2)]
    path_b = [DeepPLinear(W3, b3)]
    block = DeepBlock(path_a, path_b, in_features=f_in)
    x = block(x)
    x.backsub()          # final backsub through the whole stacked block
    return x.abs_bounds[-1]


deepblock_forward = jax.jit(functools.partial(_forward, use_pallas=True))
deepblock_forward_ref = jax.jit(functools.partial(_forward, use_pallas=False))


# ---------------------------------------------------------------------------
if __name__ == "__main__":
    key = jax.random.PRNGKey(0)
    C, H, W = 1, 4, 4
    F_IN = C * H * W          # 16 flattened input features
    HID = 32

    k_in, k1, kb1, k2, kb2, k3, kb3 = jax.random.split(key, 7)

    # DP_object construction (input box, clamp, MNIST-style normalize, flatten)
    inputs = jax.random.uniform(k_in, (1, C, H, W), jnp.float32)   # NCHW like torch
    eps = 0.05
    mean, std = 0.1307, 0.3081
    lb0 = (jnp.clip(inputs - eps, 0.0, 1.0) - mean) / std
    ub0 = (jnp.clip(inputs + eps, 0.0, 1.0) - mean) / std

    # Synthetic BasicBlock (deterministic weights):
    #   path_a = Linear(16,32) -> ReLU -> Linear(32,16)
    #   path_b = Linear(16,16)            (padded with DeepIdentity by DeepBlock)
    W1 = 0.2 * jax.random.normal(k1, (HID, F_IN), jnp.float32)
    b1 = 0.05 * jax.random.normal(kb1, (HID,), jnp.float32)
    W2 = 0.2 * jax.random.normal(k2, (F_IN, HID), jnp.float32)
    b2 = 0.05 * jax.random.normal(kb2, (F_IN,), jnp.float32)
    W3 = 0.2 * jax.random.normal(k3, (F_IN, F_IN), jnp.float32)
    b3 = 0.05 * jax.random.normal(kb3, (F_IN,), jnp.float32)

    out_lb, out_ub = deepblock_forward(lb0, ub0, W1, b1, W2, b2, W3, b3)
    jax.block_until_ready((out_lb, out_ub))
    assert out_lb.shape == (F_IN, 1) and out_ub.shape == (F_IN, 1)
    assert bool(jnp.all(out_ub >= out_lb))

    # Sanity check against a pure-jnp, torch-faithful reference of the same
    # forward (loose tolerance: MXU vs. XLA f32 matmul rounding).
    ref_lb, ref_ub = deepblock_forward_ref(lb0, ub0, W1, b1, W2, b2, W3, b3)
    jax.block_until_ready((ref_lb, ref_ub))
    assert bool(jnp.allclose(out_lb, ref_lb, rtol=2e-2, atol=2e-2))
    assert bool(jnp.allclose(out_ub, ref_ub, rtol=2e-2, atol=2e-2))

    print("KERNEL_OK")
</pallas_src>

<mosaic_0001>
module attributes {stable_mosaic.version = 11 : i64} {
  func.func @kernel(%arg0: memref<2x128x128xf32, #tpu.memory_space<vmem>>, %arg1: memref<2x128x128xf32, #tpu.memory_space<vmem>>, %arg2: memref<128x128xf32, #tpu.memory_space<vmem>>, %arg3: memref<128x128xf32, #tpu.memory_space<vmem>>) attributes {dimension_semantics = [], scalar_prefetch = 0 : i64, scratch_operands = 0 : i64, tpu.core_type = #tpu.core_type<tc>} {
    %c1 = arith.constant 1 : index
    %c0 = arith.constant 0 : index
    %c0_0 = arith.constant 0 : index
    %0 = vector.load %arg0[%c1, %c0, %c0_0] : memref<2x128x128xf32, #tpu.memory_space<vmem>>, vector<1x128x128xf32>
    %1 = vector.shape_cast %0 : vector<1x128x128xf32> to vector<128x128xf32>
    %c1_1 = arith.constant 1 : index
    %c0_2 = arith.constant 0 : index
    %c0_3 = arith.constant 0 : index
    %2 = vector.load %arg1[%c1_1, %c0_2, %c0_3] : memref<2x128x128xf32, #tpu.memory_space<vmem>>, vector<1x128x128xf32>
    %3 = vector.shape_cast %2 : vector<1x128x128xf32> to vector<128x128xf32>
    %cst = arith.constant 0.000000e+00 : f32
    %4 = vector.broadcast %cst : f32 to vector<128x128xf32>
    %5 = arith.maximumf %1, %4 : vector<128x128xf32>
    %cst_4 = arith.constant 0.000000e+00 : f32
    %6 = vector.broadcast %cst_4 : f32 to vector<128x128xf32>
    %7 = arith.subf %6, %1 : vector<128x128xf32>
    %cst_5 = arith.constant 0.000000e+00 : f32
    %8 = vector.broadcast %cst_5 : f32 to vector<128x128xf32>
    %9 = arith.maximumf %7, %8 : vector<128x128xf32>
    %cst_6 = arith.constant 0.000000e+00 : f32
    %10 = vector.broadcast %cst_6 : f32 to vector<128x128xf32>
    %11 = arith.maximumf %3, %10 : vector<128x128xf32>
    %cst_7 = arith.constant 0.000000e+00 : f32
    %12 = vector.broadcast %cst_7 : f32 to vector<128x128xf32>
    %13 = arith.subf %12, %3 : vector<128x128xf32>
    %cst_8 = arith.constant 0.000000e+00 : f32
    %14 = vector.broadcast %cst_8 : f32 to vector<128x128xf32>
    %15 = arith.maximumf %13, %14 : vector<128x128xf32>
    %c0_9 = arith.constant 0 : index
    %c0_10 = arith.constant 0 : index
    %c0_11 = arith.constant 0 : index
    %16 = vector.load %arg0[%c0_9, %c0_10, %c0_11] : memref<2x128x128xf32, #tpu.memory_space<vmem>>, vector<1x128x128xf32>
    %17 = vector.shape_cast %16 : vector<1x128x128xf32> to vector<128x128xf32>
    %c0_12 = arith.constant 0 : index
    %c0_13 = arith.constant 0 : index
    %c0_14 = arith.constant 0 : index
    %18 = vector.load %arg1[%c0_12, %c0_13, %c0_14] : memref<2x128x128xf32, #tpu.memory_space<vmem>>, vector<1x128x128xf32>
    %19 = vector.shape_cast %18 : vector<1x128x128xf32> to vector<128x128xf32>
    %cst_15 = arith.constant dense<0.000000e+00> : vector<128x128xf32>
    %20 = tpu.matmul %5, %17, %cst_15 {dimension_numbers = #tpu.dot_dimension_numbers<[1], [0], [0], [1], [0, 0, 1, 1], [], []>} : vector<128x128xf32>, vector<128x128xf32>, vector<128x128xf32> -> vector<128x128xf32>
    %cst_16 = arith.constant dense<0.000000e+00> : vector<128x128xf32>
    %21 = tpu.matmul %9, %19, %cst_16 {dimension_numbers = #tpu.dot_dimension_numbers<[1], [0], [0], [1], [0, 0, 1, 1], [], []>} : vector<128x128xf32>, vector<128x128xf32>, vector<128x128xf32> -> vector<128x128xf32>
    %22 = arith.subf %20, %21 : vector<128x128xf32>
    %cst_17 = arith.constant dense<0.000000e+00> : vector<128x128xf32>
    %23 = tpu.matmul %11, %19, %cst_17 {dimension_numbers = #tpu.dot_dimension_numbers<[1], [0], [0], [1], [0, 0, 1, 1], [], []>} : vector<128x128xf32>, vector<128x128xf32>, vector<128x128xf32> -> vector<128x128xf32>
    %cst_18 = arith.constant dense<0.000000e+00> : vector<128x128xf32>
    %24 = tpu.matmul %15, %17, %cst_18 {dimension_numbers = #tpu.dot_dimension_numbers<[1], [0], [0], [1], [0, 0, 1, 1], [], []>} : vector<128x128xf32>, vector<128x128xf32>, vector<128x128xf32> -> vector<128x128xf32>
    %25 = arith.subf %23, %24 : vector<128x128xf32>
    %c0_19 = arith.constant 0 : index
    %c0_20 = arith.constant 0 : index
    %26 = vector.load %arg2[%c0_19, %c0_20] : memref<128x128xf32, #tpu.memory_space<vmem>>, vector<128x128xf32>
    tpu.vector_store %arg2[%c0_19, %c0_20], %22 {strides = array<i32>} : memref<128x128xf32, #tpu.memory_space<vmem>>, vector<128x128xf32>,
    %c0_21 = arith.constant 0 : index
    %c0_22 = arith.constant 0 : index
    %27 = vector.load %arg3[%c0_21, %c0_22] : memref<128x128xf32, #tpu.memory_space<vmem>>, vector<128x128xf32>
    tpu.vector_store %arg3[%c0_21, %c0_22], %25 {strides = array<i32>} : memref<128x128xf32, #tpu.memory_space<vmem>>, vector<128x128xf32>,
    return
  }
}

module attributes {stable_mosaic.version = 11 : i64} {
  func.func @kernel(%arg0: memref<6x128x128xf32, #tpu.memory_space<vmem>>, %arg1: memref<6x128x128xf32, #tpu.memory_space<vmem>>, %arg2: memref<128x128xf32, #tpu.memory_space<vmem>>, %arg3: memref<128x128xf32, #tpu.memory_space<vmem>>) attributes {dimension_semantics = [], scalar_prefetch = 0 : i64, scratch_operands = 0 : i64, tpu.core_type = #tpu.core_type<tc>} {
    %c5 = arith.constant 5 : index
    %c0 = arith.constant 0 : index
    %c0_0 = arith.constant 0 : index
    %0 = vector.load %arg0[%c5, %c0, %c0_0] : memref<6x128x128xf32, #tpu.memory_space<vmem>>, vector<1x128x128xf32>
    %1 = vector.shape_cast %0 : vector<1x128x128xf32> to vector<128x128xf32>
    %c5_1 = arith.constant 5 : index
    %c0_2 = arith.constant 0 : index
    %c0_3 = arith.constant 0 : index
    %2 = vector.load %arg1[%c5_1, %c0_2, %c0_3] : memref<6x128x128xf32, #tpu.memory_space<vmem>>, vector<1x128x128xf32>
    %3 = vector.shape_cast %2 : vector<1x128x128xf32> to vector<128x128xf32>
    %cst = arith.constant 0.000000e+00 : f32
    %4 = vector.broadcast %cst : f32 to vector<128x128xf32>
    %5 = arith.maximumf %1, %4 : vector<128x128xf32>
    %cst_4 = arith.constant 0.000000e+00 : f32
    %6 = vector.broadcast %cst_4 : f32 to vector<128x128xf32>
    %7 = arith.subf %6, %1 : vector<128x128xf32>
    %cst_5 = arith.constant 0.000000e+00 : f32
    %8 = vector.broadcast %cst_5 : f32 to vector<128x128xf32>
    %9 = arith.maximumf %7, %8 : vector<128x128xf32>
    %cst_6 = arith.constant 0.000000e+00 : f32
    %10 = vector.broadcast %cst_6 : f32 to vector<128x128xf32>
    %11 = arith.maximumf %3, %10 : vector<128x128xf32>
    %cst_7 = arith.constant 0.000000e+00 : f32
    %12 = vector.broadcast %cst_7 : f32 to vector<128x128xf32>
    %13 = arith.subf %12, %3 : vector<128x128xf32>
    %cst_8 = arith.constant 0.000000e+00 : f32
    %14 = vector.broadcast %cst_8 : f32 to vector<128x128xf32>
    %15 = arith.maximumf %13, %14 : vector<128x128xf32>
    %c4 = arith.constant 4 : index
    %c0_9 = arith.constant 0 : index
    %c0_10 = arith.constant 0 : index
    %16 = vector.load %arg0[%c4, %c0_9, %c0_10] : memref<6x128x128xf32, #tpu.memory_space<vmem>>, vector<1x128x128xf32>
    %17 = vector.shape_cast %16 : vector<1x128x128xf32> to vector<128x128xf32>
    %c4_11 = arith.constant 4 : index
    %c0_12 = arith.constant 0 : index
    %c0_13 = arith.constant 0 : index
    %18 = vector.load %arg1[%c4_11, %c0_12, %c0_13] : memref<6x128x128xf32, #tpu.memory_space<vmem>>, vector<1x128x128xf32>
    %19 = vector.shape_cast %18 : vector<1x128x128xf32> to vector<128x128xf32>
    %cst_14 = arith.constant dense<0.000000e+00> : vector<128x128xf32>
    %20 = tpu.matmul %5, %17, %cst_14 {dimension_numbers = #tpu.dot_dimension_numbers<[1], [0], [0], [1], [0, 0, 1, 1], [], []>} : vector<128x128xf32>, vector<128x128xf32>, vector<128x128xf32> -> vector<128x128xf32>
    %cst_15 = arith.constant dense<0.000000e+00> : vector<128x128xf32>
    %21 = tpu.matmul %9, %19, %cst_15 {dimension_numbers = #tpu.dot_dimension_numbers<[1], [0], [0], [1], [0, 0, 1, 1], [], []>} : vector<128x128xf32>, vector<128x128xf32>, vector<128x128xf32> -> vector<128x128xf32>
    %22 = arith.subf %20, %21 : vector<128x128xf32>
    %cst_16 = arith.constant dense<0.000000e+00> : vector<128x128xf32>
    %23 = tpu.matmul %11, %19, %cst_16 {dimension_numbers = #tpu.dot_dimension_numbers<[1], [0], [0], [1], [0, 0, 1, 1], [], []>} : vector<128x128xf32>, vector<128x128xf32>, vector<128x128xf32> -> vector<128x128xf32>
    %cst_17 = arith.constant dense<0.000000e+00> : vector<128x128xf32>
    %24 = tpu.matmul %15, %17, %cst_17 {dimension_numbers = #tpu.dot_dimension_numbers<[1], [0], [0], [1], [0, 0, 1, 1], [], []>} : vector<128x128xf32>, vector<128x128xf32>, vector<128x128xf32> -> vector<128x128xf32>
    %25 = arith.subf %23, %24 : vector<128x128xf32>
    %cst_18 = arith.constant 0.000000e+00 : f32
    %26 = vector.broadcast %cst_18 : f32 to vector<128x128xf32>
    %27 = arith.maximumf %22, %26 : vector<128x128xf32>
    %cst_19 = arith.constant 0.000000e+00 : f32
    %28 = vector.broadcast %cst_19 : f32 to vector<128x128xf32>
    %29 = arith.subf %28, %22 : vector<128x128xf32>
    %cst_20 = arith.constant 0.000000e+00 : f32
    %30 = vector.broadcast %cst_20 : f32 to vector<128x128xf32>
    %31 = arith.maximumf %29, %30 : vector<128x128xf32>
    %cst_21 = arith.constant 0.000000e+00 : f32
    %32 = vector.broadcast %cst_21 : f32 to vector<128x128xf32>
    %33 = arith.maximumf %25, %32 : vector<128x128xf32>
    %cst_22 = arith.constant 0.000000e+00 : f32
    %34 = vector.broadcast %cst_22 : f32 to vector<128x128xf32>
    %35 = arith.subf %34, %25 : vector<128x128xf32>
    %cst_23 = arith.constant 0.000000e+00 : f32
    %36 = vector.broadcast %cst_23 : f32 to vector<128x128xf32>
    %37 = arith.maximumf %35, %36 : vector<128x128xf32>
    %c3 = arith.constant 3 : index
    %c0_24 = arith.constant 0 : index
    %c0_25 = arith.constant 0 : index
    %38 = vector.load %arg0[%c3, %c0_24, %c0_25] : memref<6x128x128xf32, #tpu.memory_space<vmem>>, vector<1x128x128xf32>
    %39 = vector.shape_cast %38 : vector<1x128x128xf32> to vector<128x128xf32>
    %c3_26 = arith.constant 3 : index
    %c0_27 = arith.constant 0 : index
    %c0_28 = arith.constant 0 : index
    %40 = vector.load %arg1[%c3_26, %c0_27, %c0_28] : memref<6x128x128xf32, #tpu.memory_space<vmem>>, vector<1x128x128xf32>
    %41 = vector.shape_cast %40 : vector<1x128x128xf32> to vector<128x128xf32>
    %42 = vector.extract_strided_slice %39 {offsets = [0, 0], sizes = [1, 128], strides = [1, 1]} : vector<128x128xf32> to vector<1x128xf32>
    %43 = vector.extract_strided_slice %39 {offsets = [1, 0], sizes = [1, 128], strides = [1, 1]} : vector<128x128xf32> to vector<1x128xf32>
    %44 = vector.extract_strided_slice %41 {offsets = [0, 0], sizes = [1, 128], strides = [1, 1]} : vector<128x128xf32> to vector<1x128xf32>
    %45 = vector.extract_strided_slice %41 {offsets = [1, 0], sizes = [1, 128], strides = [1, 1]} : vector<128x128xf32> to vector<1x128xf32>
    %46 = tpu.iota {dimensions = array<i32: 1>} : vector<1x128xi32>
    %c48_i32 = arith.constant 48 : i32
    %47 = vector.broadcast %c48_i32 : i32 to vector<1x128xi32>
    %48 = arith.cmpi eq, %46, %47 : vector<1x128xi32>
    %49 = arith.extui %48 : vector<1x128xi1> to vector<1x128xi32>
    %50 = arith.sitofp %49 : vector<1x128xi32> to vector<1x128xf32>
    %51 = vector.broadcast %43 : vector<1x128xf32> to vector<128x128xf32>
    %52 = arith.mulf %27, %51 : vector<128x128xf32>
    %53 = vector.broadcast %45 : vector<1x128xf32> to vector<128x128xf32>
    %54 = arith.mulf %31, %53 : vector<128x128xf32>
    %55 = arith.subf %52, %54 : vector<128x128xf32>
    %cst_29 = arith.constant dense<0.000000e+00> : vector<128xf32>
    %56 = vector.multi_reduction <add>, %55, %cst_29 [1] : vector<128x128xf32> to vector<128xf32>
    %57 = vector.shape_cast %56 : vector<128xf32> to vector<128x1xf32>
    %58 = vector.broadcast %45 : vector<1x128xf32> to vector<128x128xf32>
    %59 = arith.mulf %33, %58 : vector<128x128xf32>
    %60 = vector.broadcast %43 : vector<1x128xf32> to vector<128x128xf32>
    %61 = arith.mulf %37, %60 : vector<128x128xf32>
    %62 = arith.subf %59, %61 : vector<128x128xf32>
    %cst_30 = arith.constant dense<0.000000e+00> : vector<128xf32>
    %63 = vector.multi_reduction <add>, %62, %cst_30 [1] : vector<128x128xf32> to vector<128xf32>
    %64 = vector.shape_cast %63 : vector<128xf32> to vector<128x1xf32>
    %65 = vector.broadcast %42 : vector<1x128xf32> to vector<128x128xf32>
    %66 = arith.mulf %27, %65 : vector<128x128xf32>
    %67 = vector.broadcast %44 : vector<1x128xf32> to vector<128x128xf32>
    %68 = arith.mulf %31, %67 : vector<128x128xf32>
    %69 = arith.subf %66, %68 : vector<128x128xf32>
    %70 = vector.broadcast %57 : vector<128x1xf32> to vector<128x128xf32>
    %71 = vector.broadcast %50 : vector<1x128xf32> to vector<128x128xf32>
    %72 = arith.mulf %70, %71 : vector<128x128xf32>
    %73 = arith.addf %69, %72 : vector<128x128xf32>
    %74 = vector.broadcast %44 : vector<1x128xf32> to vector<128x128xf32>
    %75 = arith.mulf %33, %74 : vector<128x128xf32>
    %76 = vector.broadcast %42 : vector<1x128xf32> to vector<128x128xf32>
    %77 = arith.mulf %37, %76 : vector<128x128xf32>
    %78 = arith.subf %75, %77 : vector<128x128xf32>
    %79 = vector.broadcast %64 : vector<128x1xf32> to vector<128x128xf32>
    %80 = vector.broadcast %50 : vector<1x128xf32> to vector<128x128xf32>
    %81 = arith.mulf %79, %80 : vector<128x128xf32>
    %82 = arith.addf %78, %81 : vector<128x128xf32>
    %cst_31 = arith.constant 0.000000e+00 : f32
    %83 = vector.broadcast %cst_31 : f32 to vector<128x128xf32>
    %84 = arith.maximumf %73, %83 : vector<128x128xf32>
    %cst_32 = arith.constant 0.000000e+00 : f32
    %85 = vector.broadcast %cst_32 : f32 to vector<128x128xf32>
    %86 = arith.subf %85, %73 : vector<128x128xf32>
    %cst_33 = arith.constant 0.000000e+00 : f32
    %87 = vector.broadcast %cst_33 : f32 to vector<128x128xf32>
    %88 = arith.maximumf %86, %87 : vector<128x128xf32>
    %cst_34 = arith.constant 0.000000e+00 : f32
    %89 = vector.broadcast %cst_34 : f32 to vector<128x128xf32>
    %90 = arith.maximumf %82, %89 : vector<128x128xf32>
    %cst_35 = arith.constant 0.000000e+00 : f32
    %91 = vector.broadcast %cst_35 : f32 to vector<128x128xf32>
    %92 = arith.subf %91, %82 : vector<128x128xf32>
    %cst_36 = arith.constant 0.000000e+00 : f32
    %93 = vector.broadcast %cst_36 : f32 to vector<128x128xf32>
    %94 = arith.maximumf %92, %93 : vector<128x128xf32>
    %c2 = arith.constant 2 : index
    %c0_37 = arith.constant 0 : index
    %c0_38 = arith.constant 0 : index
    %95 = vector.load %arg0[%c2, %c0_37, %c0_38] : memref<6x128x128xf32, #tpu.memory_space<vmem>>, vector<1x128x128xf32>
    %96 = vector.shape_cast %95 : vector<1x128x128xf32> to vector<128x128xf32>
    %c2_39 = arith.constant 2 : index
    %c0_40 = arith.constant 0 : index
    %c0_41 = arith.constant 0 : index
    %97 = vector.load %arg1[%c2_39, %c0_40, %c0_41] : memref<6x128x128xf32, #tpu.memory_space<vmem>>, vector<1x128x128xf32>
    %98 = vector.shape_cast %97 : vector<1x128x128xf32> to vector<128x128xf32>
    %cst_42 = arith.constant dense<0.000000e+00> : vector<128x128xf32>
    %99 = tpu.matmul %84, %96, %cst_42 {dimension_numbers = #tpu.dot_dimension_numbers<[1], [0], [0], [1], [0, 0, 1, 1], [], []>} : vector<128x128xf32>, vector<128x128xf32>, vector<128x128xf32> -> vector<128x128xf32>
    %cst_43 = arith.constant dense<0.000000e+00> : vector<128x128xf32>
    %100 = tpu.matmul %88, %98, %cst_43 {dimension_numbers = #tpu.dot_dimension_numbers<[1], [0], [0], [1], [0, 0, 1, 1], [], []>} : vector<128x128xf32>, vector<128x128xf32>, vector<128x128xf32> -> vector<128x128xf32>
    %101 = arith.subf %99, %100 : vector<128x128xf32>
    %cst_44 = arith.constant dense<0.000000e+00> : vector<128x128xf32>
    %102 = tpu.matmul %90, %98, %cst_44 {dimension_numbers = #tpu.dot_dimension_numbers<[1], [0], [0], [1], [0, 0, 1, 1], [], []>} : vector<128x128xf32>, vector<128x128xf32>, vector<128x128xf32> -> vector<128x128xf32>
    %cst_45 = arith.constant dense<0.000000e+00> : vector<128x128xf32>
    %103 = tpu.matmul %94, %96, %cst_45 {dimension_numbers = #tpu.dot_dimension_numbers<[1], [0], [0], [1], [0, 0, 1, 1], [], []>} : vector<128x128xf32>, vector<128x128xf32>, vector<128x128xf32> -> vector<128x128xf32>
    %104 = arith.subf %102, %103 : vector<128x128xf32>
    %cst_46 = arith.constant 0.000000e+00 : f32
    %105 = vector.broadcast %cst_46 : f32 to vector<128x128xf32>
    %106 = arith.maximumf %101, %105 : vector<128x128xf32>
    %cst_47 = arith.constant 0.000000e+00 : f32
    %107 = vector.broadcast %cst_47 : f32 to vector<128x128xf32>
    %108 = arith.subf %107, %101 : vector<128x128xf32>
    %cst_48 = arith.constant 0.000000e+00 : f32
    %109 = vector.broadcast %cst_48 : f32 to vector<128x128xf32>
    %110 = arith.maximumf %108, %109 : vector<128x128xf32>
    %cst_49 = arith.constant 0.000000e+00 : f32
    %111 = vector.broadcast %cst_49 : f32 to vector<128x128xf32>
    %112 = arith.maximumf %104, %111 : vector<128x128xf32>
    %cst_50 = arith.constant 0.000000e+00 : f32
    %113 = vector.broadcast %cst_50 : f32 to vector<128x128xf32>
    %114 = arith.subf %113, %104 : vector<128x128xf32>
    %cst_51 = arith.constant 0.000000e+00 : f32
    %115 = vector.broadcast %cst_51 : f32 to vector<128x128xf32>
    %116 = arith.maximumf %114, %115 : vector<128x128xf32>
    %c1 = arith.constant 1 : index
    %c0_52 = arith.constant 0 : index
    %c0_53 = arith.constant 0 : index
    %117 = vector.load %arg0[%c1, %c0_52, %c0_53] : memref<6x128x128xf32, #tpu.memory_space<vmem>>, vector<1x128x128xf32>
    %118 = vector.shape_cast %117 : vector<1x128x128xf32> to vector<128x128xf32>
    %c1_54 = arith.constant 1 : index
    %c0_55 = arith.constant 0 : index
    %c0_56 = arith.constant 0 : index
    %119 = vector.load %arg1[%c1_54, %c0_55, %c0_56] : memref<6x128x128xf32, #tpu.memory_space<vmem>>, vector<1x128x128xf32>
    %120 = vector.shape_cast %119 : vector<1x128x128xf32> to vector<128x128xf32>
    %cst_57 = arith.constant dense<0.000000e+00> : vector<128x128xf32>
    %121 = tpu.matmul %106, %118, %cst_57 {dimension_numbers = #tpu.dot_dimension_numbers<[1], [0], [0], [1], [0, 0, 1, 1], [], []>} : vector<128x128xf32>, vector<128x128xf32>, vector<128x128xf32> -> vector<128x128xf32>
    %cst_58 = arith.constant dense<0.000000e+00> : vector<128x128xf32>
    %122 = tpu.matmul %110, %120, %cst_58 {dimension_numbers = #tpu.dot_dimension_numbers<[1], [0], [0], [1], [0, 0, 1, 1], [], []>} : vector<128x128xf32>, vector<128x128xf32>, vector<128x128xf32> -> vector<128x128xf32>
    %123 = arith.subf %121, %122 : vector<128x128xf32>
    %cst_59 = arith.constant dense<0.000000e+00> : vector<128x128xf32>
    %124 = tpu.matmul %112, %120, %cst_59 {dimension_numbers = #tpu.dot_dimension_numbers<[1], [0], [0], [1], [0, 0, 1, 1], [], []>} : vector<128x128xf32>, vector<128x128xf32>, vector<128x128xf32> -> vector<128x128xf32>
    %cst_60 = arith.constant dense<0.000000e+00> : vector<128x128xf32>
    %125 = tpu.matmul %116, %118, %cst_60 {dimension_numbers = #tpu.dot_dimension_numbers<[1], [0], [0], [1], [0, 0, 1, 1], [], []>} : vector<128x128xf32>, vector<128x128xf32>, vector<128x128xf32> -> vector<128x128xf32>
    %126 = arith.subf %124, %125 : vector<128x128xf32>
    %cst_61 = arith.constant 0.000000e+00 : f32
    %127 = vector.broadcast %cst_61 : f32 to vector<128x128xf32>
    %128 = arith.maximumf %123, %127 : vector<128x128xf32>
    %cst_62 = arith.constant 0.000000e+00 : f32
    %129 = vector.broadcast %cst_62 : f32 to vector<128x128xf32>
    %130 = arith.subf %129, %123 : vector<128x128xf32>
    %cst_63 = arith.constant 0.000000e+00 : f32
    %131 = vector.broadcast %cst_63 : f32 to vector<128x128xf32>
    %132 = arith.maximumf %130, %131 : vector<128x128xf32>
    %cst_64 = arith.constant 0.000000e+00 : f32
    %133 = vector.broadcast %cst_64 : f32 to vector<128x128xf32>
    %134 = arith.maximumf %126, %133 : vector<128x128xf32>
    %cst_65 = arith.constant 0.000000e+00 : f32
    %135 = vector.broadcast %cst_65 : f32 to vector<128x128xf32>
    %136 = arith.subf %135, %126 : vector<128x128xf32>
    %cst_66 = arith.constant 0.000000e+00 : f32
    %137 = vector.broadcast %cst_66 : f32 to vector<128x128xf32>
    %138 = arith.maximumf %136, %137 : vector<128x128xf32>
    %c0_67 = arith.constant 0 : index
    %c0_68 = arith.constant 0 : index
    %c0_69 = arith.constant 0 : index
    %139 = vector.load %arg0[%c0_67, %c0_68, %c0_69] : memref<6x128x128xf32, #tpu.memory_space<vmem>>, vector<1x128x128xf32>
    %140 = vector.shape_cast %139 : vector<1x128x128xf32> to vector<128x128xf32>
    %c0_70 = arith.constant 0 : index
    %c0_71 = arith.constant 0 : index
    %c0_72 = arith.constant 0 : index
    %141 = vector.load %arg1[%c0_70, %c0_71, %c0_72] : memref<6x128x128xf32, #tpu.memory_space<vmem>>, vector<1x128x128xf32>
    %142 = vector.shape_cast %141 : vector<1x128x128xf32> to vector<128x128xf32>
    %cst_73 = arith.constant dense<0.000000e+00> : vector<128x128xf32>
    %143 = tpu.matmul %128, %140, %cst_73 {dimension_numbers = #tpu.dot_dimension_numbers<[1], [0], [0], [1], [0, 0, 1, 1], [], []>} : vector<128x128xf32>, vector<128x128xf32>, vector<128x128xf32> -> vector<128x128xf32>
    %cst_74 = arith.constant dense<0.000000e+00> : vector<128x128xf32>
    %144 = tpu.matmul %132, %142, %cst_74 {dimension_numbers = #tpu.dot_dimension_numbers<[1], [0], [0], [1], [0, 0, 1, 1], [], []>} : vector<128x128xf32>, vector<128x128xf32>, vector<128x128xf32> -> vector<128x128xf32>
    %145 = arith.subf %143, %144 : vector<128x128xf32>
    %cst_75 = arith.constant dense<0.000000e+00> : vector<128x128xf32>
    %146 = tpu.matmul %134, %142, %cst_75 {dimension_numbers = #tpu.dot_dimension_numbers<[1], [0], [0], [1], [0, 0, 1, 1], [], []>} : vector<128x128xf32>, vector<128x128xf32>, vector<128x128xf32> -> vector<128x128xf32>
    %cst_76 = arith.constant dense<0.000000e+00> : vector<128x128xf32>
    %147 = tpu.matmul %138, %140, %cst_76 {dimension_numbers = #tpu.dot_dimension_numbers<[1], [0], [0], [1], [0, 0, 1, 1], [], []>} : vector<128x128xf32>, vector<128x128xf32>, vector<128x128xf32> -> vector<128x128xf32>
    %148 = arith.subf %146, %147 : vector<128x128xf32>
    %c0_77 = arith.constant 0 : index
    %c0_78 = arith.constant 0 : index
    %149 = vector.load %arg2[%c0_77, %c0_78] : memref<128x128xf32, #tpu.memory_space<vmem>>, vector<128x128xf32>
    tpu.vector_store %arg2[%c0_77, %c0_78], %145 {strides = array<i32>} : memref<128x128xf32, #tpu.memory_space<vmem>>, vector<128x128xf32>,
    %c0_79 = arith.constant 0 : index
    %c0_80 = arith.constant 0 : index
    %150 = vector.load %arg3[%c0_79, %c0_80] : memref<128x128xf32, #tpu.memory_space<vmem>>, vector<128x128xf32>
    tpu.vector_store %arg3[%c0_79, %c0_80], %148 {strides = array<i32>} : memref<128x128xf32, #tpu.memory_space<vmem>>, vector<128x128xf32>,
    return
  }
}

</mosaic_0001>

<bundles_post_ra>
// kernel: _forward.2
= control target key start
LH: loop header
LB: loop body
LE: loop exit
PB: predicated region body
PF: predicated region fallthrough
CT: control target
= control target key end

     0   :  { %s1743_s0 = inlined_call_operand.vmem [shape: f32[2,128,128], index: 0, kind: input, shape index: {}]   ;;  %s1744_s1 = inlined_call_operand.vmem [shape: f32[2,128,128], index: 1, kind: input, shape index: {}]   ;;  %s1745_s2 = inlined_call_operand.vmem [shape: f32[128,128], index: 2, kind: output, shape index: {0}]   ;;  %s1746_s3 = inlined_call_operand.vmem [shape: f32[128,128], index: 3, kind: output, shape index: {1}]  }
   0x1   :  { %v143_v0 = vld [vmem:[%s1743_s0] sm:$0xff]  ;;  %v144_v1 = vld [vmem:[%s1743_s0 + $0x8] sm:$0xff]  ;;  %v145_v5 = vld [vmem:[%s1743_s0 + $0x10] sm:$0xff] }
   0x2   :  { %v159_v2 = vld [vmem:[%s1744_s1] sm:$0xff]  ;;  %v1368_v3 = vpack.c.bf16 %v144_v1, %v143_v0  ;;  %v160_v4 = vld [vmem:[%s1744_s1 + $0x8] sm:$0xff]  ;;  %v146_v6 = vld [vmem:[%s1743_s0 + $0x18] sm:$0xff] }
   0x3   :  { %v1379_v7 = vpack.c.bf16 %v160_v4, %v159_v2  ;;  %v1381_v8 = vpack.c.bf16 %v146_v6, %v145_v5  ;;  %v161_v9 = vld [vmem:[%s1744_s1 + $0x10] sm:$0xff]  ;;  %v162_v10 = vld [vmem:[%s1744_s1 + $0x18] sm:$0xff]  ;;  %v147_v11 = vld [vmem:[%s1743_s0 + $0x20] sm:$0xff] }
   0x4   :  { %1212 = vmatprep.subr.bf16.mxu0 %v1368_v3  ;;  %v1393_v12 = vpack.c.bf16 %v162_v10, %v161_v9  ;;  %v148_v13 = vld [vmem:[%s1743_s0 + $0x28] sm:$0xff]  ;;  %v163_v14 = vld [vmem:[%s1744_s1 + $0x20] sm:$0xff]  ;;  %v149_v18 = vld [vmem:[%s1743_s0 + $0x30] sm:$0xff] }
   0x5   :  { %v164_v15 = vld [vmem:[%s1744_s1 + $0x28] sm:$0xff]  ;;  %1244 = vmatprep.subr.bf16.mxu1 %v1379_v7  ;;  %1214 = vmatpush3.bf16.msra.mxu0 %v1368_v3  ;;  %v1408_v16 = vpack.c.bf16 %v148_v13, %v147_v11  ;;  %v150_v19 = vld [vmem:[%s1743_s0 + $0x38] sm:$0xff]  ;;  %v165_v20 = vld [vmem:[%s1744_s1 + $0x30] sm:$0xff] }
   0x6   :  { %1246 = vmatpush3.bf16.msra.mxu1 %v1379_v7  ;;  %1216 = vmatprep.subr.bf16.mxu0 %v1381_v8  ;;  %v1411_v17 = vpack.c.bf16 %v164_v15, %v163_v14  ;;  %v166_v21 = vld [vmem:[%s1744_s1 + $0x38] sm:$0xff]  ;;  %v1428_v22 = vpack.c.bf16 %v150_v19, %v149_v18  ;;  %v151_v24 = vld [vmem:[%s1743_s0 + $0x40] sm:$0xff]  ;;  %v152_v25 = vld [vmem:[%s1743_s0 + $0x48] sm:$0xff] }
   0x7   :  { %1248 = vmatprep.subr.bf16.mxu1 %v1393_v12  ;;  %v1431_v23 = vpack.c.bf16 %v166_v21, %v165_v20  ;;  %v827_v26 = vld [vmem:[%s1743_s0 + $0x80] sm:$0xff]  ;;  %v168_v28 = vld [vmem:[%s1744_s1 + $0x48] sm:$0xff]  ;;  %v1451_v31 = vpack.c.bf16 %v152_v25, %v151_v24  ;;  %v153_v34 = vld [vmem:[%s1743_s0 + $0x50] sm:$0xff] }
   0x8   :  { %v167_v27 = vld [vmem:[%s1744_s1 + $0x40] sm:$0xff]  ;;  %v47_v29 = vmax.f32 %v827_v26, 0.0  ;;  %v63_v30 = vsub.f32 0.0, %v827_v26  ;;  %v154_v35 = vld [vmem:[%s1743_s0 + $0x58] sm:$0xff]  ;;  %v169_v36 = vld [vmem:[%s1744_s1 + $0x50] sm:$0xff] }
   0x9   :  { %1218 = vmatpush3.bf16.msra.mxu0 %v1381_v8  ;;  %v1454_v33 = vpack.c.bf16 %v168_v28, %v167_v27  ;;  %v170_v37 = vld [vmem:[%s1744_s1 + $0x58] sm:$0xff]  ;;  %v1471_v38 = vpack.c.bf16 %v154_v35, %v153_v34  ;;  %v155_v40 = vld [vmem:[%s1743_s0 + $0x60] sm:$0xff]  ;;  %v156_v41 = vld [vmem:[%s1743_s0 + $0x68] sm:$0xff] }
   0xa   :  { %1250 = vmatpush3.bf16.msra.mxu1 %v1393_v12  ;;  %1220 = vmatprep.subr.bf16.mxu0 %v1408_v16  ;;  %v79_v32 = vmax.f32 %v63_v30, 0.0  ;;  %v1474_v39 = vpack.c.bf16 %v170_v37, %v169_v36  ;;  %v171_v42 = vld [vmem:[%s1744_s1 + $0x60] sm:$0xff]  ;;  %v172_v43 = vld [vmem:[%s1744_s1 + $0x68] sm:$0xff]  ;;  %v1491_v44 = vpack.c.bf16 %v156_v41, %v155_v40  ;;  %v157_v46 = vld [vmem:[%s1743_s0 + $0x70] sm:$0xff] }
   0xb   :  { %1252 = vmatprep.subr.bf16.mxu1 %v1411_v17  ;;  %1019 = vmatprep.mubr.f32.mxu0 %v47_v29  ;;  %v1494_v45 = vpack.c.bf16 %v172_v43, %v171_v42  ;;  %v158_v47 = vld [vmem:[%s1743_s0 + $0x78] sm:$0xff]  ;;  %v173_v48 = vld [vmem:[%s1744_s1 + $0x70] sm:$0xff]  ;;  %v828_v51 = vld [vmem:[%s1743_s0 + $0x88] sm:$0xff] }
   0xc   :  { %1075 = vmatprep.mubr.f32.mxu1 %v79_v32  ;;  %v174_v49 = vld [vmem:[%s1744_s1 + $0x78] sm:$0xff]  ;;  %v1511_v50 = vpack.c.bf16 %v158_v47, %v157_v46  ;;  %v829_v53 = vld [vmem:[%s1743_s0 + $0x90] sm:$0xff]  ;;  %v64_v54 = vsub.f32 0.0, %v828_v51  ;;  %v48_v57 = vmax.f32 %v828_v51, 0.0  ;;  %v831_v58 = vld [vmem:[%s1743_s0 + $0xa0] sm:$0xff] }
   0xd   :  { %1222 = vmatpush3.bf16.msra.mxu0 %v1408_v16  ;;  %v1517_v52 = vpack.c.bf16 %v174_v49, %v173_v48  ;;  %v830_v55 = vld [vmem:[%s1743_s0 + $0x98] sm:$0xff]  ;;  %v65_v56 = vsub.f32 0.0, %v829_v53  ;;  %v49_v61 = vmax.f32 %v829_v53, 0.0  ;;  %v832_v62 = vld [vmem:[%s1743_s0 + $0xa8] sm:$0xff]  ;;  %v67_v0 = vsub.f32 0.0, %v831_v58  ;;  %v833_v2 = vld [vmem:[%s1743_s0 + $0xb0] sm:$0xff] }
   0xe   :  { %1254 = vmatpush3.bf16.msra.mxu1 %v1411_v17  ;;  %1224 = vmatprep.subr.bf16.mxu0 %v1428_v22  ;;  %v80_v59 = vmax.f32 %v64_v54, 0.0  ;;  %v66_v60 = vsub.f32 0.0, %v830_v55  ;;  %v50_v1 = vmax.f32 %v830_v55, 0.0  ;;  %v68_v5 = vsub.f32 0.0, %v832_v62  ;;  %v834_v9 = vld [vmem:[%s1743_s0 + $0xb8] sm:$0xff]  ;;  %v836_v18 = vld [vmem:[%s1743_s0 + $0xc8] sm:$0xff] }
   0xf   :  { %1256 = vmatprep.subr.bf16.mxu1 %v1431_v23  ;;  %v81_v63 = vmax.f32 %v65_v56, 0.0  ;;  %v51_v6 = vmax.f32 %v831_v58, 0.0  ;;  %v83_v10 = vmax.f32 %v67_v0, 0.0  ;;  %v69_v11 = vsub.f32 0.0, %v833_v2  ;;  %v838_v26 = vld [vmem:[%s1743_s0 + $0xd8] sm:$0xff]  ;;  %v840_v34 = vld [vmem:[%s1743_s0 + $0xe8] sm:$0xff] }
  0x10   :  { %v82_v4 = vmax.f32 %v66_v60, 0.0  ;;  %v52_v13 = vmax.f32 %v832_v62, 0.0  ;;  %v70_v14 = vsub.f32 0.0, %v834_v9  ;;  %v53_v15 = vmax.f32 %v833_v2, 0.0  ;;  %v842_v42 = vld [vmem:[%s1743_s0 + $0xf8] sm:$0xff]  ;;  %v844_v51 = vld [vmem:[%s1744_s1 + $0x88] sm:$0xff] }
  0x11   :  { %1226 = vmatpush3.bf16.msra.mxu0 %v1428_v22  ;;  %v85_v19 = vmax.f32 %v69_v11, 0.0  ;;  %v54_v21 = vmax.f32 %v834_v9, 0.0  ;;  %v72_v24 = vsub.f32 0.0, %v836_v18  ;;  %v56_v29 = vmax.f32 %v836_v18, 0.0  ;;  %v845_v55 = vld [vmem:[%s1744_s1 + $0x90] sm:$0xff]  ;;  %v848_v2 = vld [vmem:[%s1744_s1 + $0xa8] sm:$0xff] }
  0x12   :  { %1258 = vmatpush3.bf16.msra.mxu1 %v1431_v23  ;;  %1228 = vmatprep.subr.bf16.mxu0 %v1451_v31  ;;  %v74_v30 = vsub.f32 0.0, %v838_v26  ;;  %v58_v37 = vmax.f32 %v838_v26, 0.0  ;;  %v76_v40 = vsub.f32 0.0, %v840_v34  ;;  %v60_v47 = vmax.f32 %v840_v34, 0.0  ;;  %v850_v11 = vld [vmem:[%s1744_s1 + $0xb8] sm:$0xff] }
  0x13   :  { %1260 = vmatprep.subr.bf16.mxu1 %v1454_v33  ;;  %v78_v48 = vsub.f32 0.0, %v842_v42  ;;  %v112_v56 = vsub.f32 0.0, %v844_v51  ;;  %v113_v58 = vsub.f32 0.0, %v845_v55  ;;  %v97_v62 = vmax.f32 %v845_v55, 0.0 }
  0x14   :  { %v116_v9 = vsub.f32 0.0, %v848_v2 }
  0x15   :  { %1230 = vmatpush3.bf16.msra.mxu0 %v1451_v31  ;;  %v129_v0 = vmax.f32 %v113_v58, 0.0 }
  0x16   :  { %1262 = vmatpush3.bf16.msra.mxu1 %v1454_v33  ;;  %1232 = vmatprep.subr.bf16.mxu0 %v1471_v38 }
  0x17   :  { %1264 = vmatprep.subr.bf16.mxu1 %v1474_v39 }
  0x19   :  { %1234 = vmatpush3.bf16.msra.mxu0 %v1471_v38 }
  0x1a   :  { %1266 = vmatpush3.bf16.msra.mxu1 %v1474_v39  ;;  %1236 = vmatprep.subr.bf16.mxu0 %v1491_v44 }
  0x1b   :  { %1268 = vmatprep.subr.bf16.mxu1 %v1494_v45 }
  0x1d   :  { %1238 = vmatpush3.bf16.msra.mxu0 %v1491_v44 }
  0x1e   :  { %1270 = vmatpush3.bf16.msra.mxu1 %v1494_v45  ;;  %1240 = vmatprep.subr.bf16.mxu0 %v1511_v50 }
  0x1f   :  { %1272 = vmatprep.subr.bf16.mxu1 %v1517_v52 }
  0x21   :  { %1242 = vmatpush3.bf16.msra.mxu0 %v1511_v50 }
  0x22   :  { %1274 = vmatpush3.bf16.msra.mxu1 %v1517_v52  ;;  %1276 = vmatprep.subr.bf16.mxu0 %v1379_v7 }
  0x23   :  { %1308 = vmatprep.subr.bf16.mxu1 %v1368_v3 }
  0x24   :  { %1020 = vmatmul.mubr.f32.vlgmr.msra.gmra.mrb[0].mxu0 %v48_v57 }
  0x25   :  { %1076 = vmatmul.mubr.f32.vlgmr.msra.gmra.mrb[0].mxu1 %v80_v59  ;;  %1278 = vmatpush3.bf16.msra.mxu0 %v1379_v7  ;;  %v835_v7 = vld [vmem:[%s1743_s0 + $0xc0] sm:$0xff]  ;;  %v846_v59 = vld [vmem:[%s1744_s1 + $0x98] sm:$0xff] }
  0x26   :  { %1310 = vmatpush3.bf16.msra.mxu1 %v1368_v3  ;;  %1022 = vmatprep.mubr.f32.mxu0 %v49_v61  ;;  %v84_v3 = vmax.f32 %v68_v5, 0.0  ;;  %v71_v20 = vsub.f32 0.0, %v835_v7  ;;  %v55_v25 = vmax.f32 %v835_v7, 0.0  ;;  %v847_v61 = vld [vmem:[%s1744_s1 + $0xa0] sm:$0xff]  ;;  %v98_v5 = vmax.f32 %v846_v59, 0.0 }
  0x27   :  { %1078 = vmatprep.mubr.f32.mxu1 %v81_v63  ;;  %1280 = vmatprep.subr.bf16.mxu0 %v1393_v12  ;;  %v114_v63 = vsub.f32 0.0, %v846_v59  ;;  %v100_v7 = vmax.f32 %v848_v2, 0.0 }
  0x28   :  { %1023 = vmatmul.mubr.f32.gmra.mrb[2].mxu0 %v50_v1  ;;  %1312 = vmatprep.subr.bf16.mxu1 %v1381_v8  ;;  %v87_v27 = vmax.f32 %v71_v20, 0.0  ;;  %v115_v1 = vsub.f32 0.0, %v847_v61  ;;  %v852_v20 = vld [vmem:[%s1744_s1 + $0xc8] sm:$0xff] }
  0x29   :  { %1079 = vmatmul.mubr.f32.gmra.mrb[2].mxu1 %v82_v4  ;;  %1282 = vmatpush3.bf16.msra.mxu0 %v1393_v12  ;;  %v837_v12 = vld [vmem:[%s1743_s0 + $0xd0] sm:$0xff] }
  0x2a   :  { %1314 = vmatpush3.bf16.msra.mxu1 %v1381_v8  ;;  %1025 = vmatprep.mubr.f32.mxu0 %v51_v6  ;;  %v86_v8 = vmax.f32 %v70_v14, 0.0  ;;  %v73_v28 = vsub.f32 0.0, %v837_v12  ;;  %v57_v32 = vmax.f32 %v837_v12, 0.0  ;;  %v849_v4 = vld [vmem:[%s1744_s1 + $0xb0] sm:$0xff]  ;;  %v99_v6 = vmax.f32 %v847_v61, 0.0 }
  0x2b   :  { %1081 = vmatprep.mubr.f32.mxu1 %v83_v10  ;;  %1284 = vmatprep.subr.bf16.mxu0 %v1411_v17  ;;  %v117_v10 = vsub.f32 0.0, %v849_v4  ;;  %v101_v14 = vmax.f32 %v849_v4, 0.0  ;;  %v102_v12 = vmax.f32 %v850_v11, 0.0 }
  0x2c   :  { %1026 = vmatmul.mubr.f32.gmra.mrb[4].mxu0 %v52_v13  ;;  %1316 = vmatprep.subr.bf16.mxu1 %v1408_v16  ;;  %v89_v35 = vmax.f32 %v73_v28, 0.0  ;;  %v851_v13 = vld [vmem:[%s1744_s1 + $0xc0] sm:$0xff]  ;;  %v854_v28 = vld [vmem:[%s1744_s1 + $0xd8] sm:$0xff] }
  0x2d   :  { %1082 = vmatmul.mubr.f32.gmra.mrb[4].mxu1 %v84_v3  ;;  %1286 = vmatpush3.bf16.msra.mxu0 %v1411_v17  ;;  %v839_v17 = vld [vmem:[%s1743_s0 + $0xe0] sm:$0xff]  ;;  %v132_v3 = vmax.f32 %v116_v9, 0.0  ;;  %v133_v18 = vmax.f32 %v117_v10, 0.0 }
  0x2e   :  { %1318 = vmatpush3.bf16.msra.mxu1 %v1408_v16  ;;  %1028 = vmatprep.mubr.f32.mxu0 %v53_v15  ;;  %v88_v16 = vmax.f32 %v72_v24, 0.0  ;;  %v75_v36 = vsub.f32 0.0, %v839_v17  ;;  %v59_v41 = vmax.f32 %v839_v17, 0.0  ;;  %v118_v15 = vsub.f32 0.0, %v850_v11 }
  0x2f   :  { %1084 = vmatprep.mubr.f32.mxu1 %v85_v19  ;;  %1288 = vmatprep.subr.bf16.mxu0 %v1431_v23  ;;  %v119_v19 = vsub.f32 0.0, %v851_v13  ;;  %v103_v24 = vmax.f32 %v851_v13, 0.0  ;;  %v104_v17 = vmax.f32 %v852_v20, 0.0 }
  0x30   :  { %1029 = vmatmul.mubr.f32.gmra.mrb[6].mxu0 %v54_v21  ;;  %1320 = vmatprep.subr.bf16.mxu1 %v1428_v22  ;;  %v91_v43 = vmax.f32 %v75_v36, 0.0  ;;  %v853_v21 = vld [vmem:[%s1744_s1 + $0xd0] sm:$0xff]  ;;  %v856_v36 = vld [vmem:[%s1744_s1 + $0xe8] sm:$0xff] }
  0x31   :  { %1085 = vmatmul.mubr.f32.gmra.mrb[6].mxu1 %v86_v8  ;;  %1290 = vmatpush3.bf16.msra.mxu0 %v1431_v23  ;;  %v841_v23 = vld [vmem:[%s1743_s0 + $0xf0] sm:$0xff]  ;;  %v134_v8 = vmax.f32 %v118_v15, 0.0  ;;  %v135_v26 = vmax.f32 %v119_v19, 0.0 }
  0x32   :  { %1322 = vmatpush3.bf16.msra.mxu1 %v1428_v22  ;;  %1031 = vmatprep.mubr.f32.mxu0 %v55_v25  ;;  %v90_v22 = vmax.f32 %v74_v30, 0.0  ;;  %v77_v46 = vsub.f32 0.0, %v841_v23  ;;  %v61_v49 = vmax.f32 %v841_v23, 0.0  ;;  %v120_v25 = vsub.f32 0.0, %v852_v20 }
  0x33   :  { %1087 = vmatprep.mubr.f32.mxu1 %v87_v27  ;;  %1292 = vmatprep.subr.bf16.mxu0 %v1454_v33  ;;  %v121_v27 = vsub.f32 0.0, %v853_v21  ;;  %v105_v30 = vmax.f32 %v853_v21, 0.0  ;;  %v106_v23 = vmax.f32 %v854_v28, 0.0 }
  0x34   :  { %1032 = vmatmul.mubr.f32.gmra.mrb[8].mxu0 %v56_v29  ;;  %1324 = vmatprep.subr.bf16.mxu1 %v1451_v31  ;;  %v93_v53 = vmax.f32 %v77_v46, 0.0  ;;  %v855_v29 = vld [vmem:[%s1744_s1 + $0xe0] sm:$0xff]  ;;  %v858_v46 = vld [vmem:[%s1744_s1 + $0xf8] sm:$0xff] }
  0x35   :  { %1088 = vmatmul.mubr.f32.gmra.mrb[8].mxu1 %v88_v16  ;;  %1294 = vmatpush3.bf16.msra.mxu0 %v1454_v33  ;;  %v843_v33 = vld [vmem:[%s1744_s1 + $0x80] sm:$0xff]  ;;  %v136_v16 = vmax.f32 %v120_v25, 0.0  ;;  %v137_v34 = vmax.f32 %v121_v27, 0.0 }
  0x36   :  { %1326 = vmatpush3.bf16.msra.mxu1 %v1451_v31  ;;  %1034 = vmatprep.mubr.f32.mxu0 %v57_v32  ;;  %v92_v31 = vmax.f32 %v76_v40, 0.0  ;;  %v111_v54 = vsub.f32 0.0, %v843_v33  ;;  %v95_v57 = vmax.f32 %v843_v33, 0.0  ;;  %v122_v32 = vsub.f32 0.0, %v854_v28 }
  0x37   :  { %1090 = vmatprep.mubr.f32.mxu1 %v89_v35  ;;  %1296 = vmatprep.subr.bf16.mxu0 %v1474_v39  ;;  %v123_v35 = vsub.f32 0.0, %v855_v29  ;;  %v107_v40 = vmax.f32 %v855_v29, 0.0 }
  0x38   :  { %1035 = vmatmul.mubr.f32.gmra.mrb[10].mxu0 %v58_v37  ;;  %1328 = vmatprep.subr.bf16.mxu1 %v1471_v38  ;;  %v127_v60 = vmax.f32 %v111_v54, 0.0  ;;  %v857_v37 = vld [vmem:[%s1744_s1 + $0xf0] sm:$0xff] }
  0x39   :  { %1091 = vmatmul.mubr.f32.gmra.mrb[10].mxu1 %v90_v22  ;;  %1298 = vmatpush3.bf16.msra.mxu0 %v1474_v39  ;;  %v62_v39 = vmax.f32 %v842_v42, 0.0  ;;  %v138_v22 = vmax.f32 %v122_v32, 0.0  ;;  %v139_v42 = vmax.f32 %v123_v35, 0.0 }
  0x3a   :  { %1330 = vmatpush3.bf16.msra.mxu1 %v1471_v38  ;;  %1037 = vmatprep.mubr.f32.mxu0 %v59_v41  ;;  %v94_v38 = vmax.f32 %v78_v48, 0.0  ;;  %v124_v41 = vsub.f32 0.0, %v856_v36  ;;  %v126_v48 = vsub.f32 0.0, %v858_v46 }
  0x3b   :  { %1093 = vmatprep.mubr.f32.mxu1 %v91_v43  ;;  %1300 = vmatprep.subr.bf16.mxu0 %v1494_v45  ;;  %v125_v43 = vsub.f32 0.0, %v857_v37 }
  0x3c   :  { %1038 = vmatmul.mubr.f32.gmra.mrb[12].mxu0 %v60_v47  ;;  %1332 = vmatprep.subr.bf16.mxu1 %v1491_v44  ;;  %v108_v47 = vmax.f32 %v856_v36, 0.0  ;;  %v140_v33 = vmax.f32 %v124_v41, 0.0 }
  0x3d   :  { %1094 = vmatmul.mubr.f32.gmra.mrb[12].mxu1 %v92_v31  ;;  %1302 = vmatpush3.bf16.msra.mxu0 %v1494_v45  ;;  %v96_v45 = vmax.f32 %v844_v51, 0.0  ;;  %v109_v31 = vmax.f32 %v857_v37, 0.0  ;;  %v110_v51 = vmax.f32 %v858_v46, 0.0 }
  0x3e   :  { %1334 = vmatpush3.bf16.msra.mxu1 %v1491_v44  ;;  %1040 = vmatprep.mubr.f32.mxu0 %v61_v49  ;;  %v128_v44 = vmax.f32 %v112_v56, 0.0  ;;  %v141_v49 = vmax.f32 %v125_v43, 0.0 }
  0x3f   :  { %1096 = vmatprep.mubr.f32.mxu1 %v93_v53  ;;  %1304 = vmatprep.subr.bf16.mxu0 %v1517_v52  ;;  %v142_v53 = vmax.f32 %v126_v48, 0.0 }
  0x40   :  { %1041 = vmatmul.mubr.f32.gmra.mrb[14].mxu0 %v62_v39  ;;  %1336 = vmatprep.subr.bf16.mxu1 %v1511_v50 }
  0x41   :  { %1097 = vmatmul.mubr.f32.gmra.mrb[14].mxu1 %v94_v38  ;;  %1306 = vmatpush3.bf16.msra.mxu0 %v1517_v52  ;;  %v130_v52 = vmax.f32 %v114_v63, 0.0 }
  0x42   :  { %1338 = vmatpush3.bf16.msra.mxu1 %v1511_v50  ;;  %1131 = vmatprep.mubr.f32.mxu0 %v95_v57  ;;  %v131_v50 = vmax.f32 %v115_v1, 0.0 }
  0x43   :  { %1187 = vmatprep.mubr.f32.mxu1 %v127_v60 }
  0x44   :  { %1132 = vmatmul.mubr.f32.vlgmr.msra.gmra.mrb[16].mxu0 %v96_v45 }
  0x45   :  { %1188 = vmatmul.mubr.f32.vlgmr.msra.gmra.mrb[16].mxu1 %v128_v44  ;;  %1134 = vmatprep.mubr.f32.mxu0 %v97_v62 }
  0x46   :  { %1190 = vmatprep.mubr.f32.mxu1 %v129_v0 }
  0x48   :  { %1135 = vmatmul.mubr.f32.gmra.mrb[18].mxu0 %v98_v5 }
  0x49   :  { %1191 = vmatmul.mubr.f32.gmra.mrb[18].mxu1 %v130_v52  ;;  %1137 = vmatprep.mubr.f32.mxu0 %v99_v6 }
  0x4a   :  { %1193 = vmatprep.mubr.f32.mxu1 %v131_v50 }
  0x4c   :  { %1138 = vmatmul.mubr.f32.gmra.mrb[20].mxu0 %v100_v7 }
  0x4d   :  { %1194 = vmatmul.mubr.f32.gmra.mrb[20].mxu1 %v132_v3  ;;  %1140 = vmatprep.mubr.f32.mxu0 %v101_v14 }
  0x4e   :  { %1196 = vmatprep.mubr.f32.mxu1 %v133_v18 }
  0x50   :  { %1141 = vmatmul.mubr.f32.gmra.mrb[22].mxu0 %v102_v12 }
  0x51   :  { %1197 = vmatmul.mubr.f32.gmra.mrb[22].mxu1 %v134_v8  ;;  %1143 = vmatprep.mubr.f32.mxu0 %v103_v24 }
  0x52   :  { %1199 = vmatprep.mubr.f32.mxu1 %v135_v26 }
  0x54   :  { %1144 = vmatmul.mubr.f32.gmra.mrb[24].mxu0 %v104_v17 }
  0x55   :  { %1200 = vmatmul.mubr.f32.gmra.mrb[24].mxu1 %v136_v16  ;;  %1146 = vmatprep.mubr.f32.mxu0 %v105_v30 }
  0x56   :  { %1202 = vmatprep.mubr.f32.mxu1 %v137_v34 }
  0x58   :  { %1147 = vmatmul.mubr.f32.gmra.mrb[26].mxu0 %v106_v23 }
  0x59   :  { %1203 = vmatmul.mubr.f32.gmra.mrb[26].mxu1 %v138_v22  ;;  %1149 = vmatprep.mubr.f32.mxu0 %v107_v40 }
  0x5a   :  { %1205 = vmatprep.mubr.f32.mxu1 %v139_v42 }
  0x5c   :  { %1150 = vmatmul.mubr.f32.gmra.mrb[28].mxu0 %v108_v47 }
  0x5d   :  { %1206 = vmatmul.mubr.f32.gmra.mrb[28].mxu1 %v140_v33  ;;  %1152 = vmatprep.mubr.f32.mxu0 %v109_v31 }
  0x5e   :  { %1208 = vmatprep.mubr.f32.mxu1 %v141_v49 }
  0x60   :  { %1153 = vmatmul.mubr.f32.gmra.mrb[30].mxu0 %v110_v51 }
  0x61   :  { %1209 = vmatmul.mubr.f32.gmra.mrb[30].mxu1 %v142_v53 }
  0xf7   :  { %v1021_v54 = vpop.f32.mrb[0].mxu0 }
  0xf8   :  { %v1077_v55 = vpop.f32.mrb[0].mxu1  ;;  %v241_v39 = vpop.f32.mrb[1].mxu0 }
  0xf9   :  { %v466_v38 = vsub.f32 %v1021_v54, %v1077_v55  ;;  %v386_v56 = vpop.f32.mrb[1].mxu1 }
  0xfa   :  { %v465_v57 = vsub.f32 %v241_v39, %v386_v56 }
  0xfb   :  { %788 = vst [vmem:[%s1745_s2 + $0x8] sm:$0xff] %v466_v38  ;;  %v1024_v58 = vpop.f32.mrb[2].mxu0 }
  0xfc   :  { %787 = vst [vmem:[%s1745_s2] sm:$0xff] %v465_v57  ;;  %v1080_v59 = vpop.f32.mrb[2].mxu1  ;;  %v251_v60 = vpop.f32.mrb[3].mxu0 }
  0xfd   :  { %v468_v61 = vsub.f32 %v1024_v58, %v1080_v59  ;;  %v396_v45 = vpop.f32.mrb[3].mxu1 }
  0xfe   :  { %v467_v44 = vsub.f32 %v251_v60, %v396_v45 }
  0xff   :  { %790 = vst [vmem:[%s1745_s2 + $0x18] sm:$0xff] %v468_v61  ;;  %v1027_v62 = vpop.f32.mrb[4].mxu0 }
 0x100   :  { %789 = vst [vmem:[%s1745_s2 + $0x10] sm:$0xff] %v467_v44  ;;  %v1083_v63 = vpop.f32.mrb[4].mxu1  ;;  %v261_v0 = vpop.f32.mrb[5].mxu0 }
 0x101   :  { %v470_v1 = vsub.f32 %v1027_v62, %v1083_v63  ;;  %v406_v2 = vpop.f32.mrb[5].mxu1 }
 0x102   :  { %v469_v4 = vsub.f32 %v261_v0, %v406_v2 }
 0x103   :  { %792 = vst [vmem:[%s1745_s2 + $0x28] sm:$0xff] %v470_v1  ;;  %v1030_v5 = vpop.f32.mrb[6].mxu0 }
 0x104   :  { %791 = vst [vmem:[%s1745_s2 + $0x20] sm:$0xff] %v469_v4  ;;  %v1086_v52 = vpop.f32.mrb[6].mxu1  ;;  %v271_v6 = vpop.f32.mrb[7].mxu0 }
 0x105   :  { %v472_v9 = vsub.f32 %v1030_v5, %v1086_v52  ;;  %v416_v50 = vpop.f32.mrb[7].mxu1 }
 0x106   :  { %v471_v10 = vsub.f32 %v271_v6, %v416_v50 }
 0x107   :  { %794 = vst [vmem:[%s1745_s2 + $0x38] sm:$0xff] %v472_v9  ;;  %v1033_v11 = vpop.f32.mrb[8].mxu0 }
 0x108   :  { %793 = vst [vmem:[%s1745_s2 + $0x30] sm:$0xff] %v471_v10  ;;  %v1089_v13 = vpop.f32.mrb[8].mxu1  ;;  %v281_v7 = vpop.f32.mrb[9].mxu0 }
 0x109   :  { %v474_v3 = vsub.f32 %v1033_v11, %v1089_v13  ;;  %v426_v14 = vpop.f32.mrb[9].mxu1 }
 0x10a   :  { %v473_v15 = vsub.f32 %v281_v7, %v426_v14 }
 0x10b   :  { %796 = vst [vmem:[%s1745_s2 + $0x48] sm:$0xff] %v474_v3  ;;  %v1036_v18 = vpop.f32.mrb[10].mxu0 }
 0x10c   :  { %795 = vst [vmem:[%s1745_s2 + $0x40] sm:$0xff] %v473_v15  ;;  %v1092_v19 = vpop.f32.mrb[10].mxu1  ;;  %v291_v20 = vpop.f32.mrb[11].mxu0 }
 0x10d   :  { %v476_v21 = vsub.f32 %v1036_v18, %v1092_v19  ;;  %v436_v12 = vpop.f32.mrb[11].mxu1 }
 0x10e   :  { %v475_v8 = vsub.f32 %v291_v20, %v436_v12 }
 0x10f   :  { %798 = vst [vmem:[%s1745_s2 + $0x58] sm:$0xff] %v476_v21  ;;  %v1039_v24 = vpop.f32.mrb[12].mxu0 }
 0x110   :  { %797 = vst [vmem:[%s1745_s2 + $0x50] sm:$0xff] %v475_v8  ;;  %v1095_v25 = vpop.f32.mrb[12].mxu1  ;;  %v301_v26 = vpop.f32.mrb[13].mxu0 }
 0x111   :  { %v478_v27 = vsub.f32 %v1039_v24, %v1095_v25  ;;  %v446_v28 = vpop.f32.mrb[13].mxu1 }
 0x112   :  { %v477_v29 = vsub.f32 %v301_v26, %v446_v28 }
 0x113   :  { %800 = vst [vmem:[%s1745_s2 + $0x68] sm:$0xff] %v478_v27  ;;  %v1042_v17 = vpop.f32.mrb[14].mxu0 }
 0x114   :  { %799 = vst [vmem:[%s1745_s2 + $0x60] sm:$0xff] %v477_v29  ;;  %v1098_v16 = vpop.f32.mrb[14].mxu1  ;;  %v311_v30 = vpop.f32.mrb[15].mxu0 }
 0x115   :  { %v480_v32 = vsub.f32 %v1042_v17, %v1098_v16  ;;  %v456_v34 = vpop.f32.mrb[15].mxu1 }
 0x116   :  { %v479_v35 = vsub.f32 %v311_v30, %v456_v34 }
 0x117   :  { %802 = vst [vmem:[%s1745_s2 + $0x78] sm:$0xff] %v480_v32  ;;  %v1133_v36 = vpop.f32.mrb[16].mxu0 }
 0x118   :  { %801 = vst [vmem:[%s1745_s2 + $0x70] sm:$0xff] %v479_v35  ;;  %v1189_v37 = vpop.f32.mrb[16].mxu1  ;;  %v547_v23 = vpop.f32.mrb[17].mxu0 }
 0x119   :  { %v772_v22 = vsub.f32 %v1133_v36, %v1189_v37  ;;  %v692_v40 = vpop.f32.mrb[17].mxu1 }
 0x11a   :  { %v771_v41 = vsub.f32 %v547_v23, %v692_v40 }
 0x11b   :  { %804 = vst [vmem:[%s1746_s3 + $0x8] sm:$0xff] %v772_v22  ;;  %v1136_v42 = vpop.f32.mrb[18].mxu0 }
 0x11c   :  { %803 = vst [vmem:[%s1746_s3] sm:$0xff] %v771_v41  ;;  %v1192_v43 = vpop.f32.mrb[18].mxu1  ;;  %v557_v46 = vpop.f32.mrb[19].mxu0 }
 0x11d   :  { %v774_v47 = vsub.f32 %v1136_v42, %v1192_v43  ;;  %v702_v33 = vpop.f32.mrb[19].mxu1 }
 0x11e   :  { %v773_v31 = vsub.f32 %v557_v46, %v702_v33 }
 0x11f   :  { %806 = vst [vmem:[%s1746_s3 + $0x18] sm:$0xff] %v774_v47  ;;  %v1139_v48 = vpop.f32.mrb[20].mxu0 }
 0x120   :  { %805 = vst [vmem:[%s1746_s3 + $0x10] sm:$0xff] %v773_v31  ;;  %v1195_v49 = vpop.f32.mrb[20].mxu1  ;;  %v567_v51 = vpop.f32.mrb[21].mxu0 }
 0x121   :  { %v776_v53 = vsub.f32 %v1139_v48, %v1195_v49  ;;  %v712_v54 = vpop.f32.mrb[21].mxu1 }
 0x122   :  { %v775_v55 = vsub.f32 %v567_v51, %v712_v54 }
 0x123   :  { %808 = vst [vmem:[%s1746_s3 + $0x28] sm:$0xff] %v776_v53  ;;  %v1142_v39 = vpop.f32.mrb[22].mxu0 }
 0x124   :  { %807 = vst [vmem:[%s1746_s3 + $0x20] sm:$0xff] %v775_v55  ;;  %v1198_v38 = vpop.f32.mrb[22].mxu1  ;;  %v577_v56 = vpop.f32.mrb[23].mxu0 }
 0x125   :  { %v778_v57 = vsub.f32 %v1142_v39, %v1198_v38  ;;  %v722_v58 = vpop.f32.mrb[23].mxu1 }
 0x126   :  { %v777_v59 = vsub.f32 %v577_v56, %v722_v58 }
 0x127   :  { %810 = vst [vmem:[%s1746_s3 + $0x38] sm:$0xff] %v778_v57  ;;  %v1145_v60 = vpop.f32.mrb[24].mxu0 }
 0x128   :  { %809 = vst [vmem:[%s1746_s3 + $0x30] sm:$0xff] %v777_v59  ;;  %v1201_v61 = vpop.f32.mrb[24].mxu1  ;;  %v587_v45 = vpop.f32.mrb[25].mxu0 }
 0x129   :  { %v780_v44 = vsub.f32 %v1145_v60, %v1201_v61  ;;  %v732_v62 = vpop.f32.mrb[25].mxu1 }
 0x12a   :  { %v779_v63 = vsub.f32 %v587_v45, %v732_v62 }
 0x12b   :  { %812 = vst [vmem:[%s1746_s3 + $0x48] sm:$0xff] %v780_v44  ;;  %v1148_v0 = vpop.f32.mrb[26].mxu0 }
 0x12c   :  { %811 = vst [vmem:[%s1746_s3 + $0x40] sm:$0xff] %v779_v63  ;;  %v1204_v1 = vpop.f32.mrb[26].mxu1  ;;  %v597_v2 = vpop.f32.mrb[27].mxu0 }
 0x12d   :  { %v782_v4 = vsub.f32 %v1148_v0, %v1204_v1  ;;  %v742_v5 = vpop.f32.mrb[27].mxu1 }
 0x12e   :  { %v781_v52 = vsub.f32 %v597_v2, %v742_v5 }
 0x12f   :  { %814 = vst [vmem:[%s1746_s3 + $0x58] sm:$0xff] %v782_v4  ;;  %v1151_v6 = vpop.f32.mrb[28].mxu0 }
 0x130   :  { %813 = vst [vmem:[%s1746_s3 + $0x50] sm:$0xff] %v781_v52  ;;  %v1207_v9 = vpop.f32.mrb[28].mxu1  ;;  %v607_v50 = vpop.f32.mrb[29].mxu0 }
 0x131   :  { %v784_v10 = vsub.f32 %v1151_v6, %v1207_v9  ;;  %v752_v11 = vpop.f32.mrb[29].mxu1 }
 0x132   :  { %v783_v13 = vsub.f32 %v607_v50, %v752_v11 }
 0x133   :  { %816 = vst [vmem:[%s1746_s3 + $0x68] sm:$0xff] %v784_v10  ;;  %v1154_v7 = vpop.f32.mrb[30].mxu0 }
 0x134   :  { %815 = vst [vmem:[%s1746_s3 + $0x60] sm:$0xff] %v783_v13  ;;  %v1210_v3 = vpop.f32.mrb[30].mxu1  ;;  %v617_v14 = vpop.f32.mrb[31].mxu0 }
 0x135   :  { %v786_v15 = vsub.f32 %v1154_v7, %v1210_v3  ;;  %v762_v18 = vpop.f32.mrb[31].mxu1 }
 0x136   :  { %v785_v19 = vsub.f32 %v617_v14, %v762_v18 }
 0x137   :  { %818 = vst [vmem:[%s1746_s3 + $0x78] sm:$0xff] %v786_v15 }
 0x138   :  { %817 = vst [vmem:[%s1746_s3 + $0x70] sm:$0xff] %v785_v19 }

// kernel: _forward.3
= control target key start
LH: loop header
LB: loop body
LE: loop exit
PB: predicated region body
PF: predicated region fallthrough
CT: control target
= control target key end

     0   :  { %s7132_s0 = inlined_call_operand.vmem [shape: f32[6,128,128], index: 0, kind: input, shape index: {}]   ;;  %s7133_s1 = inlined_call_operand.vmem [shape: f32[6,128,128], index: 1, kind: input, shape index: {}]   ;;  %s7134_s2 = inlined_call_operand.vmem [shape: f32[128,128], index: 2, kind: output, shape index: {0}]   ;;  %s7135_s3 = inlined_call_operand.vmem [shape: f32[128,128], index: 3, kind: output, shape index: {1}]  }
   0x1   :  { %v3526_v0 = vld [vmem:[%s7132_s0 + $0x200] sm:$0xff]  ;;  %v3527_v1 = vld [vmem:[%s7132_s0 + $0x208] sm:$0xff]  ;;  %v3528_v5 = vld [vmem:[%s7132_s0 + $0x210] sm:$0xff] }
   0x2   :  { %v3542_v2 = vld [vmem:[%s7133_s1 + $0x200] sm:$0xff]  ;;  %v5576_v3 = vpack.c.bf16 %v3527_v1, %v3526_v0  ;;  %v3543_v4 = vld [vmem:[%s7133_s1 + $0x208] sm:$0xff]  ;;  %v3529_v6 = vld [vmem:[%s7132_s0 + $0x218] sm:$0xff] }
   0x3   :  { %v5587_v7 = vpack.c.bf16 %v3543_v4, %v3542_v2  ;;  %v5589_v8 = vpack.c.bf16 %v3529_v6, %v3528_v5  ;;  %v3544_v9 = vld [vmem:[%s7133_s1 + $0x210] sm:$0xff]  ;;  %v3545_v10 = vld [vmem:[%s7133_s1 + $0x218] sm:$0xff]  ;;  %v3530_v11 = vld [vmem:[%s7132_s0 + $0x220] sm:$0xff] }
   0x4   :  { %5034 = vmatprep.subr.bf16.mxu0 %v5576_v3  ;;  %v5601_v12 = vpack.c.bf16 %v3545_v10, %v3544_v9  ;;  %v3531_v13 = vld [vmem:[%s7132_s0 + $0x228] sm:$0xff]  ;;  %v3546_v14 = vld [vmem:[%s7133_s1 + $0x220] sm:$0xff]  ;;  %v3532_v18 = vld [vmem:[%s7132_s0 + $0x230] sm:$0xff] }
   0x5   :  { %v3547_v15 = vld [vmem:[%s7133_s1 + $0x228] sm:$0xff]  ;;  %5066 = vmatprep.subr.bf16.mxu1 %v5587_v7  ;;  %5036 = vmatpush3.bf16.msra.mxu0 %v5576_v3  ;;  %v5616_v16 = vpack.c.bf16 %v3531_v13, %v3530_v11  ;;  %v3533_v19 = vld [vmem:[%s7132_s0 + $0x238] sm:$0xff]  ;;  %v3548_v20 = vld [vmem:[%s7133_s1 + $0x230] sm:$0xff] }
   0x6   :  { %5068 = vmatpush3.bf16.msra.mxu1 %v5587_v7  ;;  %5038 = vmatprep.subr.bf16.mxu0 %v5589_v8  ;;  %v5619_v17 = vpack.c.bf16 %v3547_v15, %v3546_v14  ;;  %v3549_v21 = vld [vmem:[%s7133_s1 + $0x238] sm:$0xff]  ;;  %v5636_v22 = vpack.c.bf16 %v3533_v19, %v3532_v18  ;;  %v3534_v24 = vld [vmem:[%s7132_s0 + $0x240] sm:$0xff]  ;;  %v3535_v25 = vld [vmem:[%s7132_s0 + $0x248] sm:$0xff] }
   0x7   :  { %5070 = vmatprep.subr.bf16.mxu1 %v5601_v12  ;;  %v5639_v23 = vpack.c.bf16 %v3549_v21, %v3548_v20  ;;  %v3494_v26 = vld [vmem:[%s7132_s0 + $0x280] sm:$0xff]  ;;  %v3551_v28 = vld [vmem:[%s7133_s1 + $0x248] sm:$0xff]  ;;  %v5659_v31 = vpack.c.bf16 %v3535_v25, %v3534_v24  ;;  %v3536_v34 = vld [vmem:[%s7132_s0 + $0x250] sm:$0xff] }
   0x8   :  { %v3550_v27 = vld [vmem:[%s7133_s1 + $0x240] sm:$0xff]  ;;  %v47_v29 = vmax.f32 %v3494_v26, 0.0  ;;  %v63_v30 = vsub.f32 0.0, %v3494_v26  ;;  %v3537_v35 = vld [vmem:[%s7132_s0 + $0x258] sm:$0xff]  ;;  %v3552_v36 = vld [vmem:[%s7133_s1 + $0x250] sm:$0xff] }
   0x9   :  { %5040 = vmatpush3.bf16.msra.mxu0 %v5589_v8  ;;  %v5662_v33 = vpack.c.bf16 %v3551_v28, %v3550_v27  ;;  %v3553_v37 = vld [vmem:[%s7133_s1 + $0x258] sm:$0xff]  ;;  %v5679_v38 = vpack.c.bf16 %v3537_v35, %v3536_v34  ;;  %v3538_v40 = vld [vmem:[%s7132_s0 + $0x260] sm:$0xff]  ;;  %v3539_v41 = vld [vmem:[%s7132_s0 + $0x268] sm:$0xff] }
   0xa   :  { %5072 = vmatpush3.bf16.msra.mxu1 %v5601_v12  ;;  %5042 = vmatprep.subr.bf16.mxu0 %v5616_v16  ;;  %v79_v32 = vmax.f32 %v63_v30, 0.0  ;;  %v5682_v39 = vpack.c.bf16 %v3553_v37, %v3552_v36  ;;  %v3554_v42 = vld [vmem:[%s7133_s1 + $0x260] sm:$0xff]  ;;  %v3555_v43 = vld [vmem:[%s7133_s1 + $0x268] sm:$0xff]  ;;  %v5699_v44 = vpack.c.bf16 %v3539_v41, %v3538_v40  ;;  %v3540_v46 = vld [vmem:[%s7132_s0 + $0x270] sm:$0xff] }
   0xb   :  { %5074 = vmatprep.subr.bf16.mxu1 %v5619_v17  ;;  %4169 = vmatprep.mubr.f32.mxu0 %v47_v29  ;;  %v5702_v45 = vpack.c.bf16 %v3555_v43, %v3554_v42  ;;  %v3541_v47 = vld [vmem:[%s7132_s0 + $0x278] sm:$0xff]  ;;  %v3556_v48 = vld [vmem:[%s7133_s1 + $0x270] sm:$0xff]  ;;  %v3495_v51 = vld [vmem:[%s7132_s0 + $0x288] sm:$0xff] }
   0xc   :  { %4225 = vmatprep.mubr.f32.mxu1 %v79_v32  ;;  %v3557_v49 = vld [vmem:[%s7133_s1 + $0x278] sm:$0xff]  ;;  %v5719_v50 = vpack.c.bf16 %v3541_v47, %v3540_v46  ;;  %v3496_v53 = vld [vmem:[%s7132_s0 + $0x290] sm:$0xff]  ;;  %v64_v54 = vsub.f32 0.0, %v3495_v51  ;;  %v48_v57 = vmax.f32 %v3495_v51, 0.0  ;;  %v3498_v58 = vld [vmem:[%s7132_s0 + $0x2a0] sm:$0xff] }
   0xd   :  { %5044 = vmatpush3.bf16.msra.mxu0 %v5616_v16  ;;  %v5725_v52 = vpack.c.bf16 %v3557_v49, %v3556_v48  ;;  %v3497_v55 = vld [vmem:[%s7132_s0 + $0x298] sm:$0xff]  ;;  %v65_v56 = vsub.f32 0.0, %v3496_v53  ;;  %v49_v61 = vmax.f32 %v3496_v53, 0.0  ;;  %v3499_v62 = vld [vmem:[%s7132_s0 + $0x2a8] sm:$0xff]  ;;  %v67_v0 = vsub.f32 0.0, %v3498_v58  ;;  %v3500_v2 = vld [vmem:[%s7132_s0 + $0x2b0] sm:$0xff] }
   0xe   :  { %5076 = vmatpush3.bf16.msra.mxu1 %v5619_v17  ;;  %5046 = vmatprep.subr.bf16.mxu0 %v5636_v22  ;;  %v80_v59 = vmax.f32 %v64_v54, 0.0  ;;  %v66_v60 = vsub.f32 0.0, %v3497_v55  ;;  %v50_v1 = vmax.f32 %v3497_v55, 0.0  ;;  %v68_v5 = vsub.f32 0.0, %v3499_v62  ;;  %v3501_v9 = vld [vmem:[%s7132_s0 + $0x2b8] sm:$0xff]  ;;  %v3503_v18 = vld [vmem:[%s7132_s0 + $0x2c8] sm:$0xff] }
   0xf   :  { %5078 = vmatprep.subr.bf16.mxu1 %v5639_v23  ;;  %v81_v63 = vmax.f32 %v65_v56, 0.0  ;;  %v51_v6 = vmax.f32 %v3498_v58, 0.0  ;;  %v83_v10 = vmax.f32 %v67_v0, 0.0  ;;  %v69_v11 = vsub.f32 0.0, %v3500_v2  ;;  %v3505_v26 = vld [vmem:[%s7132_s0 + $0x2d8] sm:$0xff]  ;;  %v3507_v34 = vld [vmem:[%s7132_s0 + $0x2e8] sm:$0xff] }
  0x10   :  { %v82_v4 = vmax.f32 %v66_v60, 0.0  ;;  %v52_v13 = vmax.f32 %v3499_v62, 0.0  ;;  %v70_v14 = vsub.f32 0.0, %v3501_v9  ;;  %v53_v15 = vmax.f32 %v3500_v2, 0.0  ;;  %v3509_v42 = vld [vmem:[%s7132_s0 + $0x2f8] sm:$0xff]  ;;  %v3511_v51 = vld [vmem:[%s7133_s1 + $0x288] sm:$0xff] }
  0x11   :  { %5048 = vmatpush3.bf16.msra.mxu0 %v5636_v22  ;;  %v85_v19 = vmax.f32 %v69_v11, 0.0  ;;  %v54_v21 = vmax.f32 %v3501_v9, 0.0  ;;  %v72_v24 = vsub.f32 0.0, %v3503_v18  ;;  %v56_v29 = vmax.f32 %v3503_v18, 0.0  ;;  %v3512_v55 = vld [vmem:[%s7133_s1 + $0x290] sm:$0xff]  ;;  %v3515_v2 = vld [vmem:[%s7133_s1 + $0x2a8] sm:$0xff] }
  0x12   :  { %5080 = vmatpush3.bf16.msra.mxu1 %v5639_v23  ;;  %5050 = vmatprep.subr.bf16.mxu0 %v5659_v31  ;;  %v74_v30 = vsub.f32 0.0, %v3505_v26  ;;  %v58_v37 = vmax.f32 %v3505_v26, 0.0  ;;  %v76_v40 = vsub.f32 0.0, %v3507_v34  ;;  %v60_v47 = vmax.f32 %v3507_v34, 0.0  ;;  %v3517_v11 = vld [vmem:[%s7133_s1 + $0x2b8] sm:$0xff] }
  0x13   :  { %5082 = vmatprep.subr.bf16.mxu1 %v5662_v33  ;;  %v78_v48 = vsub.f32 0.0, %v3509_v42  ;;  %v112_v56 = vsub.f32 0.0, %v3511_v51  ;;  %v113_v58 = vsub.f32 0.0, %v3512_v55  ;;  %v97_v62 = vmax.f32 %v3512_v55, 0.0 }
  0x14   :  { %v116_v9 = vsub.f32 0.0, %v3515_v2 }
  0x15   :  { %5052 = vmatpush3.bf16.msra.mxu0 %v5659_v31  ;;  %v129_v0 = vmax.f32 %v113_v58, 0.0 }
  0x16   :  { %5084 = vmatpush3.bf16.msra.mxu1 %v5662_v33  ;;  %5054 = vmatprep.subr.bf16.mxu0 %v5679_v38 }
  0x17   :  { %5086 = vmatprep.subr.bf16.mxu1 %v5682_v39 }
  0x19   :  { %5056 = vmatpush3.bf16.msra.mxu0 %v5679_v38 }
  0x1a   :  { %5088 = vmatpush3.bf16.msra.mxu1 %v5682_v39  ;;  %5058 = vmatprep.subr.bf16.mxu0 %v5699_v44 }
  0x1b   :  { %5090 = vmatprep.subr.bf16.mxu1 %v5702_v45 }
  0x1d   :  { %5060 = vmatpush3.bf16.msra.mxu0 %v5699_v44 }
  0x1e   :  { %5092 = vmatpush3.bf16.msra.mxu1 %v5702_v45  ;;  %5062 = vmatprep.subr.bf16.mxu0 %v5719_v50 }
  0x1f   :  { %5094 = vmatprep.subr.bf16.mxu1 %v5725_v52 }
  0x21   :  { %5064 = vmatpush3.bf16.msra.mxu0 %v5719_v50 }
  0x22   :  { %5096 = vmatpush3.bf16.msra.mxu1 %v5725_v52  ;;  %5098 = vmatprep.subr.bf16.mxu0 %v5587_v7 }
  0x23   :  { %5130 = vmatprep.subr.bf16.mxu1 %v5576_v3 }
  0x24   :  { %4170 = vmatmul.mubr.f32.vlgmr.msra.gmra.mrb[0].mxu0 %v48_v57 }
  0x25   :  { %4226 = vmatmul.mubr.f32.vlgmr.msra.gmra.mrb[0].mxu1 %v80_v59  ;;  %5100 = vmatpush3.bf16.msra.mxu0 %v5587_v7  ;;  %v3502_v7 = vld [vmem:[%s7132_s0 + $0x2c0] sm:$0xff]  ;;  %v3513_v59 = vld [vmem:[%s7133_s1 + $0x298] sm:$0xff] }
  0x26   :  { %5132 = vmatpush3.bf16.msra.mxu1 %v5576_v3  ;;  %4172 = vmatprep.mubr.f32.mxu0 %v49_v61  ;;  %v84_v3 = vmax.f32 %v68_v5, 0.0  ;;  %v71_v20 = vsub.f32 0.0, %v3502_v7  ;;  %v55_v25 = vmax.f32 %v3502_v7, 0.0  ;;  %v3514_v61 = vld [vmem:[%s7133_s1 + $0x2a0] sm:$0xff]  ;;  %v98_v5 = vmax.f32 %v3513_v59, 0.0 }
  0x27   :  { %4228 = vmatprep.mubr.f32.mxu1 %v81_v63  ;;  %5102 = vmatprep.subr.bf16.mxu0 %v5601_v12  ;;  %v114_v63 = vsub.f32 0.0, %v3513_v59  ;;  %v100_v7 = vmax.f32 %v3515_v2, 0.0  ;;  %v3561_v59 = vld [vmem:[%s7132_s0 + $0x100] sm:$0xff]  ;;  %v3579_v2 = vld [vmem:[%s7133_s1 + $0x110] sm:$0xff] }
  0x28   :  { %4173 = vmatmul.mubr.f32.gmra.mrb[2].mxu0 %v50_v1  ;;  %5134 = vmatprep.subr.bf16.mxu1 %v5589_v8  ;;  %v87_v27 = vmax.f32 %v71_v20, 0.0  ;;  %v115_v1 = vsub.f32 0.0, %v3514_v61  ;;  %v3519_v20 = vld [vmem:[%s7133_s1 + $0x2c8] sm:$0xff] }
  0x29   :  { %4229 = vmatmul.mubr.f32.gmra.mrb[2].mxu1 %v82_v4  ;;  %5104 = vmatpush3.bf16.msra.mxu0 %v5601_v12  ;;  %v3504_v12 = vld [vmem:[%s7132_s0 + $0x2d0] sm:$0xff] }
  0x2a   :  { %5136 = vmatpush3.bf16.msra.mxu1 %v5589_v8  ;;  %4175 = vmatprep.mubr.f32.mxu0 %v51_v6  ;;  %v86_v8 = vmax.f32 %v70_v14, 0.0  ;;  %v73_v28 = vsub.f32 0.0, %v3504_v12  ;;  %v57_v32 = vmax.f32 %v3504_v12, 0.0  ;;  %v3516_v4 = vld [vmem:[%s7133_s1 + $0x2b0] sm:$0xff]  ;;  %v99_v6 = vmax.f32 %v3514_v61, 0.0  ;;  %v3577_v61 = vld [vmem:[%s7133_s1 + $0x100] sm:$0xff] }
  0x2b   :  { %4231 = vmatprep.mubr.f32.mxu1 %v83_v10  ;;  %5106 = vmatprep.subr.bf16.mxu0 %v5619_v17  ;;  %v117_v10 = vsub.f32 0.0, %v3516_v4  ;;  %v101_v14 = vmax.f32 %v3516_v4, 0.0  ;;  %v102_v12 = vmax.f32 %v3517_v11, 0.0  ;;  %v3580_v4 = vld [vmem:[%s7133_s1 + $0x118] sm:$0xff] }
  0x2c   :  { %4176 = vmatmul.mubr.f32.gmra.mrb[4].mxu0 %v52_v13  ;;  %5138 = vmatprep.subr.bf16.mxu1 %v5616_v16  ;;  %v89_v35 = vmax.f32 %v73_v28, 0.0  ;;  %v3518_v13 = vld [vmem:[%s7133_s1 + $0x2c0] sm:$0xff]  ;;  %v3521_v28 = vld [vmem:[%s7133_s1 + $0x2d8] sm:$0xff] }
  0x2d   :  { %4232 = vmatmul.mubr.f32.gmra.mrb[4].mxu1 %v84_v3  ;;  %5108 = vmatpush3.bf16.msra.mxu0 %v5619_v17  ;;  %v3506_v17 = vld [vmem:[%s7132_s0 + $0x2e0] sm:$0xff]  ;;  %v132_v3 = vmax.f32 %v116_v9, 0.0  ;;  %v133_v18 = vmax.f32 %v117_v10, 0.0 }
  0x2e   :  { %5140 = vmatpush3.bf16.msra.mxu1 %v5616_v16  ;;  %4178 = vmatprep.mubr.f32.mxu0 %v53_v15  ;;  %v88_v16 = vmax.f32 %v72_v24, 0.0  ;;  %v75_v36 = vsub.f32 0.0, %v3506_v17  ;;  %v59_v41 = vmax.f32 %v3506_v17, 0.0  ;;  %v118_v15 = vsub.f32 0.0, %v3517_v11  ;;  %v3581_v9 = vld [vmem:[%s7133_s1 + $0x120] sm:$0xff] }
  0x2f   :  { %4234 = vmatprep.mubr.f32.mxu1 %v85_v19  ;;  %5110 = vmatprep.subr.bf16.mxu0 %v5639_v23  ;;  %v119_v19 = vsub.f32 0.0, %v3518_v13  ;;  %v103_v24 = vmax.f32 %v3518_v13, 0.0  ;;  %v104_v17 = vmax.f32 %v3519_v20, 0.0  ;;  %v3567_v13 = vld [vmem:[%s7132_s0 + $0x130] sm:$0xff] }
  0x30   :  { %4179 = vmatmul.mubr.f32.gmra.mrb[6].mxu0 %v54_v21  ;;  %5142 = vmatprep.subr.bf16.mxu1 %v5636_v22  ;;  %v91_v43 = vmax.f32 %v75_v36, 0.0  ;;  %v3520_v21 = vld [vmem:[%s7133_s1 + $0x2d0] sm:$0xff]  ;;  %v3523_v36 = vld [vmem:[%s7133_s1 + $0x2e8] sm:$0xff] }
  0x31   :  { %4235 = vmatmul.mubr.f32.gmra.mrb[6].mxu1 %v86_v8  ;;  %5112 = vmatpush3.bf16.msra.mxu0 %v5639_v23  ;;  %v3508_v23 = vld [vmem:[%s7132_s0 + $0x2f0] sm:$0xff]  ;;  %v134_v8 = vmax.f32 %v118_v15, 0.0  ;;  %v135_v26 = vmax.f32 %v119_v19, 0.0  ;;  %v3569_v19 = vld [vmem:[%s7132_s0 + $0x140] sm:$0xff] }
  0x32   :  { %5144 = vmatpush3.bf16.msra.mxu1 %v5636_v22  ;;  %4181 = vmatprep.mubr.f32.mxu0 %v55_v25  ;;  %v90_v22 = vmax.f32 %v74_v30, 0.0  ;;  %v77_v46 = vsub.f32 0.0, %v3508_v23  ;;  %v61_v49 = vmax.f32 %v3508_v23, 0.0  ;;  %v120_v25 = vsub.f32 0.0, %v3519_v20  ;;  %v3570_v20 = vld [vmem:[%s7132_s0 + $0x148] sm:$0xff] }
  0x33   :  { %4237 = vmatprep.mubr.f32.mxu1 %v87_v27  ;;  %5114 = vmatprep.subr.bf16.mxu0 %v5662_v33  ;;  %v121_v27 = vsub.f32 0.0, %v3520_v21  ;;  %v105_v30 = vmax.f32 %v3520_v21, 0.0  ;;  %v106_v23 = vmax.f32 %v3521_v28, 0.0  ;;  %v3585_v21 = vld [vmem:[%s7133_s1 + $0x140] sm:$0xff] }
  0x34   :  { %4182 = vmatmul.mubr.f32.gmra.mrb[8].mxu0 %v56_v29  ;;  %5146 = vmatprep.subr.bf16.mxu1 %v5659_v31  ;;  %v93_v53 = vmax.f32 %v77_v46, 0.0  ;;  %v3522_v29 = vld [vmem:[%s7133_s1 + $0x2e0] sm:$0xff]  ;;  %v3525_v46 = vld [vmem:[%s7133_s1 + $0x2f8] sm:$0xff] }
  0x35   :  { %4238 = vmatmul.mubr.f32.gmra.mrb[8].mxu1 %v88_v16  ;;  %5116 = vmatpush3.bf16.msra.mxu0 %v5662_v33  ;;  %v3510_v33 = vld [vmem:[%s7133_s1 + $0x280] sm:$0xff]  ;;  %v136_v16 = vmax.f32 %v120_v25, 0.0  ;;  %v137_v34 = vmax.f32 %v121_v27, 0.0  ;;  %v3571_v25 = vld [vmem:[%s7132_s0 + $0x150] sm:$0xff] }
  0x36   :  { %5148 = vmatpush3.bf16.msra.mxu1 %v5659_v31  ;;  %4184 = vmatprep.mubr.f32.mxu0 %v57_v32  ;;  %v92_v31 = vmax.f32 %v76_v40, 0.0  ;;  %v111_v54 = vsub.f32 0.0, %v3510_v33  ;;  %v95_v57 = vmax.f32 %v3510_v33, 0.0  ;;  %v122_v32 = vsub.f32 0.0, %v3521_v28  ;;  %v3587_v27 = vld [vmem:[%s7133_s1 + $0x150] sm:$0xff]  ;;  %v3588_v28 = vld [vmem:[%s7133_s1 + $0x158] sm:$0xff] }
  0x37   :  { %4240 = vmatprep.mubr.f32.mxu1 %v89_v35  ;;  %5118 = vmatprep.subr.bf16.mxu0 %v5682_v39  ;;  %v123_v35 = vsub.f32 0.0, %v3522_v29  ;;  %v107_v40 = vmax.f32 %v3522_v29, 0.0 }
  0x38   :  { %4185 = vmatmul.mubr.f32.gmra.mrb[10].mxu0 %v58_v37  ;;  %5150 = vmatprep.subr.bf16.mxu1 %v5679_v38  ;;  %v127_v60 = vmax.f32 %v111_v54, 0.0  ;;  %v3524_v37 = vld [vmem:[%s7133_s1 + $0x2f0] sm:$0xff]  ;;  %v7136_v54 = vlaneseq }
  0x39   :  { %4241 = vmatmul.mubr.f32.gmra.mrb[10].mxu1 %v90_v22  ;;  %5120 = vmatpush3.bf16.msra.mxu0 %v5682_v39  ;;  %v62_v39 = vmax.f32 %v3509_v42, 0.0  ;;  %v138_v22 = vmax.f32 %v122_v32, 0.0  ;;  %v139_v42 = vmax.f32 %v123_v35, 0.0 }
  0x3a   :  { %5152 = vmatpush3.bf16.msra.mxu1 %v5679_v38  ;;  %4187 = vmatprep.mubr.f32.mxu0 %v59_v41  ;;  %v94_v38 = vmax.f32 %v78_v48, 0.0  ;;  %v124_v41 = vsub.f32 0.0, %v3523_v36  ;;  %v126_v48 = vsub.f32 0.0, %v3525_v46  ;;  %v5856_v55 = vshrl.u32 %v7136_v54, 7 }
  0x3b   :  { %4243 = vmatprep.mubr.f32.mxu1 %v91_v43  ;;  %5122 = vmatprep.subr.bf16.mxu0 %v5702_v45  ;;  %v125_v43 = vsub.f32 0.0, %v3524_v37 }
  0x3c   :  { %4188 = vmatmul.mubr.f32.gmra.mrb[12].mxu0 %v60_v47  ;;  %5154 = vmatprep.subr.bf16.mxu1 %v5699_v44  ;;  %v108_v47 = vmax.f32 %v3523_v36, 0.0  ;;  %v140_v33 = vmax.f32 %v124_v41, 0.0 }
  0x3d   :  { %4244 = vmatmul.mubr.f32.gmra.mrb[12].mxu1 %v92_v31  ;;  %5124 = vmatpush3.bf16.msra.mxu0 %v5702_v45  ;;  %v96_v45 = vmax.f32 %v3511_v51, 0.0  ;;  %v109_v31 = vmax.f32 %v3524_v37, 0.0  ;;  %v110_v51 = vmax.f32 %v3525_v46, 0.0 }
  0x3e   :  { %5156 = vmatpush3.bf16.msra.mxu1 %v5699_v44  ;;  %4190 = vmatprep.mubr.f32.mxu0 %v61_v49  ;;  %v128_v44 = vmax.f32 %v112_v56, 0.0  ;;  %v141_v49 = vmax.f32 %v125_v43, 0.0 }
  0x3f   :  { %4246 = vmatprep.mubr.f32.mxu1 %v93_v53  ;;  %5126 = vmatprep.subr.bf16.mxu0 %v5725_v52  ;;  %v142_v53 = vmax.f32 %v126_v48, 0.0 }
  0x40   :  { %4191 = vmatmul.mubr.f32.gmra.mrb[14].mxu0 %v62_v39  ;;  %5158 = vmatprep.subr.bf16.mxu1 %v5719_v50  ;;  %v1064_v39 = vsub.s32 0, %v5856_v55 }
  0x41   :  { %4247 = vmatmul.mubr.f32.gmra.mrb[14].mxu1 %v94_v38  ;;  %5128 = vmatpush3.bf16.msra.mxu0 %v5725_v52  ;;  %v130_v52 = vmax.f32 %v114_v63, 0.0  ;;  %v5862_v38 = vld [vmem:[%s7132_s0 + $0x180] sm:$0xff]  ;;  %v3564_v63 = vld [vmem:[%s7132_s0 + $0x118] sm:$0xff] }
  0x42   :  { %5160 = vmatpush3.bf16.msra.mxu1 %v5719_v50  ;;  %4281 = vmatprep.mubr.f32.mxu0 %v95_v57  ;;  %v131_v50 = vmax.f32 %v115_v1, 0.0  ;;  %v5865_v56 = vrot.slane %v5862_v38, %v1064_v39  ;;  %v5870_v57 = vld [vmem:[%s7133_s1 + $0x180] sm:$0xff] }
  0x43   :  { %4337 = vmatprep.mubr.f32.mxu1 %v127_v60  ;;  %v5873_v58 = vrot.slane %v5870_v57, %v1064_v39  ;;  %v3562_v60 = vld [vmem:[%s7132_s0 + $0x108] sm:$0xff] }
  0x44   :  { %4282 = vmatmul.mubr.f32.vlgmr.msra.gmra.mrb[16].mxu0 %v96_v45  ;;  %v5884_v45 = vpack.c.bf16 %v3562_v60, %v3561_v59 }
  0x45   :  { %4338 = vmatmul.mubr.f32.vlgmr.msra.gmra.mrb[16].mxu1 %v128_v44  ;;  %4284 = vmatprep.mubr.f32.mxu0 %v97_v62  ;;  %v3578_v44 = vld [vmem:[%s7133_s1 + $0x108] sm:$0xff]  ;;  %v3563_v62 = vld [vmem:[%s7132_s0 + $0x110] sm:$0xff] }
  0x46   :  { %4340 = vmatprep.mubr.f32.mxu1 %v129_v0  ;;  %7205 = vst [vmem:[#allocation2_spill] sm:$0xff] %v5884_v45  ;;  %v5895_v0 = vpack.c.bf16 %v3578_v44, %v3577_v61  ;;  %v5897_v1 = vpack.c.bf16 %v3564_v63, %v3563_v62  ;;  %5162 = vmatprep.subr.bf16.mxu0 %v5884_v45 }
  0x47   :  { %5164 = vmatpush3.bf16.msra.mxu0 %v5884_v45 }
  0x48   :  { %4285 = vmatmul.mubr.f32.gmra.mrb[18].mxu0 %v98_v5  ;;  %7206 = vst [vmem:[#allocation3_spill] sm:$0xff] %v5895_v0  ;;  %7207 = vst [vmem:[#allocation4_spill] sm:$0xff] %v5897_v1  ;;  %v3565_v5 = vld [vmem:[%s7132_s0 + $0x120] sm:$0xff]  ;;  %5194 = vmatprep.subr.bf16.mxu1 %v5895_v0 }
  0x49   :  { %4341 = vmatmul.mubr.f32.gmra.mrb[18].mxu1 %v130_v52  ;;  %4287 = vmatprep.mubr.f32.mxu0 %v99_v6  ;;  %v5909_v52 = vpack.c.bf16 %v3580_v4, %v3579_v2  ;;  %v3566_v6 = vld [vmem:[%s7132_s0 + $0x128] sm:$0xff] }
  0x4a   :  { %4343 = vmatprep.mubr.f32.mxu1 %v131_v50  ;;  %v3582_v50 = vld [vmem:[%s7133_s1 + $0x128] sm:$0xff]  ;;  %5196 = vmatpush3.bf16.msra.mxu1 %v5895_v0  ;;  %v5924_v10 = vpack.c.bf16 %v3566_v6, %v3565_v5 }
  0x4b   :  { %7208 = vst [vmem:[#allocation5_spill] sm:$0xff] %v5909_v52  ;;  %5166 = vmatprep.subr.bf16.mxu0 %v5897_v1  ;;  %5198 = vmatprep.subr.bf16.mxu1 %v5909_v52  ;;  %v5927_v11 = vpack.c.bf16 %v3582_v50, %v3581_v9 }
  0x4c   :  { %4288 = vmatmul.mubr.f32.gmra.mrb[20].mxu0 %v100_v7  ;;  %7209 = vst [vmem:[#allocation6_spill] sm:$0xff] %v5924_v10  ;;  %v3568_v7 = vld [vmem:[%s7132_s0 + $0x138] sm:$0xff] }
  0x4d   :  { %4344 = vmatmul.mubr.f32.gmra.mrb[20].mxu1 %v132_v3  ;;  %4290 = vmatprep.mubr.f32.mxu0 %v101_v14  ;;  %7210 = vst [vmem:[#allocation7_spill] sm:$0xff] %v5927_v11  ;;  %v3583_v3 = vld [vmem:[%s7133_s1 + $0x130] sm:$0xff]  ;;  %v3584_v14 = vld [vmem:[%s7133_s1 + $0x138] sm:$0xff]  ;;  %v5944_v15 = vpack.c.bf16 %v3568_v7, %v3567_v13 }
  0x4e   :  { %4346 = vmatprep.mubr.f32.mxu1 %v133_v18  ;;  %5168 = vmatpush3.bf16.msra.mxu0 %v5897_v1  ;;  %v5947_v18 = vpack.c.bf16 %v3584_v14, %v3583_v3 }
  0x4f   :  { %5200 = vmatpush3.bf16.msra.mxu1 %v5909_v52  ;;  %5170 = vmatprep.subr.bf16.mxu0 %v5924_v10  ;;  %7211 = vst [vmem:[#allocation8_spill] sm:$0xff] %v5944_v15 }
  0x50   :  { %4291 = vmatmul.mubr.f32.gmra.mrb[22].mxu0 %v102_v12  ;;  %5202 = vmatprep.subr.bf16.mxu1 %v5927_v11  ;;  %7212 = vst [vmem:[#allocation9_spill] sm:$0xff] %v5947_v18  ;;  %v3586_v12 = vld [vmem:[%s7133_s1 + $0x148] sm:$0xff] }
  0x51   :  { %4347 = vmatmul.mubr.f32.gmra.mrb[22].mxu1 %v134_v8  ;;  %4293 = vmatprep.mubr.f32.mxu0 %v103_v24  ;;  %v5964_v8 = vpack.c.bf16 %v3570_v20, %v3569_v19  ;;  %v5967_v24 = vpack.c.bf16 %v3586_v12, %v3585_v21 }
  0x52   :  { %4349 = vmatprep.mubr.f32.mxu1 %v135_v26  ;;  %5172 = vmatpush3.bf16.msra.mxu0 %v5924_v10  ;;  %v3572_v26 = vld [vmem:[%s7132_s0 + $0x158] sm:$0xff] }
  0x53   :  { %5204 = vmatpush3.bf16.msra.mxu1 %v5927_v11  ;;  %5174 = vmatprep.subr.bf16.mxu0 %v5944_v15  ;;  %7213 = vst [vmem:[#allocation10_spill] sm:$0xff] %v5964_v8  ;;  %7214 = vst [vmem:[#allocation11_spill] sm:$0xff] %v5967_v24  ;;  %v5984_v29 = vpack.c.bf16 %v3572_v26, %v3571_v25 }
  0x54   :  { %4294 = vmatmul.mubr.f32.gmra.mrb[24].mxu0 %v104_v17  ;;  %5206 = vmatprep.subr.bf16.mxu1 %v5947_v18  ;;  %v5987_v17 = vpack.c.bf16 %v3588_v28, %v3587_v27 }
  0x55   :  { %4350 = vmatmul.mubr.f32.gmra.mrb[24].mxu1 %v136_v16  ;;  %4296 = vmatprep.mubr.f32.mxu0 %v105_v30  ;;  %7215 = vst [vmem:[#allocation12_spill] sm:$0xff] %v5984_v29  ;;  %v896_v16 = vsub.s32 1, %v5856_v55 }
  0x56   :  { %4352 = vmatprep.mubr.f32.mxu1 %v137_v34  ;;  %5176 = vmatpush3.bf16.msra.mxu0 %v5944_v15  ;;  %7216 = vst [vmem:[#allocation13_spill] sm:$0xff] %v5987_v17 }
  0x57   :  { %5208 = vmatpush3.bf16.msra.mxu1 %v5947_v18  ;;  %5178 = vmatprep.subr.bf16.mxu0 %v5964_v8  ;;  %v5997_v37 = vrot.slane %v5862_v38, %v896_v16 }
  0x58   :  { %4297 = vmatmul.mubr.f32.gmra.mrb[26].mxu0 %v106_v23  ;;  %5210 = vmatprep.subr.bf16.mxu1 %v5967_v24 }
  0x59   :  { %4353 = vmatmul.mubr.f32.gmra.mrb[26].mxu1 %v138_v22  ;;  %4299 = vmatprep.mubr.f32.mxu0 %v107_v40 }
  0x5a   :  { %4355 = vmatprep.mubr.f32.mxu1 %v139_v42  ;;  %5180 = vmatpush3.bf16.msra.mxu0 %v5964_v8  ;;  %v6000_v42 = vrot.slane %v5870_v57, %v896_v16 }
  0x5b   :  { %5212 = vmatpush3.bf16.msra.mxu1 %v5967_v24  ;;  %5182 = vmatprep.subr.bf16.mxu0 %v5984_v29 }
  0x5c   :  { %4300 = vmatmul.mubr.f32.gmra.mrb[28].mxu0 %v108_v47  ;;  %5214 = vmatprep.subr.bf16.mxu1 %v5987_v17 }
  0x5d   :  { %4356 = vmatmul.mubr.f32.gmra.mrb[28].mxu1 %v140_v33  ;;  %4302 = vmatprep.mubr.f32.mxu0 %v109_v31 }
  0x5e   :  { %4358 = vmatprep.mubr.f32.mxu1 %v141_v49  ;;  %5184 = vmatpush3.bf16.msra.mxu0 %v5984_v29 }
  0x5f   :  { %5216 = vmatpush3.bf16.msra.mxu1 %v5987_v17 }
  0x60   :  { %4303 = vmatmul.mubr.f32.gmra.mrb[30].mxu0 %v110_v51 }
  0x61   :  { %4359 = vmatmul.mubr.f32.gmra.mrb[30].mxu1 %v142_v53 }
  0xf7   :  { %v4171_v30 = vpop.f32.mrb[0].mxu0 }
  0xf8   :  { %v4227_v32 = vpop.f32.mrb[0].mxu1  ;;  %v243_v34 = vpop.f32.mrb[1].mxu0 }
  0xf9   :  { %v468_v35 = vsub.f32 %v4171_v30, %v4227_v32  ;;  %v388_v36 = vpop.f32.mrb[1].mxu1 }
  0xfa   :  { %v467_v23 = vsub.f32 %v243_v34, %v388_v36 }
  0xfb   :  { %v790_v22 = vmax.f32 %v468_v35, 0.0  ;;  %v806_v40 = vsub.f32 0.0, %v468_v35  ;;  %v4174_v41 = vpop.f32.mrb[2].mxu0 }
  0xfc   :  { %v789_v43 = vmax.f32 %v467_v23, 0.0  ;;  %v805_v46 = vsub.f32 0.0, %v467_v23  ;;  %v4230_v47 = vpop.f32.mrb[2].mxu1  ;;  %v253_v33 = vpop.f32.mrb[3].mxu0 }
  0xfd   :  { %v822_v31 = vmax.f32 %v806_v40, 0.0  ;;  %v6003_v48 = vmul.f32 %v5865_v56, %v790_v22  ;;  %v470_v49 = vsub.f32 %v4174_v41, %v4230_v47  ;;  %v398_v51 = vpop.f32.mrb[3].mxu1  ;;  %v899_v53 = vmul.f32 %v5997_v37, %v790_v22 }
  0xfe   :  { %v821_v55 = vmax.f32 %v805_v46, 0.0  ;;  %v6007_v39 = vmul.f32 %v5865_v56, %v789_v43  ;;  %v469_v38 = vsub.f32 %v253_v33, %v398_v51  ;;  %v898_v57 = vmul.f32 %v5997_v37, %v789_v43 }
  0xff   :  { %v6011_v59 = vmul.f32 %v5873_v58, %v822_v31  ;;  %v792_v60 = vmax.f32 %v470_v49, 0.0  ;;  %v808_v61 = vsub.f32 0.0, %v470_v49  ;;  %v4177_v44 = vpop.f32.mrb[4].mxu0  ;;  %v919_v62 = vmul.f32 %v6000_v42, %v822_v31 }
 0x100   :  { %v6015_v63 = vmul.f32 %v5873_v58, %v821_v55  ;;  %v791_v2 = vmax.f32 %v469_v38, 0.0  ;;  %v807_v4 = vsub.f32 0.0, %v469_v38  ;;  %v4233_v5 = vpop.f32.mrb[4].mxu1  ;;  %v263_v6 = vpop.f32.mrb[5].mxu0  ;;  %v918_v9 = vmul.f32 %v6000_v42, %v821_v55 }
 0x101   :  { %v824_v50 = vmax.f32 %v808_v61, 0.0  ;;  %v6019_v13 = vmul.f32 %v5865_v56, %v792_v60  ;;  %v472_v7 = vsub.f32 %v4177_v44, %v4233_v5  ;;  %v408_v3 = vpop.f32.mrb[5].mxu1  ;;  %v935_v14 = vsub.f32 %v899_v53, %v919_v62 }
 0x102   :  { %v823_v19 = vmax.f32 %v807_v4, 0.0  ;;  %v6022_v20 = vmul.f32 %v5865_v56, %v791_v2  ;;  %v471_v21 = vsub.f32 %v263_v6, %v408_v3  ;;  %v934_v12 = vsub.f32 %v898_v57, %v918_v9 }
 0x103   :  { %v6025_v25 = vmul.f32 %v5873_v58, %v824_v50  ;;  %v794_v26 = vmax.f32 %v472_v7, 0.0  ;;  %v810_v27 = vsub.f32 0.0, %v472_v7  ;;  %v4180_v28 = vpop.f32.mrb[6].mxu0  ;;  %v900_v16 = vmul.f32 %v5997_v37, %v791_v2 }
 0x104   :  { %v6029_v30 = vmul.f32 %v5873_v58, %v823_v19  ;;  %v793_v32 = vmax.f32 %v471_v21, 0.0  ;;  %v809_v34 = vsub.f32 0.0, %v471_v21  ;;  %v4236_v35 = vpop.f32.mrb[6].mxu1  ;;  %950 = vadd.xlane.f32.xlu0 %v934_v12  ;;  %v273_v36 = vpop.f32.mrb[7].mxu0  ;;  %v920_v23 = vmul.f32 %v6000_v42, %v823_v19 }
 0x105   :  { %v826_v22 = vmax.f32 %v810_v27, 0.0  ;;  %v6033_v40 = vmul.f32 %v5865_v56, %v794_v26  ;;  %v6035_v41 = vsub.f32 %v4180_v28, %v4236_v35  ;;  %v418_v43 = vpop.f32.mrb[7].mxu1  ;;  %v901_v46 = vmul.f32 %v5997_v37, %v792_v60 }
 0x106   :  { %v825_v47 = vmax.f32 %v809_v34, 0.0  ;;  %v6039_v33 = vmul.f32 %v5865_v56, %v793_v32  ;;  %v473_v31 = vsub.f32 %v273_v36, %v418_v43  ;;  %v936_v49 = vsub.f32 %v900_v16, %v920_v23 }
 0x107   :  { %v6042_v51 = vmul.f32 %v5873_v58, %v826_v22  ;;  %v796_v53 = vmax.f32 %v6035_v41, 0.0  ;;  %v812_v55 = vsub.f32 0.0, %v6035_v41  ;;  %v4183_v38 = vpop.f32.mrb[8].mxu0  ;;  %v921_v57 = vmul.f32 %v6000_v42, %v824_v50 }
 0x108   :  { %v6048_v61 = vmul.f32 %v5873_v58, %v825_v47  ;;  %v795_v60 = vmax.f32 %v473_v31, 0.0  ;;  %v811_v44 = vsub.f32 0.0, %v473_v31  ;;  %v4239_v62 = vpop.f32.mrb[8].mxu1  ;;  %952 = vadd.xlane.f32.xlu0 %v935_v14  ;;  %954 = vadd.xlane.f32.xlu1 %v936_v49  ;;  %v283_v2 = vpop.f32.mrb[9].mxu0  ;;  %v902_v4 = vmul.f32 %v5997_v37, %v793_v32 }
 0x109   :  { %v828_v5 = vmax.f32 %v812_v55, 0.0  ;;  %v6052_v6 = vmul.f32 %v5865_v56, %v796_v53  ;;  %v6054_v9 = vsub.f32 %v4183_v38, %v4239_v62  ;;  %v428_v7 = vpop.f32.mrb[9].mxu1  ;;  %v937_v3 = vsub.f32 %v901_v46, %v921_v57 }
 0x10a   :  { %v827_v50 = vmax.f32 %v811_v44, 0.0  ;;  %v6057_v19 = vmul.f32 %v5865_v56, %v795_v60  ;;  %v475_v21 = vsub.f32 %v283_v2, %v428_v7  ;;  %v922_v12 = vmul.f32 %v6000_v42, %v825_v47 }
 0x10b   :  { %v6061_v14 = vmul.f32 %v5873_v58, %v828_v5  ;;  %v7138_v27 = vmax.f32 %v6054_v9, 0.0  ;;  %v814_v28 = vsub.f32 0.0, %v6054_v9  ;;  %v4186_v16 = vpop.f32.mrb[10].mxu0  ;;  %v903_v32 = vmul.f32 %v5997_v37, %v794_v26 }
 0x10c   :  { %v6067_v34 = vmul.f32 %v5873_v58, %v827_v50  ;;  %v797_v35 = vmax.f32 %v475_v21, 0.0  ;;  %v813_v36 = vsub.f32 0.0, %v475_v21  ;;  %v4242_v23 = vpop.f32.mrb[10].mxu1  ;;  %956 = vadd.xlane.f32.xlu1 %v937_v3  ;;  %v938_v41 = vsub.f32 %v902_v4, %v922_v12  ;;  %v293_v43 = vpop.f32.mrb[11].mxu0 }
 0x10d   :  { %v830_v46 = vmax.f32 %v814_v28, 0.0  ;;  %v6072_v47 = vmul.f32 %v5865_v56, %v7138_v27  ;;  %v6074_v31 = vsub.f32 %v4186_v16, %v4242_v23  ;;  %v438_v49 = vpop.f32.mrb[11].mxu1  ;;  %v923_v26 = vmul.f32 %v6000_v42, %v826_v22 }
 0x10e   :  { %v829_v55 = vmax.f32 %v813_v36, 0.0  ;;  %v6078_v38 = vmul.f32 %v5865_v56, %v797_v35  ;;  %958 = vadd.xlane.f32.xlu0 %v938_v41  ;;  %v477_v57 = vsub.f32 %v293_v43, %v438_v49  ;;  %v904_v44 = vmul.f32 %v5997_v37, %v795_v60 }
 0x10f   :  { %v6082_v62 = vmul.f32 %v5873_v58, %v830_v46  ;;  %v7137_v2 = vmax.f32 %v6074_v31, 0.0  ;;  %v816_v4 = vsub.f32 0.0, %v6074_v31  ;;  %v939_v7 = vsub.f32 %v903_v32, %v923_v26  ;;  %v4189_v3 = vpop.f32.mrb[12].mxu0 }
 0x110   :  { %v6087_v21 = vmul.f32 %v5873_v58, %v829_v55  ;;  %v799_v22 = vmax.f32 %v477_v57, 0.0  ;;  %v815_v12 = vsub.f32 0.0, %v477_v57  ;;  %v4245_v28 = vpop.f32.mrb[12].mxu1  ;;  %v924_v16 = vmul.f32 %v6000_v42, %v827_v50  ;;  %v303_v36 = vpop.f32.mrb[13].mxu0 }
 0x111   :  { %v6090_v23 = vmax.f32 %v816_v4, 0.0  ;;  %v6095_v60 = vmul.f32 %v5865_v56, %v7137_v2  ;;  %960 = vadd.xlane.f32.xlu1 %v939_v7  ;;  %v6097_v41 = vsub.f32 %v4189_v3, %v4245_v28  ;;  %v448_v32 = vpop.f32.mrb[13].mxu1  ;;  %v905_v43 = vmul.f32 %v5997_v37, %v796_v53 }
 0x112   :  { %v831_v49 = vmax.f32 %v815_v12, 0.0  ;;  %v6101_v26 = vmul.f32 %v5865_v56, %v799_v22  ;;  %v940_v57 = vsub.f32 %v904_v44, %v924_v16  ;;  %v479_v50 = vsub.f32 %v303_v36, %v448_v32 }
 0x113   :  { %v6105_v4 = vmul.f32 %v5873_v58, %v6090_v23  ;;  %v7147_v54 = vmax.f32 %v6097_v41, 0.0  ;;  %v818_v2 = vsub.f32 0.0, %v6097_v41  ;;  %v925_v7 = vmul.f32 %v6000_v42, %v828_v5  ;;  %v4192_v3 = vpop.f32.mrb[14].mxu0 }
 0x114   :  { %v6111_v28 = vmul.f32 %v5873_v58, %v831_v49  ;;  %962 = vadd.xlane.f32.xlu0 %v940_v57  ;;  %v801_v53 = vmax.f32 %v479_v50, 0.0  ;;  %v817_v12 = vsub.f32 0.0, %v479_v50  ;;  %v4248_v27 = vpop.f32.mrb[14].mxu1  ;;  %v906_v44 = vmul.f32 %v5997_v37, %v797_v35  ;;  %v313_v16 = vpop.f32.mrb[15].mxu0 }
 0x115   :  { %v6114_v36 = vmax.f32 %v818_v2, 0.0  ;;  %v6119_v32 = vmul.f32 %v5865_v56, %v7147_v54  ;;  %v941_v29 = vsub.f32 %v905_v43, %v925_v7  ;;  %v926_v5 = vmul.f32 %v6000_v42, %v829_v55  ;;  %v458_v17 = vpop.f32.mrb[15].mxu1 }
 0x116   :  { %v833_v8 = vmax.f32 %v817_v12, 0.0  ;;  %v6123_v57 = vmul.f32 %v5865_v56, %v801_v53  ;;  %v6125_v50 = vsub.f32 %v4192_v3, %v4248_v27  ;;  %v6127_v24 = vsub.f32 %v313_v16, %v458_v17 }
 0x117   :  { %7217 = vst [vmem:[#allocation14_spill] sm:$0xff] %v6119_v32  ;;  %v6131_v35 = vmul.f32 %v5873_v58, %v6114_v36  ;;  %964 = vadd.xlane.f32.xlu1 %v941_v29  ;;  %v942_v2 = vsub.f32 %v906_v44, %v926_v5  ;;  %v7218_v54 = vmax.f32 %v6054_v9, 0.0  ;;  %v927_v55 = vmul.f32 %v6000_v42, %v830_v46  ;;  %v4283_v7 = vpop.f32.mrb[16].mxu0 }
 0x118   :  { %v6138_v12 = vmul.f32 %v5873_v58, %v833_v8  ;;  %v7156_v27 = vmax.f32 %v6125_v50, 0.0  ;;  %v820_v17 = vsub.f32 0.0, %v6125_v50  ;;  %v803_v3 = vmax.f32 %v6127_v24, 0.0  ;;  %v4339_v16 = vpop.f32.mrb[16].mxu1  ;;  %v549_v15 = vpop.f32.mrb[17].mxu0 }
 0x119   :  { %v907_v43 = vmul.f32 %v5997_v37, %v7218_v54  ;;  %966 = vadd.xlane.f32.xlu0 %v942_v2  ;;  %v819_v29 = vsub.f32 0.0, %v6127_v24  ;;  %v908_v54 = vmul.f32 %v5997_v37, %v799_v22  ;;  %v928_v46 = vmul.f32 %v6000_v42, %v831_v49  ;;  %v694_v44 = vpop.f32.mrb[17].mxu1 }
 0x11a   :  { %v6146_v5 = vmax.f32 %v820_v17, 0.0  ;;  %v6151_v18 = vmul.f32 %v5865_v56, %v7156_v27  ;;  %v6154_v10 = vmul.f32 %v5865_v56, %v803_v3  ;;  %v6156_v11 = vsub.f32 %v4283_v7, %v4339_v16 }
 0x11b   :  { %v943_v9 = vsub.f32 %v907_v43, %v927_v55  ;;  %v835_v2 = vmax.f32 %v819_v29, 0.0  ;;  %v944_v24 = vsub.f32 %v908_v54, %v928_v46  ;;  %v6158_v43 = vsub.f32 %v549_v15, %v694_v44  ;;  %v4286_v55 = vpop.f32.mrb[18].mxu0 }
 0x11c   :  { %7219 = vst [vmem:[#allocation15_spill] sm:$0xff] %v6151_v18  ;;  %7220 = vst [vmem:[#allocation16_spill] sm:$0xff] %v6154_v10  ;;  %v7221_v22 = vmax.f32 %v6074_v31, 0.0  ;;  %v6165_v17 = vmul.f32 %v5873_v58, %v6146_v5  ;;  %v7166_v27 = vmax.f32 %v6156_v11, 0.0  ;;  %v854_v1 = vsub.f32 0.0, %v6156_v11  ;;  %v4342_v7 = vpop.f32.mrb[18].mxu1 }
 0x11d   :  { %968 = vadd.xlane.f32.xlu1 %v943_v9  ;;  %v929_v16 = vmul.f32 %v6000_v42, %v6090_v23  ;;  %v559_v29 = vpop.f32.mrb[19].mxu0  ;;  %v6172_v15 = vmul.f32 %v5873_v58, %v835_v2  ;;  %970 = vadd.xlane.f32.xlu0 %v944_v24  ;;  %v837_v31 = vmax.f32 %v6158_v43, 0.0  ;;  %v853_v9 = vsub.f32 0.0, %v6158_v43  ;;  %v704_v46 = vpop.f32.mrb[19].mxu1 }
 0x11e   :  { %v909_v49 = vmul.f32 %v5997_v37, %v7221_v22  ;;  %7222 = vst [vmem:[#allocation17_spill] sm:$0xff] %v6165_v17  ;;  %v910_v54 = vmul.f32 %v5997_v37, %v801_v53  ;;  %v6177_v44 = vmax.f32 %v854_v1, 0.0  ;;  %v6182_v22 = vmul.f32 %v5873_v58, %v7166_v27 }
 0x11f   :  { %7223 = vst [vmem:[#allocation18_spill] sm:$0xff] %v6172_v15  ;;  %v930_v52 = vmul.f32 %v6000_v42, %v833_v8  ;;  %v869_v45 = vmax.f32 %v853_v9, 0.0  ;;  %v6186_v24 = vmul.f32 %v5873_v58, %v837_v31  ;;  %v6188_v0 = vsub.f32 %v4286_v55, %v4342_v7  ;;  %v4289_v53 = vpop.f32.mrb[20].mxu0 }
 0x120   :  { %7224 = vst [vmem:[#allocation19_spill] sm:$0xff] %v6182_v22  ;;  %v945_v23 = vsub.f32 %v909_v49, %v929_v16  ;;  %v6190_v43 = vsub.f32 %v559_v29, %v704_v46  ;;  %v6194_v1 = vmul.f32 %v5865_v56, %v6177_v44  ;;  %v4345_v27 = vpop.f32.mrb[20].mxu1  ;;  %v7227_v49 = vmax.f32 %v6097_v41, 0.0  ;;  %v569_v9 = vpop.f32.mrb[21].mxu0 }
 0x121   :  { %7225 = vst [vmem:[#allocation20_spill] sm:$0xff] %v6186_v24  ;;  %v946_v18 = vsub.f32 %v910_v54, %v930_v52  ;;  %v931_v16 = vmul.f32 %v6000_v42, %v6114_v36  ;;  %v6202_v55 = vmul.f32 %v5865_v56, %v869_v45  ;;  %v7171_v7 = vmax.f32 %v6188_v0, 0.0 }
 0x122   :  { %7226 = vst [vmem:[#allocation21_spill] sm:$0xff] %v6194_v1  ;;  %972 = vadd.xlane.f32.xlu1 %v945_v23  ;;  %v911_v8 = vmul.f32 %v5997_v37, %v7227_v49  ;;  %v856_v29 = vsub.f32 0.0, %v6188_v0  ;;  %v839_v46 = vmax.f32 %v6190_v43, 0.0  ;;  %v714_v23 = vpop.f32.mrb[21].mxu1  ;;  %v855_v52 = vsub.f32 0.0, %v6190_v43 }
 0x123   :  { %7228 = vst [vmem:[#allocation22_spill] sm:$0xff] %v6202_v55  ;;  %974 = vadd.xlane.f32.xlu0 %v946_v18  ;;  %v6208_v54 = vsub.f32 %v4289_v53, %v4345_v27  ;;  %v912_v49 = vmul.f32 %v5997_v37, %v803_v3  ;;  %v6216_v22 = vmul.f32 %v5873_v58, %v7171_v7  ;;  %v4292_v18 = vpop.f32.mrb[22].mxu0  ;;  %v7232_v7 = vmax.f32 %v6125_v50, 0.0 }
 0x124   :  { %v947_v41 = vsub.f32 %v911_v8, %v931_v16  ;;  %v6211_v36 = vmax.f32 %v856_v29, 0.0  ;;  %v6219_v1 = vmul.f32 %v5873_v58, %v839_v46  ;;  %v932_v24 = vmul.f32 %v6000_v42, %v835_v2  ;;  %v4348_v53 = vpop.f32.mrb[22].mxu1  ;;  %v579_v8 = vpop.f32.mrb[23].mxu0 }
 0x125   :  { %7229 = vst [vmem:[#allocation23_spill] sm:$0xff] %v6216_v22  ;;  %v871_v55 = vmax.f32 %v855_v52, 0.0  ;;  %v858_v43 = vsub.f32 0.0, %v6208_v54  ;;  %v6224_v3 = vsub.f32 %v569_v9, %v714_v23  ;;  %v913_v2 = vmul.f32 %v5997_v37, %v7232_v7 }
 0x126   :  { %7230 = vst [vmem:[#allocation24_spill] sm:$0xff] %v6219_v1  ;;  %976 = vadd.xlane.f32.xlu1 %v947_v41  ;;  %v6228_v16 = vmul.f32 %v5865_v56, %v6211_v36  ;;  %v948_v29 = vsub.f32 %v912_v49, %v932_v24  ;;  %v933_v52 = vmul.f32 %v6000_v42, %v6146_v5  ;;  %v724_v41 = vpop.f32.mrb[23].mxu1  ;;  %v7234_v23 = vmax.f32 %v6208_v54, 0.0 }
 0x127   :  { %v6236_v27 = vmul.f32 %v5865_v56, %v871_v55  ;;  %v6238_v9 = vmax.f32 %v858_v43, 0.0  ;;  %v841_v24 = vmax.f32 %v6224_v3, 0.0  ;;  %v857_v50 = vsub.f32 0.0, %v6224_v3 }
 0x128   :  { %7231 = vst [vmem:[#allocation25_spill] sm:$0xff] %v6228_v16  ;;  %v6243_v22 = vmul.f32 %v5873_v58, %v7234_v23  ;;  %978 = vadd.xlane.f32.xlu0 %v948_v29  ;;  %v949_v7 = vsub.f32 %v913_v2, %v933_v52  ;;  %v6247_v49 = vsub.f32 %v4292_v18, %v4348_v53  ;;  %v4295_v16 = vpop.f32.mrb[24].mxu0  ;;  %v4351_v29 = vpop.f32.mrb[24].mxu1  ;;  %v7238_v53 = vmax.f32 %v6156_v11, 0.0 }
 0x129   :  { %7233 = vst [vmem:[#allocation26_spill] sm:$0xff] %v6236_v27  ;;  %v982_v5 = vmul.f32 %v6000_v42, %v837_v31  ;;  %v6252_v43 = vmul.f32 %v5865_v56, %v6238_v9  ;;  %v6255_v1 = vmul.f32 %v5873_v58, %v841_v24  ;;  %v998_v23 = vmul.f32 %v5997_v37, %v869_v45  ;;  %v589_v27 = vpop.f32.mrb[25].mxu0  ;;  %v734_v52 = vpop.f32.mrb[25].mxu1 }
 0x12a   :  { %7235 = vst [vmem:[#allocation27_spill] sm:$0xff] %v6243_v22  ;;  %v6258_v22 = vsub.f32 %v579_v8, %v724_v41  ;;  %v873_v3 = vmax.f32 %v857_v50, 0.0  ;;  %980 = vadd.xlane.f32.xlu1 %v949_v7  ;;  %v7181_v18 = vmax.f32 %v6247_v49, 0.0  ;;  %v860_v31 = vsub.f32 0.0, %v6247_v49 }
 0x12b   :  { %7236 = vst [vmem:[#allocation28_spill] sm:$0xff] %v6252_v43  ;;  %7237 = vst [vmem:[#allocation29_spill] sm:$0xff] %v6255_v1  ;;  %v983_v2 = vmul.f32 %v6000_v42, %v7238_v53  ;;  %v1014_v43 = vsub.f32 %v982_v5, %v998_v23  ;;  %v999_v8 = vmul.f32 %v5997_v37, %v6177_v44  ;;  %v4298_v5 = vpop.f32.mrb[26].mxu0 }
 0x12c   :  { %v843_v1 = vmax.f32 %v6258_v22, 0.0  ;;  %v859_v45 = vsub.f32 0.0, %v6258_v22  ;;  %v6270_v41 = vmul.f32 %v5865_v56, %v873_v3  ;;  %v6272_v50 = vmax.f32 %v860_v31, 0.0  ;;  %v4354_v17 = vpop.f32.mrb[26].mxu1 }
 0x12d   :  { %v6277_v11 = vmul.f32 %v5873_v58, %v7181_v18  ;;  %v6279_v7 = vsub.f32 %v4295_v16, %v4351_v29  ;;  %1030 = vadd.xlane.f32.xlu0 %v1014_v43  ;;  %v1015_v53 = vsub.f32 %v983_v2, %v999_v8  ;;  %v984_v44 = vmul.f32 %v6000_v42, %v839_v46  ;;  %v744_v43 = vpop.f32.mrb[27].mxu1 }
 0x12e   :  { %7239 = vst [vmem:[#allocation30_spill] sm:$0xff] %v6270_v41  ;;  %v875_v23 = vmax.f32 %v859_v45, 0.0  ;;  %v6282_v22 = vmul.f32 %v5873_v58, %v843_v1  ;;  %v599_v41 = vpop.f32.mrb[27].mxu0  ;;  %v6287_v31 = vmul.f32 %v5865_v56, %v6272_v50  ;;  %v1000_v29 = vmul.f32 %v5997_v37, %v871_v55 }
 0x12f   :  { %7240 = vst [vmem:[#allocation31_spill] sm:$0xff] %v6277_v11  ;;  %v7188_v18 = vmax.f32 %v6279_v7, 0.0  ;;  %v862_v16 = vsub.f32 0.0, %v6279_v7  ;;  %1032 = vadd.xlane.f32.xlu1 %v1015_v53  ;;  %v781_v2 = vsub.f32 %v589_v27, %v734_v52  ;;  %v7244_v46 = vmax.f32 %v6188_v0, 0.0 }
 0x130   :  { %7241 = vst [vmem:[#allocation32_spill] sm:$0xff] %v6282_v22  ;;  %7242 = vst [vmem:[#allocation33_spill] sm:$0xff] %v6287_v31  ;;  %v6293_v45 = vmul.f32 %v5865_v56, %v875_v23  ;;  %v1001_v11 = vmul.f32 %v5997_v37, %v6211_v36  ;;  %v1016_v55 = vsub.f32 %v984_v44, %v1000_v29 }
 0x131   :  { %v985_v8 = vmul.f32 %v6000_v42, %v7244_v46  ;;  %v6300_v31 = vmax.f32 %v862_v16, 0.0  ;;  %v6305_v22 = vmul.f32 %v5873_v58, %v7188_v18  ;;  %v6307_v10 = vsub.f32 %v4298_v5, %v4354_v17  ;;  %v4357_v46 = vpop.f32.mrb[28].mxu1 }
 0x132   :  { %7243 = vst [vmem:[#allocation34_spill] sm:$0xff] %v6293_v45  ;;  %v4301_v45 = vpop.f32.mrb[28].mxu0  ;;  %v845_v53 = vmax.f32 %v781_v2, 0.0  ;;  %v861_v27 = vsub.f32 0.0, %v781_v2  ;;  %v986_v0 = vmul.f32 %v6000_v42, %v841_v24  ;;  %1034 = vadd.xlane.f32.xlu0 %v1016_v55  ;;  %v1002_v17 = vmul.f32 %v5997_v37, %v873_v3  ;;  %v754_v5 = vpop.f32.mrb[29].mxu1 }
 0x133   :  { %7245 = vst [vmem:[#allocation35_spill] sm:$0xff] %v6305_v22  ;;  %v1017_v52 = vsub.f32 %v985_v8, %v1001_v11  ;;  %v609_v15 = vpop.f32.mrb[29].mxu0  ;;  %v6312_v36 = vmul.f32 %v5865_v56, %v6300_v31  ;;  %v7192_v16 = vmax.f32 %v6307_v10, 0.0  ;;  %v864_v18 = vsub.f32 0.0, %v6307_v10 }
 0x134   :  { %v877_v44 = vmax.f32 %v861_v27, 0.0  ;;  %v6318_v29 = vmul.f32 %v5873_v58, %v845_v53  ;;  %v783_v24 = vsub.f32 %v599_v41, %v744_v43  ;;  %v7248_v11 = vmax.f32 %v6208_v54, 0.0  ;;  %v4304_v27 = vpop.f32.mrb[30].mxu0  ;;  %v4360_v54 = vpop.f32.mrb[30].mxu1 }
 0x135   :  { %7246 = vst [vmem:[#allocation36_spill] sm:$0xff] %v6312_v36  ;;  %1036 = vadd.xlane.f32.xlu1 %v1017_v52  ;;  %v880_v8 = vmax.f32 %v864_v18, 0.0  ;;  %v6326_v55 = vmul.f32 %v5873_v58, %v7192_v16  ;;  %v1018_v22 = vsub.f32 %v986_v0, %v1002_v17  ;;  %v1003_v3 = vmul.f32 %v5997_v37, %v6238_v9  ;;  %v764_v17 = vpop.f32.mrb[31].mxu1 }
 0x136   :  { %7247 = vst [vmem:[#allocation37_spill] sm:$0xff] %v6318_v29  ;;  %v987_v2 = vmul.f32 %v6000_v42, %v7248_v11  ;;  %v6331_v36 = vmul.f32 %v5865_v56, %v877_v44  ;;  %v847_v52 = vmax.f32 %v783_v24, 0.0  ;;  %v863_v41 = vsub.f32 0.0, %v783_v24  ;;  %v619_v29 = vpop.f32.mrb[31].mxu0 }
 0x137   :  { %7249 = vst [vmem:[#allocation38_spill] sm:$0xff] %v6326_v55  ;;  %v786_v43 = vsub.f32 %v4301_v45, %v4357_v46  ;;  %v6334_v18 = vmul.f32 %v5865_v56, %v880_v8  ;;  %1038 = vadd.xlane.f32.xlu0 %v1018_v22  ;;  %v988_v16 = vmul.f32 %v6000_v42, %v843_v1  ;;  %v7252_v24 = vmax.f32 %v6247_v49, 0.0 }
 0x138   :  { %7250 = vst [vmem:[#allocation39_spill] sm:$0xff] %v6331_v36  ;;  %v1019_v11 = vsub.f32 %v987_v2, %v1003_v3  ;;  %v1004_v0 = vmul.f32 %v5997_v37, %v875_v23  ;;  %v879_v9 = vmax.f32 %v863_v41, 0.0  ;;  %v6339_v55 = vmul.f32 %v5873_v58, %v847_v52 }
 0x139   :  { %7251 = vst [vmem:[#allocation40_spill] sm:$0xff] %v6334_v18  ;;  %v850_v36 = vmax.f32 %v786_v43, 0.0  ;;  %v866_v32 = vsub.f32 0.0, %v786_v43  ;;  %v785_v46 = vsub.f32 %v609_v15, %v754_v5  ;;  %v989_v18 = vmul.f32 %v6000_v42, %v7252_v24 }
 0x13a   :  { %1040 = vadd.xlane.f32.xlu1 %v1019_v11  ;;  %v1020_v45 = vsub.f32 %v988_v16, %v1004_v0  ;;  %v1005_v22 = vmul.f32 %v5997_v37, %v6272_v50  ;;  %v6347_v1 = vmul.f32 %v5865_v56, %v879_v9  ;;  %v788_v3 = vsub.f32 %v4304_v27, %v4360_v54 }
 0x13b   :  { %v882_v23 = vmax.f32 %v866_v32, 0.0  ;;  %v6350_v2 = vmul.f32 %v5873_v58, %v850_v36  ;;  %v849_v41 = vmax.f32 %v785_v46, 0.0  ;;  %v865_v43 = vsub.f32 0.0, %v785_v46 }
 0x13c   :  { %7253 = vst [vmem:[#allocation41_spill] sm:$0xff] %v6347_v1  ;;  %1042 = vadd.xlane.f32.xlu0 %v1020_v45  ;;  %v1021_v16 = vsub.f32 %v989_v18, %v1005_v22  ;;  %v990_v15 = vmul.f32 %v6000_v42, %v845_v53  ;;  %v852_v5 = vmax.f32 %v788_v3, 0.0  ;;  %v868_v11 = vsub.f32 0.0, %v788_v3 }
 0x13d   :  { %7254 = vst [vmem:[#allocation42_spill] sm:$0xff] %v6350_v2  ;;  %v6354_v49 = vmul.f32 %v5865_v56, %v882_v23  ;;  %v1006_v50 = vmul.f32 %v5997_v37, %v877_v44  ;;  %v881_v0 = vmax.f32 %v865_v43, 0.0  ;;  %v6358_v32 = vmul.f32 %v5873_v58, %v849_v41 }
 0x13e   :  { %1044 = vadd.xlane.f32.xlu1 %v1021_v16  ;;  %v787_v24 = vsub.f32 %v619_v29, %v764_v17  ;;  %v7256_v27 = vmax.f32 %v6279_v7, 0.0  ;;  %v884_v18 = vmax.f32 %v868_v11, 0.0  ;;  %v6364_v53 = vmul.f32 %v5873_v58, %v852_v5 }
 0x13f   :  { %7255 = vst [vmem:[#allocation43_spill] sm:$0xff] %v6354_v49  ;;  %v1022_v45 = vsub.f32 %v990_v15, %v1006_v50  ;;  %v1007_v46 = vmul.f32 %v5997_v37, %v6300_v31  ;;  %v6369_v44 = vmul.f32 %v5865_v56, %v881_v0  ;;  %v992_v43 = vmul.f32 %v6000_v42, %v847_v52  ;;  %v3573_v52 = vld [vmem:[%s7132_s0 + $0x160] sm:$0xff] }
 0x140   :  { %v991_v54 = vmul.f32 %v6000_v42, %v7256_v27  ;;  %7257 = vst [vmem:[#allocation44_spill] sm:$0xff] %v6364_v53  ;;  %v851_v22 = vmax.f32 %v787_v24, 0.0  ;;  %v867_v3 = vsub.f32 0.0, %v787_v24  ;;  %v6373_v29 = vmul.f32 %v5865_v56, %v884_v18 }
 0x141   :  { %7258 = vst [vmem:[#allocation45_spill] sm:$0xff] %v6369_v44  ;;  %1046 = vadd.xlane.f32.xlu0 %v1022_v45  ;;  %v1008_v17 = vmul.f32 %v5997_v37, %v879_v9  ;;  %v7260_v16 = vmax.f32 %v6307_v10, 0.0  ;;  %v1009_v50 = vmul.f32 %v5997_v37, %v880_v8  ;;  %v994_v24 = vmul.f32 %v6000_v42, %v849_v41  ;;  %v3589_v8 = vld [vmem:[%s7133_s1 + $0x160] sm:$0xff]  ;;  %v3590_v41 = vld [vmem:[%s7133_s1 + $0x168] sm:$0xff] }
 0x142   :  { %7259 = vst [vmem:[#allocation46_spill] sm:$0xff] %v6373_v29  ;;  %v1023_v7 = vsub.f32 %v991_v54, %v1007_v46  ;;  %v883_v11 = vmax.f32 %v867_v3, 0.0  ;;  %v6380_v31 = vmul.f32 %v5873_v58, %v851_v22  ;;  %v1010_v9 = vmul.f32 %v5997_v37, %v881_v0  ;;  %v3574_v58 = vld [vmem:[%s7132_s0 + $0x168] sm:$0xff]  ;;  %v3575_v46 = vld [vmem:[%s7132_s0 + $0x170] sm:$0xff]  ;;  %v3576_v3 = vld [vmem:[%s7132_s0 + $0x178] sm:$0xff] }
 0x143   :  { %v993_v15 = vmul.f32 %v6000_v42, %v7260_v16  ;;  %v1024_v27 = vsub.f32 %v992_v43, %v1008_v17  ;;  %v995_v10 = vmul.f32 %v6000_v42, %v850_v36  ;;  %v1011_v54 = vmul.f32 %v5997_v37, %v882_v23  ;;  %v3592_v16 = vld [vmem:[%s7133_s1 + $0x178] sm:$0xff] }
 0x144   :  { %7261 = vst [vmem:[#allocation47_spill] sm:$0xff] %v6380_v31  ;;  %1048 = vadd.xlane.f32.xlu1 %v1023_v7  ;;  %v6400_v45 = vmul.f32 %v5865_v56, %v883_v11  ;;  %v996_v36 = vmul.f32 %v6000_v42, %v851_v22  ;;  %v1012_v23 = vmul.f32 %v5997_v37, %v883_v11  ;;  %v3591_v22 = vld [vmem:[%s7133_s1 + $0x170] sm:$0xff] }
 0x145   :  { %v1025_v0 = vsub.f32 %v993_v15, %v1009_v50  ;;  %1050 = vadd.xlane.f32.xlu0 %v1024_v27  ;;  %v1026_v43 = vsub.f32 %v994_v24, %v1010_v9  ;;  %v1027_v7 = vsub.f32 %v995_v10, %v1011_v54  ;;  %v997_v17 = vmul.f32 %v6000_v42, %v852_v5  ;;  %v7285_v9 = vld [vmem:[#allocation2_spill] sm:$0xff] }
 0x146   :  { %7262 = vst [vmem:[#allocation48_spill] sm:$0xff] %v6400_v45  ;;  %v1013_v56 = vmul.f32 %v5997_v37, %v884_v18  ;;  %v1028_v15 = vsub.f32 %v996_v36, %v1012_v23  ;;  %v1102_v11 = vsub.f32 %v6007_v39, %v6015_v63  ;;  %v6420_v50 = vpack.c.bf16 %v3574_v58, %v3573_v52  ;;  %v7263_v58 = vld [vmem:[#allocation14_spill] sm:$0xff]  ;;  %v7266_v23 = vld [vmem:[#allocation17_spill] sm:$0xff] }
 0x147   :  { %v6422_v24 = vpack.c.bf16 %v3590_v41, %v3589_v8  ;;  %v1103_v37 = vsub.f32 %v6003_v48, %v6011_v59  ;;  %v1104_v5 = vsub.f32 %v6022_v20, %v6029_v30  ;;  %v6428_v18 = vpack.c.bf16 %v3576_v3, %v3575_v46  ;;  %v7264_v41 = vld [vmem:[#allocation18_spill] sm:$0xff]  ;;  %v7267_v46 = vld [vmem:[#allocation15_spill] sm:$0xff]  ;;  %v7287_v52 = vld [vmem:[#allocation37_spill] sm:$0xff] }
 0x148   :  { %1052 = vadd.xlane.f32.xlu1 %v1025_v0  ;;  %v1029_v42 = vsub.f32 %v997_v17, %v1013_v56  ;;  %5186 = vmatprep.subr.bf16.mxu0 %v6420_v50  ;;  %v6432_v27 = vpack.c.bf16 %v3592_v16, %v3591_v22  ;;  %v7265_v0 = vld [vmem:[#allocation16_spill] sm:$0xff]  ;;  %v7278_v3 = vld [vmem:[#allocation3_spill] sm:$0xff]  ;;  %v7281_v16 = vld [vmem:[#allocation34_spill] sm:$0xff]  ;;  %v7292_v30 = vlaneseq  ;;  %v5546_v59 = vmov 0.0  }
 0x149   :  { %5218 = vmatprep.subr.bf16.mxu1 %v6422_v24  ;;  %1054 = vadd.xlane.f32.xlu0 %v1026_v43  ;;  %v7269_v17 = vld [vmem:[#allocation20_spill] sm:$0xff]  ;;  %v7280_v48 = vld [vmem:[#allocation27_spill] sm:$0xff]  ;;  %v7283_v56 = vld [vmem:[#allocation33_spill] sm:$0xff] }
 0x14a   :  { %5188 = vmatpush3.bf16.msra.mxu0 %v6420_v50  ;;  %5220 = vmatpush3.bf16.msra.mxu1 %v6422_v24  ;;  %v7284_v22 = vld [vmem:[#allocation31_spill] sm:$0xff]  ;;  %v7291_v63 = vld [vmem:[#allocation38_spill] sm:$0xff]  ;;  %v890_v36 = vand.u32 127, %v7292_v30 }
 0x14b   :  { %5190 = vmatprep.subr.bf16.mxu0 %v6428_v18  ;;  %5222 = vmatprep.subr.bf16.mxu1 %v6432_v27  ;;  %v7289_v20 = vld [vmem:[#allocation35_spill] sm:$0xff] }
 0x14c   :  { %1056 = vadd.xlane.f32.xlu1 %v1027_v7  ;;  %vm891_vm0 = vcmp.eq.s32.totalorder %v890_v36, 48 }
 0x14d   :  { %1058 = vadd.xlane.f32.xlu0 %v1028_v15  ;;  %v7282_v15 = vld [vmem:[#allocation32_spill] sm:$0xff]  ;;  %v6501_v10 = vsel %vm891_vm0, 1.0, %v5546_v59 }
 0x14e   :  { %5192 = vmatpush3.bf16.msra.mxu0 %v6428_v18  ;;  %5224 = vmatpush3.bf16.msra.mxu1 %v6432_v27 }
 0x14f   :  { %5226 = vmatprep.subr.bf16.mxu0 %v7278_v3  ;;  %5258 = vmatprep.subr.bf16.mxu1 %v7285_v9 }
 0x150   :  { %1060 = vadd.xlane.f32.xlu1 %v1029_v42 }
 0x191   :  { %v951_v1 = vpop.xlane.xlu0 %950 }
 0x192   :  { %v1118_v7 = vmul.f32 %v6501_v10, %v951_v1 }
 0x194   :  { %v1134_v54 = vadd.f32 %v1118_v7, %v1102_v11 }
 0x195   :  { %v953_v39 = vpop.xlane.xlu0 %952  ;;  %v955_v44 = vpop.xlane.xlu1 %954 }
 0x196   :  { %v1119_v42 = vmul.f32 %v6501_v10, %v953_v39  ;;  %v1120_v49 = vmul.f32 %v6501_v10, %v955_v44  ;;  %v1230_v43 = vmax.f32 %v1134_v54, 0.0  ;;  %v1246_v45 = vsub.f32 0.0, %v1134_v54 }
 0x197   :  { %v7293_v39 = vsub.f32 %v6019_v13, %v6025_v25 }
 0x198   :  { %v1135_v31 = vadd.f32 %v1119_v42, %v1103_v37  ;;  %v1136_v8 = vadd.f32 %v1120_v49, %v1104_v5  ;;  %4393 = vmatprep.mubr.f32.mxu0 %v1230_v43  ;;  %v1262_v30 = vmax.f32 %v1246_v45, 0.0 }
 0x199   :  { %v957_v36 = vpop.xlane.xlu1 %956 }
 0x19a   :  { %v1231_v29 = vmax.f32 %v1135_v31, 0.0  ;;  %v1247_v59 = vsub.f32 0.0, %v1135_v31  ;;  %v1121_v53 = vmul.f32 %v6501_v10, %v957_v36  ;;  %4449 = vmatprep.mubr.f32.mxu1 %v1262_v30  ;;  %v1232_v1 = vmax.f32 %v1136_v8, 0.0  ;;  %v7298_v36 = vld [vmem:[#allocation7_spill] sm:$0xff] }
 0x19b   :  { %v959_v11 = vpop.xlane.xlu0 %958  ;;  %v1248_v7 = vsub.f32 0.0, %v1136_v8  ;;  %v7294_v31 = vsub.f32 %v6039_v33, %v6048_v61  ;;  %v7295_v8 = vld [vmem:[#allocation5_spill] sm:$0xff]  ;;  %v7297_v33 = vsub.f32 %v6033_v40, %v6042_v51  ;;  %v7300_v51 = vld [vmem:[#allocation6_spill] sm:$0xff] }
 0x19c   :  { %v1263_v2 = vmax.f32 %v1247_v59, 0.0  ;;  %v1137_v44 = vadd.f32 %v1121_v53, %v7293_v39  ;;  %v1122_v54 = vmul.f32 %v6501_v10, %v959_v11  ;;  %4394 = vmatmul.mubr.f32.vlgmr.msra.gmra.mrb[32].mxu0 %v1231_v29  ;;  %v7296_v53 = vld [vmem:[#allocation4_spill] sm:$0xff] }
 0x19d   :  { %4396 = vmatprep.mubr.f32.mxu0 %v1232_v1  ;;  %5228 = vmatpush3.bf16.msra.mxu0 %v7278_v3  ;;  %v1264_v49 = vmax.f32 %v1248_v7, 0.0  ;;  %v7299_v1 = vsub.f32 %v6057_v19, %v6067_v34  ;;  %v7302_v34 = vld [vmem:[#allocation9_spill] sm:$0xff] }
 0x19e   :  { %v1138_v45 = vadd.f32 %v1122_v54, %v7294_v31  ;;  %v961_v37 = vpop.xlane.xlu1 %960  ;;  %4450 = vmatmul.mubr.f32.vlgmr.msra.gmra.mrb[32].mxu1 %v1263_v2  ;;  %v1233_v5 = vmax.f32 %v1137_v44, 0.0  ;;  %5230 = vmatprep.subr.bf16.mxu0 %v7295_v8  ;;  %v1249_v43 = vsub.f32 0.0, %v1137_v44  ;;  %v7301_v31 = vsub.f32 %v6052_v6, %v6061_v14 }
 0x19f   :  { %v1123_v13 = vmul.f32 %v6501_v10, %v961_v37  ;;  %5260 = vmatpush3.bf16.msra.mxu1 %v7285_v9  ;;  %4452 = vmatprep.mubr.f32.mxu1 %v1264_v49 }
 0x1a0   :  { %4397 = vmatmul.mubr.f32.gmra.mrb[34].mxu0 %v1233_v5  ;;  %v1234_v25 = vmax.f32 %v1138_v45, 0.0  ;;  %5262 = vmatprep.subr.bf16.mxu1 %v7296_v53  ;;  %v1265_v29 = vmax.f32 %v1249_v43, 0.0  ;;  %v1250_v3 = vsub.f32 0.0, %v1138_v45 }
 0x1a1   :  { %v1139_v61 = vadd.f32 %v1123_v13, %v7297_v33  ;;  %v963_v2 = vpop.xlane.xlu0 %962  ;;  %5232 = vmatpush3.bf16.msra.mxu0 %v7295_v8  ;;  %v7303_v8 = vsub.f32 %v6078_v38, %v6087_v21  ;;  %v7306_v21 = vld [vmem:[#allocation11_spill] sm:$0xff] }
 0x1a2   :  { %v1124_v42 = vmul.f32 %v6501_v10, %v963_v2  ;;  %4399 = vmatprep.mubr.f32.mxu0 %v1234_v25  ;;  %4453 = vmatmul.mubr.f32.gmra.mrb[34].mxu1 %v1265_v29  ;;  %v1266_v30 = vmax.f32 %v1250_v3, 0.0  ;;  %v7305_v29 = vsub.f32 %v6072_v47, %v6082_v62 }
 0x1a3   :  { %5264 = vmatpush3.bf16.msra.mxu1 %v7296_v53  ;;  %v1235_v9 = vmax.f32 %v1139_v61, 0.0  ;;  %5234 = vmatprep.subr.bf16.mxu0 %v7298_v36  ;;  %v1251_v59 = vsub.f32 0.0, %v1139_v61  ;;  %v7304_v53 = vld [vmem:[#allocation8_spill] sm:$0xff] }
 0x1a4   :  { %v1140_v11 = vadd.f32 %v1124_v42, %v7299_v1  ;;  %v965_v40 = vpop.xlane.xlu1 %964  ;;  %4455 = vmatprep.mubr.f32.mxu1 %v1266_v30  ;;  %5266 = vmatprep.subr.bf16.mxu1 %v7300_v51  ;;  %v7307_v42 = vsub.f32 %v6101_v26, %v6111_v28  ;;  %v7308_v1 = vld [vmem:[#allocation10_spill] sm:$0xff]  ;;  %v7310_v26 = vsub.f32 %v6095_v60, %v6105_v4  ;;  %v7312_v60 = vld [vmem:[#allocation12_spill] sm:$0xff] }
 0x1a5   :  { %v1125_v7 = vmul.f32 %v6501_v10, %v965_v40  ;;  %4400 = vmatmul.mubr.f32.gmra.mrb[36].mxu0 %v1235_v9  ;;  %v1267_v39 = vmax.f32 %v1251_v59, 0.0 }
 0x1a6   :  { %v967_v44 = vpop.xlane.xlu0 %966  ;;  %v1236_v54 = vmax.f32 %v1140_v11, 0.0  ;;  %5236 = vmatpush3.bf16.msra.mxu0 %v7298_v36  ;;  %v1252_v49 = vsub.f32 0.0, %v1140_v11 }
 0x1a7   :  { %v1141_v45 = vadd.f32 %v1125_v7, %v7301_v31  ;;  %v1126_v19 = vmul.f32 %v6501_v10, %v967_v44  ;;  %4456 = vmatmul.mubr.f32.gmra.mrb[36].mxu1 %v1267_v39  ;;  %5238 = vmatprep.subr.bf16.mxu0 %v7302_v34  ;;  %v7309_v39 = vld [vmem:[#allocation13_spill] sm:$0xff]  ;;  %v7311_v31 = vsub.f32 %v6123_v57, %v6138_v12 }
 0x1a8   :  { %4402 = vmatprep.mubr.f32.mxu0 %v1236_v54  ;;  %5268 = vmatpush3.bf16.msra.mxu1 %v7300_v51  ;;  %v1268_v5 = vmax.f32 %v1252_v49, 0.0 }
 0x1a9   :  { %v1142_v43 = vadd.f32 %v1126_v19, %v7303_v8  ;;  %v1237_v25 = vmax.f32 %v1141_v45, 0.0  ;;  %5270 = vmatprep.subr.bf16.mxu1 %v7304_v53  ;;  %v1253_v6 = vsub.f32 0.0, %v1141_v45 }
 0x1aa   :  { %v969_v37 = vpop.xlane.xlu1 %968  ;;  %v971_v14 = vpop.xlane.xlu0 %970  ;;  %4458 = vmatprep.mubr.f32.mxu1 %v1268_v5  ;;  %5240 = vmatpush3.bf16.msra.mxu0 %v7302_v34 }
 0x1ab   :  { %v1127_v13 = vmul.f32 %v6501_v10, %v969_v37  ;;  %v1128_v33 = vmul.f32 %v6501_v10, %v971_v14  ;;  %4403 = vmatmul.mubr.f32.gmra.mrb[38].mxu0 %v1237_v25  ;;  %v1238_v61 = vmax.f32 %v1142_v43, 0.0  ;;  %v1269_v38 = vmax.f32 %v1253_v6, 0.0  ;;  %5242 = vmatprep.subr.bf16.mxu0 %v7306_v21  ;;  %v3593_v25 = vld [vmem:[%s7132_s0 + $0x80] sm:$0xff] }
 0x1ac   :  { %5272 = vmatpush3.bf16.msra.mxu1 %v7304_v53  ;;  %v1254_v2 = vsub.f32 0.0, %v1142_v43  ;;  %v7313_v37 = vsub.f32 %v7263_v58, %v6131_v35  ;;  %v3594_v35 = vld [vmem:[%s7132_s0 + $0x88] sm:$0xff] }
 0x1ad   :  { %v1143_v3 = vadd.f32 %v1127_v13, %v7305_v29  ;;  %v1144_v30 = vadd.f32 %v1128_v33, %v7307_v42  ;;  %4405 = vmatprep.mubr.f32.mxu0 %v1238_v61  ;;  %4459 = vmatmul.mubr.f32.gmra.mrb[38].mxu1 %v1269_v38  ;;  %v7314_v29 = vsub.f32 %v7265_v0, %v7264_v41 }
 0x1ae   :  { %v1270_v59 = vmax.f32 %v1254_v2, 0.0  ;;  %5244 = vmatpush3.bf16.msra.mxu0 %v7306_v21  ;;  %5274 = vmatprep.subr.bf16.mxu1 %v7308_v1  ;;  %v6586_v38 = vpack.c.bf16 %v3594_v35, %v3593_v25  ;;  %v3609_v21 = vld [vmem:[%s7133_s1 + $0x80] sm:$0xff]  ;;  %v3610_v2 = vld [vmem:[%s7133_s1 + $0x88] sm:$0xff]  ;;  %v7315_v41 = vsub.f32 %v7267_v46, %v7266_v23 }
 0x1af   :  { %v973_v9 = vpop.xlane.xlu1 %972  ;;  %v1239_v36 = vmax.f32 %v1143_v3, 0.0  ;;  %v1255_v47 = vsub.f32 0.0, %v1143_v3  ;;  %v1240_v40 = vmax.f32 %v1144_v30, 0.0  ;;  %v1256_v7 = vsub.f32 0.0, %v1144_v30  ;;  %5246 = vmatprep.subr.bf16.mxu0 %v7309_v39  ;;  %v7324_v35 = vld [vmem:[#allocation23_spill] sm:$0xff] }
 0x1b0   :  { %v1129_v62 = vmul.f32 %v6501_v10, %v973_v9  ;;  %v975_v11 = vpop.xlane.xlu0 %974  ;;  %4461 = vmatprep.mubr.f32.mxu1 %v1270_v59  ;;  %5276 = vmatpush3.bf16.msra.mxu1 %v7308_v1  ;;  %v6602_v46 = vpack.c.bf16 %v3610_v2, %v3609_v21  ;;  %v7316_v59 = vld [vmem:[#allocation22_spill] sm:$0xff]  ;;  %v3614_v2 = vld [vmem:[%s7133_s1 + $0xa8] sm:$0xff] }
 0x1b1   :  { %4406 = vmatmul.mubr.f32.gmra.mrb[40].mxu0 %v1239_v36  ;;  %v1271_v51 = vmax.f32 %v1255_v47, 0.0  ;;  %v1130_v44 = vmul.f32 %v6501_v10, %v975_v11  ;;  %v1272_v49 = vmax.f32 %v1256_v7, 0.0  ;;  %5278 = vmatprep.subr.bf16.mxu1 %v7312_v60  ;;  %v7318_v7 = vld [vmem:[#allocation19_spill] sm:$0xff]  ;;  %v3613_v21 = vld [vmem:[%s7133_s1 + $0xa0] sm:$0xff] }
 0x1b2   :  { %v1145_v28 = vadd.f32 %v1129_v62, %v7310_v26  ;;  %4408 = vmatprep.mubr.f32.mxu0 %v1240_v40  ;;  %5248 = vmatpush3.bf16.msra.mxu0 %v7309_v39  ;;  %v3595_v40 = vld [vmem:[%s7132_s0 + $0x90] sm:$0xff]  ;;  %v7319_v39 = vld [vmem:[#allocation21_spill] sm:$0xff] }
 0x1b3   :  { %v977_v54 = vpop.xlane.xlu1 %976  ;;  %4462 = vmatmul.mubr.f32.gmra.mrb[40].mxu1 %v1271_v51  ;;  %v1146_v45 = vadd.f32 %v1130_v44, %v7311_v31  ;;  %5250 = vmatprep.subr.bf16.mxu0 %v6422_v24  ;;  %v3596_v51 = vld [vmem:[%s7132_s0 + $0x98] sm:$0xff]  ;;  %v7320_v26 = vsub.f32 %v7318_v7, %v7319_v39 }
 0x1b4   :  { %v1131_v19 = vmul.f32 %v6501_v10, %v977_v54  ;;  %v1241_v34 = vmax.f32 %v1145_v28, 0.0  ;;  %v1257_v4 = vsub.f32 0.0, %v1145_v28  ;;  %4464 = vmatprep.mubr.f32.mxu1 %v1272_v49  ;;  %5280 = vmatpush3.bf16.msra.mxu1 %v7312_v60 }
 0x1b5   :  { %v979_v8 = vpop.xlane.xlu0 %978  ;;  %v1242_v43 = vmax.f32 %v1146_v45, 0.0  ;;  %v1258_v12 = vsub.f32 0.0, %v1146_v45  ;;  %5282 = vmatprep.subr.bf16.mxu1 %v6420_v50  ;;  %v6621_v45 = vpack.c.bf16 %v3596_v51, %v3595_v40 }
 0x1b6   :  { %v1147_v5 = vadd.f32 %v1131_v19, %v7313_v37  ;;  %4409 = vmatmul.mubr.f32.gmra.mrb[42].mxu0 %v1241_v34  ;;  %v1273_v57 = vmax.f32 %v1257_v4, 0.0  ;;  %v1132_v13 = vmul.f32 %v6501_v10, %v979_v8  ;;  %v3611_v19 = vld [vmem:[%s7133_s1 + $0x90] sm:$0xff]  ;;  %v3612_v34 = vld [vmem:[%s7133_s1 + $0x98] sm:$0xff]  ;;  %v7322_v8 = vld [vmem:[#allocation26_spill] sm:$0xff] }
 0x1b7   :  { %4411 = vmatprep.mubr.f32.mxu0 %v1242_v43  ;;  %v981_v58 = vpop.xlane.xlu1 %980  ;;  %v1274_v53 = vmax.f32 %v1258_v12, 0.0  ;;  %5252 = vmatpush3.bf16.msra.mxu0 %v6422_v24  ;;  %v3597_v12 = vld [vmem:[%s7132_s0 + $0xa0] sm:$0xff] }
 0x1b8   :  { %4465 = vmatmul.mubr.f32.gmra.mrb[42].mxu1 %v1273_v57  ;;  %v1243_v6 = vmax.f32 %v1147_v5, 0.0  ;;  %v1259_v14 = vsub.f32 0.0, %v1147_v5  ;;  %v1148_v3 = vadd.f32 %v1132_v13, %v7314_v29  ;;  %v1133_v33 = vmul.f32 %v6501_v10, %v981_v58  ;;  %5254 = vmatprep.subr.bf16.mxu0 %v6432_v27  ;;  %v7321_v5 = vld [vmem:[#allocation24_spill] sm:$0xff]  ;;  %v3598_v13 = vld [vmem:[%s7132_s0 + $0xa8] sm:$0xff]  ;;  %v7325_v58 = vld [vmem:[#allocation25_spill] sm:$0xff] }
 0x1b9   :  { %4467 = vmatprep.mubr.f32.mxu1 %v1274_v53  ;;  %5284 = vmatpush3.bf16.msra.mxu1 %v6420_v50  ;;  %v7317_v50 = vsub.f32 %v7269_v17, %v7316_v59  ;;  %v7323_v43 = vsub.f32 %v7321_v5, %v7322_v8  ;;  %v7326_v53 = vsub.f32 %v7324_v35, %v7325_v58 }
 0x1ba   :  { %4412 = vmatmul.mubr.f32.gmra.mrb[44].mxu0 %v1243_v6  ;;  %v1275_v61 = vmax.f32 %v1259_v14, 0.0  ;;  %v1149_v0 = vadd.f32 %v1133_v33, %v7315_v41  ;;  %v1031_v42 = vpop.xlane.xlu0 %1030  ;;  %v1244_v30 = vmax.f32 %v1148_v3, 0.0  ;;  %v1260_v24 = vsub.f32 0.0, %v1148_v3  ;;  %5286 = vmatprep.subr.bf16.mxu1 %v6428_v18 }
 0x1bb   :  { %v1198_v9 = vmul.f32 %v6501_v10, %v1031_v42  ;;  %5256 = vmatpush3.bf16.msra.mxu0 %v6432_v27  ;;  %v6642_v29 = vpack.c.bf16 %v3612_v34, %v3611_v19  ;;  %v3615_v19 = vld [vmem:[%s7133_s1 + $0xb0] sm:$0xff]  ;;  %v3616_v34 = vld [vmem:[%s7133_s1 + $0xb8] sm:$0xff] }
 0x1bc   :  { %4468 = vmatmul.mubr.f32.gmra.mrb[44].mxu1 %v1275_v61  ;;  %v1033_v36 = vpop.xlane.xlu1 %1032  ;;  %4414 = vmatprep.mubr.f32.mxu0 %v1244_v30  ;;  %v1276_v47 = vmax.f32 %v1260_v24, 0.0  ;;  %v1245_v62 = vmax.f32 %v1149_v0, 0.0  ;;  %v1261_v23 = vsub.f32 0.0, %v1149_v0  ;;  %v6653_v30 = vpack.c.bf16 %v3598_v13, %v3597_v12  ;;  %v7327_v24 = vld [vmem:[#allocation29_spill] sm:$0xff] }
 0x1bd   :  { %v1214_v1 = vadd.f32 %v1198_v9, %v7317_v50  ;;  %v1199_v11 = vmul.f32 %v6501_v10, %v1033_v36  ;;  %5290 = vmatprep.subr.bf16.mxu0 %v6586_v38  ;;  %5288 = vmatpush3.bf16.msra.mxu1 %v6428_v18  ;;  %v7328_v9 = vld [vmem:[#allocation30_spill] sm:$0xff]  ;;  %v6700_v13 = vpack.c.bf16 %v3616_v34, %v3615_v19 }
 0x1be   :  { %4470 = vmatprep.mubr.f32.mxu1 %v1276_v47  ;;  %4415 = vmatmul.mubr.f32.gmra.mrb[46].mxu0 %v1245_v62  ;;  %v1277_v27 = vmax.f32 %v1261_v23, 0.0  ;;  %v7329_v36 = vsub.f32 %v7327_v24, %v7328_v9 }
 0x1bf   :  { %v1215_v17 = vadd.f32 %v1199_v11, %v7320_v26  ;;  %v1035_v28 = vpop.xlane.xlu0 %1034  ;;  %v1278_v44 = vmax.f32 %v1214_v1, 0.0  ;;  %v1294_v54 = vsub.f32 0.0, %v1214_v1  ;;  %5322 = vmatprep.subr.bf16.mxu1 %v6602_v46  ;;  %v6661_v1 = vpack.c.bf16 %v3614_v2, %v3613_v21  ;;  %v7330_v11 = vld [vmem:[#allocation28_spill] sm:$0xff]  ;;  %v3604_v2 = vld [vmem:[%s7132_s0 + $0xd8] sm:$0xff] }
 0x1c0   :  { %v1200_v49 = vmul.f32 %v6501_v10, %v1035_v28  ;;  %4471 = vmatmul.mubr.f32.gmra.mrb[46].mxu1 %v1277_v27  ;;  %v7331_v40 = vsub.f32 %v7280_v48, %v7330_v11  ;;  %v3599_v26 = vld [vmem:[%s7132_s0 + $0xb0] sm:$0xff]  ;;  %v7332_v48 = vsub.f32 %v7282_v15, %v7281_v16  ;;  %v3601_v15 = vld [vmem:[%s7132_s0 + $0xc0] sm:$0xff]  ;;  %v7338_v11 = vld [vmem:[#allocation41_spill] sm:$0xff] }
 0x1c1   :  { %v1279_v60 = vmax.f32 %v1215_v17, 0.0  ;;  %v1295_v4 = vsub.f32 0.0, %v1215_v17  ;;  %4505 = vmatprep.mubr.f32.mxu0 %v1278_v44  ;;  %v1310_v37 = vmax.f32 %v1294_v54, 0.0  ;;  %v3600_v17 = vld [vmem:[%s7132_s0 + $0xb8] sm:$0xff]  ;;  %v3603_v21 = vld [vmem:[%s7132_s0 + $0xd0] sm:$0xff] }
 0x1c2   :  { %v1037_v31 = vpop.xlane.xlu1 %1036  ;;  %v1216_v57 = vadd.f32 %v1200_v49, %v7323_v43  ;;  %v6687_v16 = vpack.c.bf16 %v3600_v17, %v3599_v26 }
 0x1c3   :  { %v1201_v18 = vmul.f32 %v6501_v10, %v1037_v31  ;;  %v1311_v25 = vmax.f32 %v1295_v4, 0.0  ;;  %4561 = vmatprep.mubr.f32.mxu1 %v1310_v37  ;;  %4506 = vmatmul.mubr.f32.vlgmr.msra.gmra.mrb[48].mxu0 %v1279_v60  ;;  %v3602_v4 = vld [vmem:[%s7132_s0 + $0xc8] sm:$0xff] }
 0x1c4   :  { %v1039_v14 = vpop.xlane.xlu0 %1038  ;;  %v1280_v33 = vmax.f32 %v1216_v57, 0.0  ;;  %v1296_v61 = vsub.f32 0.0, %v1216_v57  ;;  %5292 = vmatpush3.bf16.msra.mxu0 %v6586_v38 }
 0x1c5   :  { %v1217_v6 = vadd.f32 %v1201_v18, %v7326_v53  ;;  %v1202_v3 = vmul.f32 %v6501_v10, %v1039_v14  ;;  %4562 = vmatmul.mubr.f32.vlgmr.msra.gmra.mrb[48].mxu1 %v1311_v25  ;;  %5294 = vmatprep.subr.bf16.mxu0 %v6621_v45  ;;  %v7333_v18 = vsub.f32 %v7284_v22, %v7283_v56  ;;  %v3617_v25 = vld [vmem:[%s7133_s1 + $0xc0] sm:$0xff]  ;;  %v3618_v56 = vld [vmem:[%s7133_s1 + $0xc8] sm:$0xff] }
 0x1c6   :  { %4508 = vmatprep.mubr.f32.mxu0 %v1280_v33  ;;  %v1312_v23 = vmax.f32 %v1296_v61, 0.0  ;;  %5324 = vmatpush3.bf16.msra.mxu1 %v6602_v46  ;;  %v7334_v14 = vld [vmem:[#allocation39_spill] sm:$0xff] }
 0x1c7   :  { %v1041_v41 = vpop.xlane.xlu1 %1040  ;;  %v1281_v0 = vmax.f32 %v1217_v6, 0.0  ;;  %v1297_v42 = vsub.f32 0.0, %v1217_v6  ;;  %v1218_v47 = vadd.f32 %v1202_v3, %v7329_v36  ;;  %5326 = vmatprep.subr.bf16.mxu1 %v6642_v29  ;;  %v6709_v6 = vpack.c.bf16 %v3602_v4, %v3601_v15 }
 0x1c8   :  { %v1203_v62 = vmul.f32 %v6501_v10, %v1041_v41  ;;  %4564 = vmatprep.mubr.f32.mxu1 %v1312_v23  ;;  %5296 = vmatpush3.bf16.msra.mxu0 %v6621_v45  ;;  %v7335_v3 = vsub.f32 %v7287_v52, %v7334_v14  ;;  %v7336_v52 = vld [vmem:[#allocation36_spill] sm:$0xff] }
 0x1c9   :  { %v1043_v59 = vpop.xlane.xlu0 %1042  ;;  %4509 = vmatmul.mubr.f32.gmra.mrb[50].mxu0 %v1281_v0  ;;  %v1313_v50 = vmax.f32 %v1297_v42, 0.0  ;;  %v1282_v7 = vmax.f32 %v1218_v47, 0.0  ;;  %v1298_v39 = vsub.f32 0.0, %v1218_v47  ;;  %5298 = vmatprep.subr.bf16.mxu0 %v6653_v30  ;;  %v6722_v42 = vpack.c.bf16 %v3618_v56, %v3617_v25  ;;  %v3619_v23 = vld [vmem:[%s7133_s1 + $0xd0] sm:$0xff] }
 0x1ca   :  { %v1219_v51 = vadd.f32 %v1203_v62, %v7331_v40  ;;  %v1204_v27 = vmul.f32 %v6501_v10, %v1043_v59  ;;  %5328 = vmatpush3.bf16.msra.mxu1 %v6642_v29  ;;  %v7337_v24 = vsub.f32 %v7289_v20, %v7336_v52  ;;  %v3620_v59 = vld [vmem:[%s7133_s1 + $0xd8] sm:$0xff]  ;;  %v6738_v20 = vpack.c.bf16 %v3604_v2, %v3603_v21  ;;  %v7348_v14 = vld [vmem:[#allocation48_spill] sm:$0xff]  ;;  %v7351_v52 = vld [vmem:[#allocation46_spill] sm:$0xff] }
 0x1cb   :  { %v1045_v28 = vpop.xlane.xlu1 %1044  ;;  %4565 = vmatmul.mubr.f32.gmra.mrb[50].mxu1 %v1313_v50  ;;  %4511 = vmatprep.mubr.f32.mxu0 %v1282_v7  ;;  %v1314_v49 = vmax.f32 %v1298_v39, 0.0  ;;  %v7339_v40 = vsub.f32 %v6339_v55, %v7338_v11  ;;  %v3605_v11 = vld [vmem:[%s7132_s0 + $0xe0] sm:$0xff] }
 0x1cc   :  { %v1220_v44 = vadd.f32 %v1204_v27, %v7332_v48  ;;  %v1205_v54 = vmul.f32 %v6501_v10, %v1045_v28  ;;  %v1283_v31 = vmax.f32 %v1219_v51, 0.0  ;;  %v1299_v60 = vsub.f32 0.0, %v1219_v51  ;;  %5330 = vmatprep.subr.bf16.mxu1 %v6661_v1  ;;  %5300 = vmatpush3.bf16.msra.mxu0 %v6653_v30  ;;  %v7340_v48 = vld [vmem:[#allocation40_spill] sm:$0xff] }
 0x1cd   :  { %4567 = vmatprep.mubr.f32.mxu1 %v1314_v49  ;;  %5302 = vmatprep.subr.bf16.mxu0 %v6687_v16  ;;  %v6745_v28 = vpack.c.bf16 %v3620_v59, %v3619_v23 }
 0x1ce   :  { %v1221_v37 = vadd.f32 %v1205_v54, %v7333_v18  ;;  %v1047_v5 = vpop.xlane.xlu0 %1046  ;;  %4512 = vmatmul.mubr.f32.gmra.mrb[52].mxu0 %v1283_v31  ;;  %v1284_v8 = vmax.f32 %v1220_v44, 0.0  ;;  %v1300_v43 = vsub.f32 0.0, %v1220_v44  ;;  %v1315_v12 = vmax.f32 %v1299_v60, 0.0  ;;  %5332 = vmatpush3.bf16.msra.mxu1 %v6661_v1  ;;  %v7342_v60 = vld [vmem:[#allocation45_spill] sm:$0xff] }
 0x1cf   :  { %v1206_v57 = vmul.f32 %v6501_v10, %v1047_v5  ;;  %5334 = vmatprep.subr.bf16.mxu1 %v6700_v13  ;;  %v7341_v44 = vsub.f32 %v7291_v63, %v7340_v48  ;;  %v7343_v15 = vsub.f32 %v6358_v32, %v7342_v60 }
 0x1d0   :  { %4514 = vmatprep.mubr.f32.mxu0 %v1284_v8  ;;  %v1316_v35 = vmax.f32 %v1300_v43, 0.0  ;;  %v1285_v58 = vmax.f32 %v1221_v37, 0.0  ;;  %v1301_v53 = vsub.f32 0.0, %v1221_v37  ;;  %4568 = vmatmul.mubr.f32.gmra.mrb[52].mxu1 %v1315_v12  ;;  %v7344_v43 = vld [vmem:[#allocation42_spill] sm:$0xff] }
 0x1d1   :  { %v1049_v22 = vpop.xlane.xlu1 %1048  ;;  %v1222_v33 = vadd.f32 %v1206_v57, %v7335_v3  ;;  %5304 = vmatpush3.bf16.msra.mxu0 %v6687_v16  ;;  %v7345_v57 = vld [vmem:[#allocation43_spill] sm:$0xff] }
 0x1d2   :  { %v1207_v61 = vmul.f32 %v6501_v10, %v1049_v22  ;;  %v1051_v41 = vpop.xlane.xlu0 %1050  ;;  %4570 = vmatprep.mubr.f32.mxu1 %v1316_v35  ;;  %4515 = vmatmul.mubr.f32.gmra.mrb[54].mxu0 %v1285_v58  ;;  %v1317_v0 = vmax.f32 %v1301_v53, 0.0  ;;  %v7346_v12 = vsub.f32 %v7344_v43, %v7345_v57  ;;  %v7347_v53 = vld [vmem:[#allocation47_spill] sm:$0xff] }
 0x1d3   :  { %v1208_v36 = vmul.f32 %v6501_v10, %v1051_v41  ;;  %v1286_v47 = vmax.f32 %v1222_v33, 0.0  ;;  %v1302_v62 = vsub.f32 0.0, %v1222_v33  ;;  %5336 = vmatpush3.bf16.msra.mxu1 %v6700_v13  ;;  %5306 = vmatprep.subr.bf16.mxu0 %v6709_v6  ;;  %v7349_v3 = vsub.f32 %v7347_v53, %v7348_v14 }
 0x1d4   :  { %v1223_v9 = vadd.f32 %v1207_v61, %v7337_v24  ;;  %4571 = vmatmul.mubr.f32.gmra.mrb[54].mxu1 %v1317_v0  ;;  %5338 = vmatprep.subr.bf16.mxu1 %v6722_v42  ;;  %v7350_v0 = vld [vmem:[#allocation44_spill] sm:$0xff] }
 0x1d5   :  { %v1053_v50 = vpop.xlane.xlu1 %1052  ;;  %v1224_v51 = vadd.f32 %v1208_v36, %v7339_v40  ;;  %4517 = vmatprep.mubr.f32.mxu0 %v1286_v47  ;;  %v1318_v7 = vmax.f32 %v1302_v62, 0.0  ;;  %5308 = vmatpush3.bf16.msra.mxu0 %v6709_v6  ;;  %v7352_v24 = vsub.f32 %v7350_v0, %v7351_v52  ;;  %v3606_v40 = vld [vmem:[%s7132_s0 + $0xe8] sm:$0xff] }
 0x1d6   :  { %v1209_v27 = vmul.f32 %v6501_v10, %v1053_v50  ;;  %v1287_v39 = vmax.f32 %v1223_v9, 0.0  ;;  %v1055_v26 = vpop.xlane.xlu0 %1054  ;;  %v1303_v17 = vsub.f32 0.0, %v1223_v9  ;;  %5310 = vmatprep.subr.bf16.mxu0 %v6738_v20 }
 0x1d7   :  { %v1210_v49 = vmul.f32 %v6501_v10, %v1055_v26  ;;  %4573 = vmatprep.mubr.f32.mxu1 %v1318_v7  ;;  %v1288_v55 = vmax.f32 %v1224_v51, 0.0  ;;  %v1304_v31 = vsub.f32 0.0, %v1224_v51  ;;  %5340 = vmatpush3.bf16.msra.mxu1 %v6722_v42  ;;  %v6778_v51 = vpack.c.bf16 %v3606_v40, %v3605_v11  ;;  %v3622_v7 = vld [vmem:[%s7133_s1 + $0xe8] sm:$0xff]  ;;  %v3607_v26 = vld [vmem:[%s7132_s0 + $0xf0] sm:$0xff] }
 0x1d8   :  { %v1225_v54 = vadd.f32 %v1209_v27, %v7341_v44  ;;  %4518 = vmatmul.mubr.f32.gmra.mrb[56].mxu0 %v1287_v39  ;;  %v1319_v34 = vmax.f32 %v1303_v17, 0.0  ;;  %5342 = vmatprep.subr.bf16.mxu1 %v6745_v28  ;;  %v3621_v27 = vld [vmem:[%s7133_s1 + $0xe0] sm:$0xff]  ;;  %v3608_v17 = vld [vmem:[%s7132_s0 + $0xf8] sm:$0xff]  ;;  %v3623_v44 = vld [vmem:[%s7133_s1 + $0xf0] sm:$0xff] }
 0x1d9   :  { %v1057_v19 = vpop.xlane.xlu1 %1056  ;;  %v1226_v4 = vadd.f32 %v1210_v49, %v7343_v15  ;;  %4520 = vmatprep.mubr.f32.mxu0 %v1288_v55  ;;  %v1320_v63 = vmax.f32 %v1304_v31, 0.0  ;;  %5312 = vmatpush3.bf16.msra.mxu0 %v6738_v20  ;;  %v6788_v39 = vpack.c.bf16 %v3622_v7, %v3621_v27  ;;  %v6796_v48 = vpack.c.bf16 %v3608_v17, %v3607_v26 }
 0x1da   :  { %v1211_v18 = vmul.f32 %v6501_v10, %v1057_v19  ;;  %v1289_v37 = vmax.f32 %v1225_v54, 0.0  ;;  %v1059_v5 = vpop.xlane.xlu0 %1058  ;;  %4574 = vmatmul.mubr.f32.gmra.mrb[56].mxu1 %v1319_v34  ;;  %v1305_v8 = vsub.f32 0.0, %v1225_v54  ;;  %5314 = vmatprep.subr.bf16.mxu0 %v6778_v51  ;;  %v3624_v54 = vld [vmem:[%s7133_s1 + $0xf8] sm:$0xff] }
 0x1db   :  { %v1212_v56 = vmul.f32 %v6501_v10, %v1059_v5  ;;  %4576 = vmatprep.mubr.f32.mxu1 %v1320_v63  ;;  %v1290_v32 = vmax.f32 %v1226_v4, 0.0  ;;  %v1306_v22 = vsub.f32 0.0, %v1226_v4  ;;  %5344 = vmatpush3.bf16.msra.mxu1 %v6745_v28  ;;  %v6808_v49 = vpack.c.bf16 %v3624_v54, %v3623_v44 }
 0x1dc   :  { %v1227_v25 = vadd.f32 %v1211_v18, %v7346_v12  ;;  %4521 = vmatmul.mubr.f32.gmra.mrb[58].mxu0 %v1289_v37  ;;  %v1321_v58 = vmax.f32 %v1305_v8, 0.0  ;;  %5346 = vmatprep.subr.bf16.mxu1 %v6788_v39 }
 0x1dd   :  { %v1061_v35 = vpop.xlane.xlu1 %1060  ;;  %v1228_v33 = vadd.f32 %v1212_v56, %v7349_v3  ;;  %4523 = vmatprep.mubr.f32.mxu0 %v1290_v32  ;;  %v1322_v21 = vmax.f32 %v1306_v22, 0.0  ;;  %5316 = vmatpush3.bf16.msra.mxu0 %v6778_v51 }
 0x1de   :  { %v1213_v61 = vmul.f32 %v6501_v10, %v1061_v35  ;;  %v1291_v2 = vmax.f32 %v1227_v25, 0.0  ;;  %4577 = vmatmul.mubr.f32.gmra.mrb[58].mxu1 %v1321_v58  ;;  %v1307_v41 = vsub.f32 0.0, %v1227_v25  ;;  %5318 = vmatprep.subr.bf16.mxu0 %v6796_v48 }
 0x1df   :  { %4579 = vmatprep.mubr.f32.mxu1 %v1322_v21  ;;  %v1292_v36 = vmax.f32 %v1228_v33, 0.0  ;;  %v1308_v47 = vsub.f32 0.0, %v1228_v33  ;;  %5348 = vmatpush3.bf16.msra.mxu1 %v6788_v39 }
 0x1e0   :  { %v1229_v9 = vadd.f32 %v1213_v61, %v7352_v24  ;;  %4524 = vmatmul.mubr.f32.gmra.mrb[60].mxu0 %v1291_v2  ;;  %v1323_v62 = vmax.f32 %v1307_v41, 0.0  ;;  %5350 = vmatprep.subr.bf16.mxu1 %v6808_v49 }
 0x1e1   :  { %4526 = vmatprep.mubr.f32.mxu0 %v1292_v36  ;;  %v1324_v23 = vmax.f32 %v1308_v47, 0.0  ;;  %5320 = vmatpush3.bf16.msra.mxu0 %v6796_v48 }
 0x1e2   :  { %v1293_v59 = vmax.f32 %v1229_v9, 0.0  ;;  %v1309_v50 = vsub.f32 0.0, %v1229_v9  ;;  %4580 = vmatmul.mubr.f32.gmra.mrb[60].mxu1 %v1323_v62  ;;  %5354 = vmatprep.subr.bf16.mxu0 %v6602_v46 }
 0x1e3   :  { %4582 = vmatprep.mubr.f32.mxu1 %v1324_v23  ;;  %5352 = vmatpush3.bf16.msra.mxu1 %v6808_v49 }
 0x1e4   :  { %4527 = vmatmul.mubr.f32.gmra.mrb[62].mxu0 %v1293_v59  ;;  %v1325_v10 = vmax.f32 %v1309_v50, 0.0  ;;  %5386 = vmatprep.subr.bf16.mxu1 %v6586_v38 }
 0x1e6   :  { %4583 = vmatmul.mubr.f32.gmra.mrb[62].mxu1 %v1325_v10 }
 0x26f   :  { %v4395_v55 = vpop.f32.mrb[32].mxu0 }
 0x270   :  { %v1426_v31 = vpop.f32.mrb[33].mxu0 }
 0x271   :  { %v4451_v19 = vpop.f32.mrb[32].mxu1 }
 0x272   :  { %v1651_v34 = vsub.f32 %v4395_v55, %v4451_v19  ;;  %v1571_v60 = vpop.f32.mrb[33].mxu1 }
 0x273   :  { %v1650_v15 = vsub.f32 %v1426_v31, %v1571_v60  ;;  %v4398_v4 = vpop.f32.mrb[34].mxu0 }
 0x274   :  { %v1989_v18 = vsub.f32 0.0, %v1651_v34  ;;  %v1436_v63 = vpop.f32.mrb[35].mxu0  ;;  %v1973_v43 = vmax.f32 %v1651_v34, 0.0 }
 0x275   :  { %v1972_v37 = vmax.f32 %v1650_v15, 0.0  ;;  %v1988_v5 = vsub.f32 0.0, %v1650_v15  ;;  %v4454_v8 = vpop.f32.mrb[34].mxu1 }
 0x276   :  { %v1653_v57 = vsub.f32 %v4398_v4, %v4454_v8  ;;  %v1581_v12 = vpop.f32.mrb[35].mxu1  ;;  %v2005_v32 = vmax.f32 %v1989_v18, 0.0 }
 0x277   :  { %v2004_v25 = vmax.f32 %v1988_v5, 0.0  ;;  %v1652_v56 = vsub.f32 %v1436_v63, %v1581_v12  ;;  %4617 = vmatprep.mubr.f32.mxu0 %v1972_v37 }
 0x278   :  { %v1991_v22 = vsub.f32 0.0, %v1653_v57  ;;  %v4401_v35 = vpop.f32.mrb[36].mxu0  ;;  %4618 = vmatmul.mubr.f32.vlgmr.msra.gmra.mrb[64].mxu0 %v1973_v43  ;;  %v1975_v3 = vmax.f32 %v1653_v57, 0.0 }
 0x279   :  { %v1974_v58 = vmax.f32 %v1652_v56, 0.0  ;;  %v1990_v53 = vsub.f32 0.0, %v1652_v56  ;;  %v1446_v14 = vpop.f32.mrb[37].mxu0  ;;  %4673 = vmatprep.mubr.f32.mxu1 %v2004_v25  ;;  %5356 = vmatpush3.bf16.msra.mxu0 %v6602_v46 }
 0x27a   :  { %v4457_v33 = vpop.f32.mrb[36].mxu1  ;;  %4674 = vmatmul.mubr.f32.vlgmr.msra.gmra.mrb[64].mxu1 %v2005_v32  ;;  %5358 = vmatprep.subr.bf16.mxu0 %v6642_v29  ;;  %v2007_v41 = vmax.f32 %v1991_v22, 0.0 }
 0x27b   :  { %v2006_v61 = vmax.f32 %v1990_v53, 0.0  ;;  %v1655_v21 = vsub.f32 %v4401_v35, %v4457_v33  ;;  %v1591_v2 = vpop.f32.mrb[37].mxu1  ;;  %5388 = vmatpush3.bf16.msra.mxu1 %v6586_v38  ;;  %4620 = vmatprep.mubr.f32.mxu0 %v1974_v58 }
 0x27c   :  { %v1654_v0 = vsub.f32 %v1446_v14, %v1591_v2  ;;  %4621 = vmatmul.mubr.f32.gmra.mrb[66].mxu0 %v1975_v3  ;;  %5390 = vmatprep.subr.bf16.mxu1 %v6621_v45  ;;  %v2811_v3 = vld [vmem:[%s7132_s0 + $0x8] sm:$0xff] }
 0x27d   :  { %v1993_v52 = vsub.f32 0.0, %v1655_v21  ;;  %4676 = vmatprep.mubr.f32.mxu1 %v2006_v61  ;;  %5360 = vmatpush3.bf16.msra.mxu0 %v6642_v29  ;;  %v1977_v36 = vmax.f32 %v1655_v21, 0.0 }
 0x27e   :  { %v1976_v46 = vmax.f32 %v1654_v0, 0.0  ;;  %v1992_v24 = vsub.f32 0.0, %v1654_v0  ;;  %v4404_v9 = vpop.f32.mrb[38].mxu0  ;;  %4677 = vmatmul.mubr.f32.gmra.mrb[66].mxu1 %v2007_v41  ;;  %5362 = vmatprep.subr.bf16.mxu0 %v6661_v1  ;;  %v2827_v41 = vld [vmem:[%s7133_s1 + $0x8] sm:$0xff] }
 0x27f   :  { %v1456_v47 = vpop.f32.mrb[39].mxu0  ;;  %5392 = vmatpush3.bf16.msra.mxu1 %v6621_v45  ;;  %v2009_v23 = vmax.f32 %v1993_v52, 0.0 }
 0x280   :  { %v2008_v38 = vmax.f32 %v1992_v24, 0.0  ;;  %v4460_v62 = vpop.f32.mrb[38].mxu1  ;;  %4623 = vmatprep.mubr.f32.mxu0 %v1976_v46  ;;  %5394 = vmatprep.subr.bf16.mxu1 %v6653_v30 }
 0x281   :  { %v1657_v59 = vsub.f32 %v4404_v9, %v4460_v62  ;;  %v1601_v50 = vpop.f32.mrb[39].mxu1  ;;  %4624 = vmatmul.mubr.f32.gmra.mrb[68].mxu0 %v1977_v36 }
 0x282   :  { %v1656_v29 = vsub.f32 %v1456_v47, %v1601_v50  ;;  %4679 = vmatprep.mubr.f32.mxu1 %v2008_v38  ;;  %5364 = vmatpush3.bf16.msra.mxu0 %v6661_v1 }
 0x283   :  { %v1995_v11 = vsub.f32 0.0, %v1657_v59  ;;  %4680 = vmatmul.mubr.f32.gmra.mrb[68].mxu1 %v2009_v23  ;;  %5366 = vmatprep.subr.bf16.mxu0 %v6700_v13  ;;  %v1979_v26 = vmax.f32 %v1657_v59, 0.0 }
 0x284   :  { %v4407_v10 = vpop.f32.mrb[40].mxu0  ;;  %v1978_v45 = vmax.f32 %v1656_v29, 0.0  ;;  %v1994_v27 = vsub.f32 0.0, %v1656_v29  ;;  %5396 = vmatpush3.bf16.msra.mxu1 %v6653_v30 }
 0x285   :  { %v1466_v40 = vpop.f32.mrb[41].mxu0  ;;  %5398 = vmatprep.subr.bf16.mxu1 %v6687_v16  ;;  %v2011_v1 = vmax.f32 %v1995_v11, 0.0 }
 0x286   :  { %v4463_v7 = vpop.f32.mrb[40].mxu1  ;;  %v2010_v54 = vmax.f32 %v1994_v27, 0.0  ;;  %4626 = vmatprep.mubr.f32.mxu0 %v1978_v45  ;;  %5368 = vmatpush3.bf16.msra.mxu0 %v6700_v13 }
 0x287   :  { %v1659_v17 = vsub.f32 %v4407_v10, %v4463_v7  ;;  %v1611_v44 = vpop.f32.mrb[41].mxu1  ;;  %4627 = vmatmul.mubr.f32.gmra.mrb[70].mxu0 %v1979_v26  ;;  %5370 = vmatprep.subr.bf16.mxu0 %v6722_v42  ;;  %v2813_v7 = vld [vmem:[%s7132_s0 + $0x18] sm:$0xff] }
 0x288   :  { %v1658_v55 = vsub.f32 %v1466_v40, %v1611_v44  ;;  %4682 = vmatprep.mubr.f32.mxu1 %v2010_v54  ;;  %5400 = vmatpush3.bf16.msra.mxu1 %v6687_v16 }
 0x289   :  { %v1997_v31 = vsub.f32 0.0, %v1659_v17  ;;  %v4410_v19 = vpop.f32.mrb[42].mxu0  ;;  %v1981_v30 = vmax.f32 %v1659_v17, 0.0  ;;  %4683 = vmatmul.mubr.f32.gmra.mrb[70].mxu1 %v2011_v1  ;;  %5402 = vmatprep.subr.bf16.mxu1 %v6709_v6  ;;  %v2829_v1 = vld [vmem:[%s7133_s1 + $0x18] sm:$0xff] }
 0x28a   :  { %v1980_v34 = vmax.f32 %v1658_v55, 0.0  ;;  %v1996_v60 = vsub.f32 0.0, %v1658_v55  ;;  %v1476_v15 = vpop.f32.mrb[43].mxu0  ;;  %5372 = vmatpush3.bf16.msra.mxu0 %v6722_v42  ;;  %v2828_v55 = vld [vmem:[%s7133_s1 + $0x10] sm:$0xff] }
 0x28b   :  { %v4466_v4 = vpop.f32.mrb[42].mxu1  ;;  %v2013_v37 = vmax.f32 %v1997_v31, 0.0  ;;  %5374 = vmatprep.subr.bf16.mxu0 %v6745_v28 }
 0x28c   :  { %v2012_v18 = vmax.f32 %v1996_v60, 0.0  ;;  %v1661_v63 = vsub.f32 %v4410_v19, %v4466_v4  ;;  %v1621_v13 = vpop.f32.mrb[43].mxu1  ;;  %4629 = vmatprep.mubr.f32.mxu0 %v1980_v34  ;;  %5404 = vmatpush3.bf16.msra.mxu1 %v6709_v6  ;;  %v2810_v6 = vld [vmem:[%s7132_s0] sm:$0xff] }
 0x28d   :  { %v1660_v5 = vsub.f32 %v1476_v15, %v1621_v13  ;;  %v4413_v8 = vpop.f32.mrb[44].mxu0  ;;  %4630 = vmatmul.mubr.f32.gmra.mrb[72].mxu0 %v1981_v30  ;;  %5406 = vmatprep.subr.bf16.mxu1 %v6738_v20  ;;  %v6852_v24 = vpack.c.bf16 %v2811_v3, %v2810_v6  ;;  %v2814_v4 = vld [vmem:[%s7132_s0 + $0x20] sm:$0xff] }
 0x28e   :  { %v1999_v43 = vsub.f32 0.0, %v1661_v63  ;;  %v1486_v57 = vpop.f32.mrb[45].mxu0  ;;  %4685 = vmatprep.mubr.f32.mxu1 %v2012_v18  ;;  %v1983_v56 = vmax.f32 %v1661_v63, 0.0  ;;  %5376 = vmatpush3.bf16.msra.mxu0 %v6745_v28  ;;  %v2815_v18 = vld [vmem:[%s7132_s0 + $0x28] sm:$0xff] }
 0x28f   :  { %v1982_v16 = vmax.f32 %v1660_v5, 0.0  ;;  %v1998_v12 = vsub.f32 0.0, %v1660_v5  ;;  %v4469_v25 = vpop.f32.mrb[44].mxu1  ;;  %4686 = vmatmul.mubr.f32.gmra.mrb[72].mxu1 %v2013_v37  ;;  %5378 = vmatprep.subr.bf16.mxu0 %v6788_v39  ;;  %v6882_v5 = vpack.c.bf16 %v2829_v1, %v2828_v55 }
 0x290   :  { %v1663_v32 = vsub.f32 %v4413_v8, %v4469_v25  ;;  %v1631_v42 = vpop.f32.mrb[45].mxu1  ;;  %v2015_v58 = vmax.f32 %v1999_v43, 0.0  ;;  %5408 = vmatpush3.bf16.msra.mxu1 %v6738_v20  ;;  %v2826_v20 = vld [vmem:[%s7133_s1] sm:$0xff] }
 0x291   :  { %v2014_v22 = vmax.f32 %v1998_v12, 0.0  ;;  %v1662_v35 = vsub.f32 %v1486_v57, %v1631_v42  ;;  %4632 = vmatprep.mubr.f32.mxu0 %v1982_v16  ;;  %v4416_v14 = vpop.f32.mrb[46].mxu0  ;;  %5410 = vmatprep.subr.bf16.mxu1 %v6778_v51  ;;  %v6856_v38 = vpack.c.bf16 %v2827_v41, %v2826_v20  ;;  %v2830_v16 = vld [vmem:[%s7133_s1 + $0x20] sm:$0xff]  ;;  %v2831_v12 = vld [vmem:[%s7133_s1 + $0x28] sm:$0xff] }
 0x292   :  { %v2001_v53 = vsub.f32 0.0, %v1663_v32  ;;  %4633 = vmatmul.mubr.f32.gmra.mrb[74].mxu0 %v1983_v56  ;;  %v1496_v61 = vpop.f32.mrb[47].mxu0  ;;  %v1985_v21 = vmax.f32 %v1663_v32, 0.0  ;;  %v6892_v56 = vpack.c.bf16 %v2815_v18, %v2814_v4  ;;  %v6902_v3 = vpack.c.bf16 %v2831_v12, %v2830_v16 }
 0x293   :  { %v1984_v28 = vmax.f32 %v1662_v35, 0.0  ;;  %v2000_v33 = vsub.f32 0.0, %v1662_v35  ;;  %4688 = vmatprep.mubr.f32.mxu1 %v2014_v22  ;;  %v4472_v2 = vpop.f32.mrb[46].mxu1  ;;  %5380 = vmatpush3.bf16.msra.mxu0 %v6788_v39  ;;  %v2816_v22 = vld [vmem:[%s7132_s0 + $0x30] sm:$0xff]  ;;  %v2817_v35 = vld [vmem:[%s7132_s0 + $0x38] sm:$0xff] }
 0x294   :  { %4689 = vmatmul.mubr.f32.gmra.mrb[74].mxu1 %v2015_v58  ;;  %v1665_v52 = vsub.f32 %v4416_v14, %v4472_v2  ;;  %v1641_v46 = vpop.f32.mrb[47].mxu1  ;;  %5382 = vmatprep.subr.bf16.mxu0 %v6808_v49  ;;  %v2017_v9 = vmax.f32 %v2001_v53, 0.0  ;;  %v6912_v20 = vpack.c.bf16 %v2817_v35, %v2816_v22 }
 0x295   :  { %v2016_v0 = vmax.f32 %v2000_v33, 0.0  ;;  %4635 = vmatprep.mubr.f32.mxu0 %v1984_v28  ;;  %v1664_v36 = vsub.f32 %v1496_v61, %v1641_v46  ;;  %5412 = vmatpush3.bf16.msra.mxu1 %v6778_v51  ;;  %v2832_v61 = vld [vmem:[%s7133_s1 + $0x30] sm:$0xff]  ;;  %v2818_v46 = vld [vmem:[%s7132_s0 + $0x40] sm:$0xff] }
 0x296   :  { %4636 = vmatmul.mubr.f32.gmra.mrb[76].mxu0 %v1985_v21  ;;  %v2003_v39 = vsub.f32 0.0, %v1665_v52  ;;  %v4507_v47 = vpop.f32.mrb[48].mxu0  ;;  %5414 = vmatprep.subr.bf16.mxu1 %v6796_v48  ;;  %v1987_v50 = vmax.f32 %v1665_v52, 0.0  ;;  %v2833_v21 = vld [vmem:[%s7133_s1 + $0x38] sm:$0xff] }
 0x297   :  { %4691 = vmatprep.mubr.f32.mxu1 %v2016_v0  ;;  %v1986_v62 = vmax.f32 %v1664_v36, 0.0  ;;  %v2002_v23 = vsub.f32 0.0, %v1664_v36  ;;  %v1732_v59 = vpop.f32.mrb[49].mxu0  ;;  %5384 = vmatpush3.bf16.msra.mxu0 %v6808_v49  ;;  %v2812_v49 = vld [vmem:[%s7132_s0 + $0x10] sm:$0xff] }
 0x298   :  { %4692 = vmatmul.mubr.f32.gmra.mrb[76].mxu1 %v2017_v9  ;;  %v4563_v29 = vpop.f32.mrb[48].mxu1  ;;  %5418 = vmatprep.subr.bf16.mxu0 %v6852_v24  ;;  %v2019_v40 = vmax.f32 %v2003_v39, 0.0  ;;  %v6874_v60 = vpack.c.bf16 %v2813_v7, %v2812_v49  ;;  %v2819_v9 = vld [vmem:[%s7132_s0 + $0x48] sm:$0xff]  ;;  %v2820_v7 = vld [vmem:[%s7132_s0 + $0x50] sm:$0xff] }
 0x299   :  { %v2018_v10 = vmax.f32 %v2002_v23, 0.0  ;;  %v1957_v11 = vsub.f32 %v4507_v47, %v4563_v29  ;;  %v1877_v51 = vpop.f32.mrb[49].mxu1  ;;  %4638 = vmatprep.mubr.f32.mxu0 %v1986_v62  ;;  %5416 = vmatpush3.bf16.msra.mxu1 %v6796_v48  ;;  %v6922_v62 = vpack.c.bf16 %v2833_v21, %v2832_v61  ;;  %v2834_v29 = vld [vmem:[%s7133_s1 + $0x40] sm:$0xff] }
 0x29a   :  { %v1956_v45 = vsub.f32 %v1732_v59, %v1877_v51  ;;  %4639 = vmatmul.mubr.f32.gmra.mrb[78].mxu0 %v1987_v50  ;;  %5450 = vmatprep.subr.bf16.mxu1 %v6856_v38 }
 0x29b   :  { %v2037_v26 = vsub.f32 0.0, %v1957_v11  ;;  %4694 = vmatprep.mubr.f32.mxu1 %v2018_v10  ;;  %v2021_v31 = vmax.f32 %v1957_v11, 0.0  ;;  %v2835_v10 = vld [vmem:[%s7133_s1 + $0x48] sm:$0xff] }
 0x29c   :  { %v4510_v27 = vpop.f32.mrb[50].mxu0  ;;  %v2020_v44 = vmax.f32 %v1956_v45, 0.0  ;;  %v2036_v54 = vsub.f32 0.0, %v1956_v45  ;;  %4695 = vmatmul.mubr.f32.gmra.mrb[78].mxu1 %v2019_v40  ;;  %v6932_v45 = vpack.c.bf16 %v2819_v9, %v2818_v46 }
 0x29d   :  { %v1742_v17 = vpop.f32.mrb[51].mxu0  ;;  %v2053_v63 = vmax.f32 %v2037_v26, 0.0  ;;  %v2821_v26 = vld [vmem:[%s7132_s0 + $0x58] sm:$0xff] }
 0x29e   :  { %v4566_v48 = vpop.f32.mrb[50].mxu1  ;;  %v2052_v15 = vmax.f32 %v2036_v54, 0.0  ;;  %4729 = vmatprep.mubr.f32.mxu0 %v2020_v44  ;;  %v6942_v54 = vpack.c.bf16 %v2835_v10, %v2834_v29  ;;  %v6952_v18 = vpack.c.bf16 %v2821_v26, %v2820_v7  ;;  %v2822_v26 = vld [vmem:[%s7132_s0 + $0x60] sm:$0xff] }
 0x29f   :  { %v1959_v19 = vsub.f32 %v4510_v27, %v4566_v48  ;;  %v1887_v34 = vpop.f32.mrb[51].mxu1  ;;  %4730 = vmatmul.mubr.f32.vlgmr.msra.gmra.mrb[80].mxu0 %v2021_v31 }
 0x2a0   :  { %v1958_v30 = vsub.f32 %v1742_v17, %v1887_v34  ;;  %4785 = vmatprep.mubr.f32.mxu1 %v2052_v15  ;;  %5420 = vmatpush3.bf16.msra.mxu0 %v6852_v24  ;;  %v2837_v34 = vld [vmem:[%s7133_s1 + $0x58] sm:$0xff] }
 0x2a1   :  { %v2039_v13 = vsub.f32 0.0, %v1959_v19  ;;  %v4513_v37 = vpop.f32.mrb[52].mxu0  ;;  %v2023_v25 = vmax.f32 %v1959_v19, 0.0  ;;  %4786 = vmatmul.mubr.f32.vlgmr.msra.gmra.mrb[80].mxu1 %v2053_v63  ;;  %5422 = vmatprep.subr.bf16.mxu0 %v6874_v60  ;;  %v2836_v19 = vld [vmem:[%s7133_s1 + $0x50] sm:$0xff] }
 0x2a2   :  { %v2022_v8 = vmax.f32 %v1958_v30, 0.0  ;;  %v2038_v43 = vsub.f32 0.0, %v1958_v30  ;;  %v1752_v57 = vpop.f32.mrb[53].mxu0  ;;  %5452 = vmatpush3.bf16.msra.mxu1 %v6856_v38 }
 0x2a3   :  { %v4569_v42 = vpop.f32.mrb[52].mxu1  ;;  %v2055_v58 = vmax.f32 %v2039_v13, 0.0  ;;  %5454 = vmatprep.subr.bf16.mxu1 %v6882_v5 }
 0x2a4   :  { %v2054_v32 = vmax.f32 %v2038_v43, 0.0  ;;  %4732 = vmatprep.mubr.f32.mxu0 %v2022_v8  ;;  %v1961_v53 = vsub.f32 %v4513_v37, %v4569_v42  ;;  %v1897_v14 = vpop.f32.mrb[53].mxu1  ;;  %5424 = vmatpush3.bf16.msra.mxu0 %v6874_v60  ;;  %v6956_v43 = vpack.c.bf16 %v2837_v34, %v2836_v19  ;;  %v2825_v19 = vld [vmem:[%s7132_s0 + $0x78] sm:$0xff] }
 0x2a5   :  { %v4516_v6 = vpop.f32.mrb[54].mxu0  ;;  %4733 = vmatmul.mubr.f32.gmra.mrb[82].mxu0 %v2023_v25  ;;  %v1960_v28 = vsub.f32 %v1752_v57, %v1897_v14  ;;  %5426 = vmatprep.subr.bf16.mxu0 %v6892_v56 }
 0x2a6   :  { %v1762_v33 = vpop.f32.mrb[55].mxu0  ;;  %4788 = vmatprep.mubr.f32.mxu1 %v2054_v32  ;;  %v2041_v2 = vsub.f32 0.0, %v1961_v53  ;;  %5456 = vmatpush3.bf16.msra.mxu1 %v6882_v5  ;;  %v2025_v36 = vmax.f32 %v1961_v53, 0.0 }
 0x2a7   :  { %4789 = vmatmul.mubr.f32.gmra.mrb[82].mxu1 %v2055_v58  ;;  %v2024_v41 = vmax.f32 %v1960_v28, 0.0  ;;  %v2040_v0 = vsub.f32 0.0, %v1960_v28  ;;  %v4572_v52 = vpop.f32.mrb[54].mxu1  ;;  %5458 = vmatprep.subr.bf16.mxu1 %v6902_v3 }
 0x2a8   :  { %v1963_v39 = vsub.f32 %v4516_v6, %v4572_v52  ;;  %v1907_v47 = vpop.f32.mrb[55].mxu1  ;;  %5428 = vmatpush3.bf16.msra.mxu0 %v6892_v56  ;;  %v2057_v11 = vmax.f32 %v2041_v2, 0.0 }
 0x2a9   :  { %v2056_v23 = vmax.f32 %v2040_v0, 0.0  ;;  %v1962_v59 = vsub.f32 %v1762_v33, %v1907_v47  ;;  %4735 = vmatprep.mubr.f32.mxu0 %v2024_v41  ;;  %5430 = vmatprep.subr.bf16.mxu0 %v6912_v20 }
 0x2aa   :  { %v2043_v51 = vsub.f32 0.0, %v1963_v39  ;;  %4736 = vmatmul.mubr.f32.gmra.mrb[84].mxu0 %v2025_v36  ;;  %5460 = vmatpush3.bf16.msra.mxu1 %v6902_v3  ;;  %v2027_v17 = vmax.f32 %v1963_v39, 0.0 }
 0x2ab   :  { %v4519_v50 = vpop.f32.mrb[56].mxu0  ;;  %v2026_v27 = vmax.f32 %v1962_v59, 0.0  ;;  %v2042_v49 = vsub.f32 0.0, %v1962_v59  ;;  %4791 = vmatprep.mubr.f32.mxu1 %v2056_v23  ;;  %5462 = vmatprep.subr.bf16.mxu1 %v6922_v62 }
 0x2ac   :  { %v1772_v40 = vpop.f32.mrb[57].mxu0  ;;  %4792 = vmatmul.mubr.f32.gmra.mrb[84].mxu1 %v2057_v11  ;;  %5432 = vmatpush3.bf16.msra.mxu0 %v6912_v20  ;;  %v2059_v15 = vmax.f32 %v2043_v51, 0.0 }
 0x2ad   :  { %v4575_v44 = vpop.f32.mrb[56].mxu1  ;;  %v2058_v48 = vmax.f32 %v2042_v49, 0.0  ;;  %4738 = vmatprep.mubr.f32.mxu0 %v2026_v27  ;;  %5434 = vmatprep.subr.bf16.mxu0 %v6932_v45 }
 0x2ae   :  { %v1965_v55 = vsub.f32 %v4519_v50, %v4575_v44  ;;  %v1917_v1 = vpop.f32.mrb[57].mxu1  ;;  %4739 = vmatmul.mubr.f32.gmra.mrb[86].mxu0 %v2027_v17  ;;  %5464 = vmatpush3.bf16.msra.mxu1 %v6922_v62  ;;  %v2823_v17 = vld [vmem:[%s7132_s0 + $0x68] sm:$0xff] }
 0x2af   :  { %v4522_v31 = vpop.f32.mrb[58].mxu0  ;;  %v1964_v30 = vsub.f32 %v1772_v40, %v1917_v1  ;;  %4794 = vmatprep.mubr.f32.mxu1 %v2058_v48  ;;  %5466 = vmatprep.subr.bf16.mxu1 %v6942_v54  ;;  %v6970_v44 = vpack.c.bf16 %v2823_v17, %v2822_v26  ;;  %v2838_v48 = vld [vmem:[%s7133_s1 + $0x60] sm:$0xff] }
 0x2b0   :  { %v1782_v4 = vpop.f32.mrb[59].mxu0  ;;  %v2045_v63 = vsub.f32 0.0, %v1965_v55  ;;  %4795 = vmatmul.mubr.f32.gmra.mrb[86].mxu1 %v2059_v15  ;;  %v2029_v57 = vmax.f32 %v1965_v55, 0.0  ;;  %5436 = vmatpush3.bf16.msra.mxu0 %v6932_v45  ;;  %v2839_v55 = vld [vmem:[%s7133_s1 + $0x68] sm:$0xff]  ;;  %v2840_v15 = vld [vmem:[%s7133_s1 + $0x70] sm:$0xff] }
 0x2b1   :  { %v2028_v13 = vmax.f32 %v1964_v30, 0.0  ;;  %v2044_v37 = vsub.f32 0.0, %v1964_v30  ;;  %v4578_v8 = vpop.f32.mrb[58].mxu1  ;;  %5438 = vmatprep.subr.bf16.mxu0 %v6952_v18  ;;  %v6980_v1 = vpack.c.bf16 %v2839_v55, %v2838_v48  ;;  %v2841_v30 = vld [vmem:[%s7133_s1 + $0x78] sm:$0xff] }
 0x2b2   :  { %v1967_v16 = vsub.f32 %v4522_v31, %v4578_v8  ;;  %v1927_v12 = vpop.f32.mrb[59].mxu1  ;;  %v2061_v35 = vmax.f32 %v2045_v63, 0.0  ;;  %5468 = vmatpush3.bf16.msra.mxu1 %v6942_v54  ;;  %v2824_v31 = vld [vmem:[%s7132_s0 + $0x70] sm:$0xff] }
 0x2b3   :  { %v4525_v25 = vpop.f32.mrb[60].mxu0  ;;  %v2060_v32 = vmax.f32 %v2044_v37, 0.0  ;;  %v1966_v42 = vsub.f32 %v1782_v4, %v1927_v12  ;;  %4741 = vmatprep.mubr.f32.mxu0 %v2028_v13  ;;  %5470 = vmatprep.subr.bf16.mxu1 %v6956_v43  ;;  %v6988_v34 = vpack.c.bf16 %v2825_v19, %v2824_v31  ;;  %v7000_v4 = vpack.c.bf16 %v2841_v30, %v2840_v15 }
 0x2b4   :  { %v1792_v22 = vpop.f32.mrb[61].mxu0  ;;  %v2047_v58 = vsub.f32 0.0, %v1967_v16  ;;  %4742 = vmatmul.mubr.f32.gmra.mrb[88].mxu0 %v2029_v57  ;;  %v2031_v28 = vmax.f32 %v1967_v16, 0.0 }
 0x2b5   :  { %v2030_v53 = vmax.f32 %v1966_v42, 0.0  ;;  %v2046_v14 = vsub.f32 0.0, %v1966_v42  ;;  %v4581_v6 = vpop.f32.mrb[60].mxu1  ;;  %4797 = vmatprep.mubr.f32.mxu1 %v2060_v32  ;;  %5440 = vmatpush3.bf16.msra.mxu0 %v6952_v18 }
 0x2b6   :  { %v1969_v33 = vsub.f32 %v4525_v25, %v4581_v6  ;;  %v1937_v61 = vpop.f32.mrb[61].mxu1  ;;  %4798 = vmatmul.mubr.f32.gmra.mrb[88].mxu1 %v2061_v35  ;;  %v2063_v52 = vmax.f32 %v2047_v58, 0.0  ;;  %5442 = vmatprep.subr.bf16.mxu0 %v6970_v44 }
 0x2b7   :  { %v4528_v21 = vpop.f32.mrb[62].mxu0  ;;  %v2062_v2 = vmax.f32 %v2046_v14, 0.0  ;;  %v1968_v41 = vsub.f32 %v1792_v22, %v1937_v61  ;;  %4744 = vmatprep.mubr.f32.mxu0 %v2030_v53  ;;  %5472 = vmatpush3.bf16.msra.mxu1 %v6956_v43 }
 0x2b8   :  { %v1802_v0 = vpop.f32.mrb[63].mxu0  ;;  %v2049_v46 = vsub.f32 0.0, %v1969_v33  ;;  %4745 = vmatmul.mubr.f32.gmra.mrb[90].mxu0 %v2031_v28  ;;  %v2033_v47 = vmax.f32 %v1969_v33, 0.0  ;;  %5474 = vmatprep.subr.bf16.mxu1 %v6980_v1 }
 0x2b9   :  { %v2032_v9 = vmax.f32 %v1968_v41, 0.0  ;;  %v2048_v36 = vsub.f32 0.0, %v1968_v41  ;;  %v4584_v39 = vpop.f32.mrb[62].mxu1  ;;  %4800 = vmatprep.mubr.f32.mxu1 %v2062_v2  ;;  %5444 = vmatpush3.bf16.msra.mxu0 %v6970_v44 }
 0x2ba   :  { %v1971_v23 = vsub.f32 %v4528_v21, %v4584_v39  ;;  %v1947_v59 = vpop.f32.mrb[63].mxu1  ;;  %4801 = vmatmul.mubr.f32.gmra.mrb[90].mxu1 %v2063_v52  ;;  %v2065_v10 = vmax.f32 %v2049_v46, 0.0  ;;  %5446 = vmatprep.subr.bf16.mxu0 %v6988_v34 }
 0x2bb   :  { %v2064_v50 = vmax.f32 %v2048_v36, 0.0  ;;  %v1970_v29 = vsub.f32 %v1802_v0, %v1947_v59  ;;  %4747 = vmatprep.mubr.f32.mxu0 %v2032_v9  ;;  %5476 = vmatpush3.bf16.msra.mxu1 %v6980_v1 }
 0x2bc   :  { %v2051_v11 = vsub.f32 0.0, %v1971_v23  ;;  %4748 = vmatmul.mubr.f32.gmra.mrb[92].mxu0 %v2033_v47  ;;  %v2035_v27 = vmax.f32 %v1971_v23, 0.0  ;;  %5478 = vmatprep.subr.bf16.mxu1 %v7000_v4 }
 0x2bd   :  { %v2034_v51 = vmax.f32 %v1970_v29, 0.0  ;;  %v2050_v40 = vsub.f32 0.0, %v1970_v29  ;;  %4803 = vmatprep.mubr.f32.mxu1 %v2064_v50  ;;  %5448 = vmatpush3.bf16.msra.mxu0 %v6988_v34 }
 0x2be   :  { %4804 = vmatmul.mubr.f32.gmra.mrb[92].mxu1 %v2065_v10  ;;  %v2067_v7 = vmax.f32 %v2051_v11, 0.0  ;;  %5482 = vmatprep.subr.bf16.mxu0 %v6856_v38 }
 0x2bf   :  { %v2066_v49 = vmax.f32 %v2050_v40, 0.0  ;;  %4750 = vmatprep.mubr.f32.mxu0 %v2034_v51  ;;  %5480 = vmatpush3.bf16.msra.mxu1 %v7000_v4 }
 0x2c0   :  { %4751 = vmatmul.mubr.f32.gmra.mrb[94].mxu0 %v2035_v27  ;;  %5514 = vmatprep.subr.bf16.mxu1 %v6852_v24 }
 0x2c1   :  { %4806 = vmatprep.mubr.f32.mxu1 %v2066_v49 }
 0x2c2   :  { %4807 = vmatmul.mubr.f32.gmra.mrb[94].mxu1 %v2067_v7 }
 0x34b   :  { %v4619_v63 = vpop.f32.mrb[64].mxu0 }
 0x34c   :  { %v2168_v13 = vpop.f32.mrb[65].mxu0 }
 0x34d   :  { %v4675_v37 = vpop.f32.mrb[64].mxu1 }
 0x34e   :  { %v2393_v8 = vsub.f32 %v4619_v63, %v4675_v37  ;;  %v2313_v57 = vpop.f32.mrb[65].mxu1 }
 0x34f   :  { %v2392_v16 = vsub.f32 %v2168_v13, %v2313_v57  ;;  %v4622_v12 = vpop.f32.mrb[66].mxu0 }
 0x350   :  { %v2731_v25 = vsub.f32 0.0, %v2393_v8  ;;  %v2178_v32 = vpop.f32.mrb[67].mxu0  ;;  %v2715_v58 = vmax.f32 %v2393_v8, 0.0 }
 0x351   :  { %v2714_v42 = vmax.f32 %v2392_v16, 0.0  ;;  %v2730_v22 = vsub.f32 0.0, %v2392_v16  ;;  %v4678_v35 = vpop.f32.mrb[66].mxu1 }
 0x352   :  { %v2395_v53 = vsub.f32 %v4622_v12, %v4678_v35  ;;  %v2323_v14 = vpop.f32.mrb[67].mxu1  ;;  %v2747_v33 = vmax.f32 %v2731_v25, 0.0 }
 0x353   :  { %v2746_v6 = vmax.f32 %v2730_v22, 0.0  ;;  %v2394_v28 = vsub.f32 %v2178_v32, %v2323_v14  ;;  %4841 = vmatprep.mubr.f32.mxu0 %v2714_v42 }
 0x354   :  { %v2733_v61 = vsub.f32 0.0, %v2395_v53  ;;  %v4625_v21 = vpop.f32.mrb[68].mxu0  ;;  %4842 = vmatmul.mubr.f32.vlgmr.msra.gmra.mrb[96].mxu0 %v2715_v58  ;;  %v2717_v52 = vmax.f32 %v2395_v53, 0.0 }
 0x355   :  { %v2716_v2 = vmax.f32 %v2394_v28, 0.0  ;;  %v2732_v41 = vsub.f32 0.0, %v2394_v28  ;;  %v2188_v0 = vpop.f32.mrb[69].mxu0  ;;  %4897 = vmatprep.mubr.f32.mxu1 %v2746_v6  ;;  %5484 = vmatpush3.bf16.msra.mxu0 %v6856_v38 }
 0x356   :  { %v4681_v46 = vpop.f32.mrb[68].mxu1  ;;  %4898 = vmatmul.mubr.f32.vlgmr.msra.gmra.mrb[96].mxu1 %v2747_v33  ;;  %5486 = vmatprep.subr.bf16.mxu0 %v6882_v5  ;;  %v2749_v47 = vmax.f32 %v2733_v61, 0.0 }
 0x357   :  { %v2748_v9 = vmax.f32 %v2732_v41, 0.0  ;;  %v2397_v36 = vsub.f32 %v4625_v21, %v4681_v46  ;;  %v2333_v39 = vpop.f32.mrb[69].mxu1  ;;  %5516 = vmatpush3.bf16.msra.mxu1 %v6852_v24  ;;  %4844 = vmatprep.mubr.f32.mxu0 %v2716_v2 }
 0x358   :  { %v2396_v23 = vsub.f32 %v2188_v0, %v2333_v39  ;;  %4845 = vmatmul.mubr.f32.gmra.mrb[98].mxu0 %v2717_v52  ;;  %5518 = vmatprep.subr.bf16.mxu1 %v6874_v60 }
 0x359   :  { %v2735_v59 = vsub.f32 0.0, %v2397_v36  ;;  %4900 = vmatprep.mubr.f32.mxu1 %v2748_v9  ;;  %5488 = vmatpush3.bf16.msra.mxu0 %v6882_v5  ;;  %v2719_v10 = vmax.f32 %v2397_v36, 0.0 }
 0x35a   :  { %v2718_v38 = vmax.f32 %v2396_v23, 0.0  ;;  %v2734_v50 = vsub.f32 0.0, %v2396_v23  ;;  %v4628_v29 = vpop.f32.mrb[70].mxu0  ;;  %4901 = vmatmul.mubr.f32.gmra.mrb[98].mxu1 %v2749_v47  ;;  %5490 = vmatprep.subr.bf16.mxu0 %v6902_v3 }
 0x35b   :  { %v2198_v11 = vpop.f32.mrb[71].mxu0  ;;  %5520 = vmatpush3.bf16.msra.mxu1 %v6874_v60  ;;  %v2751_v40 = vmax.f32 %v2735_v59, 0.0 }
 0x35c   :  { %v2750_v24 = vmax.f32 %v2734_v50, 0.0  ;;  %v4684_v51 = vpop.f32.mrb[70].mxu1  ;;  %4847 = vmatprep.mubr.f32.mxu0 %v2718_v38  ;;  %5522 = vmatprep.subr.bf16.mxu1 %v6892_v56 }
 0x35d   :  { %v2399_v27 = vsub.f32 %v4628_v29, %v4684_v51  ;;  %v2343_v49 = vpop.f32.mrb[71].mxu1  ;;  %4848 = vmatmul.mubr.f32.gmra.mrb[100].mxu0 %v2719_v10 }
 0x35e   :  { %v2398_v5 = vsub.f32 %v2198_v11, %v2343_v49  ;;  %4903 = vmatprep.mubr.f32.mxu1 %v2750_v24  ;;  %5492 = vmatpush3.bf16.msra.mxu0 %v6902_v3 }
 0x35f   :  { %v2737_v26 = vsub.f32 0.0, %v2399_v27  ;;  %4904 = vmatmul.mubr.f32.gmra.mrb[100].mxu1 %v2751_v40  ;;  %5494 = vmatprep.subr.bf16.mxu0 %v6922_v62  ;;  %v2721_v31 = vmax.f32 %v2399_v27, 0.0 }
 0x360   :  { %v4631_v7 = vpop.f32.mrb[72].mxu0  ;;  %v2720_v60 = vmax.f32 %v2398_v5, 0.0  ;;  %v2736_v48 = vsub.f32 0.0, %v2398_v5  ;;  %5524 = vmatpush3.bf16.msra.mxu1 %v6892_v56 }
 0x361   :  { %v2208_v17 = vpop.f32.mrb[73].mxu0  ;;  %5526 = vmatprep.subr.bf16.mxu1 %v6912_v20  ;;  %v2753_v3 = vmax.f32 %v2737_v26, 0.0 }
 0x362   :  { %v4687_v55 = vpop.f32.mrb[72].mxu1  ;;  %v2752_v30 = vmax.f32 %v2736_v48, 0.0  ;;  %4850 = vmatprep.mubr.f32.mxu0 %v2720_v60  ;;  %5496 = vmatpush3.bf16.msra.mxu0 %v6922_v62 }
 0x363   :  { %v2401_v19 = vsub.f32 %v4631_v7, %v4687_v55  ;;  %v2353_v15 = vpop.f32.mrb[73].mxu1  ;;  %4851 = vmatmul.mubr.f32.gmra.mrb[102].mxu0 %v2721_v31  ;;  %5498 = vmatprep.subr.bf16.mxu0 %v6942_v54 }
 0x364   :  { %v2400_v63 = vsub.f32 %v2208_v17, %v2353_v15  ;;  %4906 = vmatprep.mubr.f32.mxu1 %v2752_v30  ;;  %5528 = vmatpush3.bf16.msra.mxu1 %v6912_v20 }
 0x365   :  { %v2739_v13 = vsub.f32 0.0, %v2401_v19  ;;  %v4634_v37 = vpop.f32.mrb[74].mxu0  ;;  %v2723_v56 = vmax.f32 %v2401_v19, 0.0  ;;  %4907 = vmatmul.mubr.f32.gmra.mrb[102].mxu1 %v2753_v3  ;;  %5530 = vmatprep.subr.bf16.mxu1 %v6932_v45 }
 0x366   :  { %v2722_v8 = vmax.f32 %v2400_v63, 0.0  ;;  %v2738_v57 = vsub.f32 0.0, %v2400_v63  ;;  %v2218_v16 = vpop.f32.mrb[75].mxu0  ;;  %5500 = vmatpush3.bf16.msra.mxu0 %v6942_v54 }
 0x367   :  { %v4690_v12 = vpop.f32.mrb[74].mxu1  ;;  %v2755_v42 = vmax.f32 %v2739_v13, 0.0  ;;  %5502 = vmatprep.subr.bf16.mxu0 %v6956_v43 }
 0x368   :  { %v2754_v25 = vmax.f32 %v2738_v57, 0.0  ;;  %v2403_v32 = vsub.f32 %v4634_v37, %v4690_v12  ;;  %v2363_v62 = vpop.f32.mrb[75].mxu1  ;;  %4853 = vmatprep.mubr.f32.mxu0 %v2722_v8  ;;  %5532 = vmatpush3.bf16.msra.mxu1 %v6932_v45 }
 0x369   :  { %v2402_v22 = vsub.f32 %v2218_v16, %v2363_v62  ;;  %v4637_v35 = vpop.f32.mrb[76].mxu0  ;;  %4854 = vmatmul.mubr.f32.gmra.mrb[104].mxu0 %v2723_v56  ;;  %5534 = vmatprep.subr.bf16.mxu1 %v6952_v18 }
 0x36a   :  { %v2741_v58 = vsub.f32 0.0, %v2403_v32  ;;  %v2228_v53 = vpop.f32.mrb[77].mxu0  ;;  %4909 = vmatprep.mubr.f32.mxu1 %v2754_v25  ;;  %v2725_v28 = vmax.f32 %v2403_v32, 0.0  ;;  %5504 = vmatpush3.bf16.msra.mxu0 %v6956_v43 }
 0x36b   :  { %v2724_v20 = vmax.f32 %v2402_v22, 0.0  ;;  %v2740_v14 = vsub.f32 0.0, %v2402_v22  ;;  %v4693_v6 = vpop.f32.mrb[76].mxu1  ;;  %4910 = vmatmul.mubr.f32.gmra.mrb[104].mxu1 %v2755_v42  ;;  %5506 = vmatprep.subr.bf16.mxu0 %v6980_v1 }
 0x36c   :  { %v2405_v33 = vsub.f32 %v4637_v35, %v4693_v6  ;;  %v2373_v54 = vpop.f32.mrb[77].mxu1  ;;  %v2757_v2 = vmax.f32 %v2741_v58, 0.0  ;;  %5536 = vmatpush3.bf16.msra.mxu1 %v6952_v18 }
 0x36d   :  { %v2756_v61 = vmax.f32 %v2740_v14, 0.0  ;;  %v2404_v21 = vsub.f32 %v2228_v53, %v2373_v54  ;;  %4856 = vmatprep.mubr.f32.mxu0 %v2724_v20  ;;  %v4640_v0 = vpop.f32.mrb[78].mxu0  ;;  %5538 = vmatprep.subr.bf16.mxu1 %v6970_v44 }
 0x36e   :  { %v2743_v41 = vsub.f32 0.0, %v2405_v33  ;;  %4857 = vmatmul.mubr.f32.gmra.mrb[106].mxu0 %v2725_v28  ;;  %v2238_v46 = vpop.f32.mrb[79].mxu0  ;;  %v2727_v9 = vmax.f32 %v2405_v33, 0.0 }
 0x36f   :  { %v2726_v45 = vmax.f32 %v2404_v21, 0.0  ;;  %v2742_v52 = vsub.f32 0.0, %v2404_v21  ;;  %4912 = vmatprep.mubr.f32.mxu1 %v2756_v61  ;;  %v4696_v36 = vpop.f32.mrb[78].mxu1  ;;  %5508 = vmatpush3.bf16.msra.mxu0 %v6980_v1 }
 0x370   :  { %4913 = vmatmul.mubr.f32.gmra.mrb[106].mxu1 %v2757_v2  ;;  %v2407_v39 = vsub.f32 %v4640_v0, %v4696_v36  ;;  %v2383_v47 = vpop.f32.mrb[79].mxu1  ;;  %5510 = vmatprep.subr.bf16.mxu0 %v7000_v4  ;;  %v2759_v23 = vmax.f32 %v2743_v41, 0.0 }
 0x371   :  { %v2758_v43 = vmax.f32 %v2742_v52, 0.0  ;;  %4859 = vmatprep.mubr.f32.mxu0 %v2726_v45  ;;  %v2406_v59 = vsub.f32 %v2238_v46, %v2383_v47  ;;  %5540 = vmatpush3.bf16.msra.mxu1 %v6970_v44 }
 0x372   :  { %4860 = vmatmul.mubr.f32.gmra.mrb[108].mxu0 %v2727_v9  ;;  %v2745_v18 = vsub.f32 0.0, %v2407_v39  ;;  %v4731_v38 = vpop.f32.mrb[80].mxu0  ;;  %5542 = vmatprep.subr.bf16.mxu1 %v6988_v34  ;;  %v2729_v1 = vmax.f32 %v2407_v39, 0.0 }
 0x373   :  { %4915 = vmatprep.mubr.f32.mxu1 %v2758_v43  ;;  %v2728_v50 = vmax.f32 %v2406_v59, 0.0  ;;  %v2744_v29 = vsub.f32 0.0, %v2406_v59  ;;  %v2474_v10 = vpop.f32.mrb[81].mxu0  ;;  %5512 = vmatpush3.bf16.msra.mxu0 %v7000_v4 }
 0x374   :  { %4916 = vmatmul.mubr.f32.gmra.mrb[108].mxu1 %v2759_v23  ;;  %v4787_v11 = vpop.f32.mrb[80].mxu1  ;;  %v2761_v44 = vmax.f32 %v2745_v18, 0.0 }
 0x375   :  { %v2760_v24 = vmax.f32 %v2744_v29, 0.0  ;;  %v2699_v51 = vsub.f32 %v4731_v38, %v4787_v11  ;;  %v2619_v40 = vpop.f32.mrb[81].mxu1  ;;  %4862 = vmatprep.mubr.f32.mxu0 %v2728_v50  ;;  %5544 = vmatpush3.bf16.msra.mxu1 %v6988_v34 }
 0x376   :  { %v2698_v27 = vsub.f32 %v2474_v10, %v2619_v40  ;;  %4863 = vmatmul.mubr.f32.gmra.mrb[110].mxu0 %v2729_v1 }
 0x377   :  { %v2779_v5 = vsub.f32 0.0, %v2699_v51  ;;  %4918 = vmatprep.mubr.f32.mxu1 %v2760_v24  ;;  %v2763_v4 = vmax.f32 %v2699_v51, 0.0 }
 0x378   :  { %v4734_v49 = vpop.f32.mrb[82].mxu0  ;;  %v2762_v26 = vmax.f32 %v2698_v27, 0.0  ;;  %v2778_v17 = vsub.f32 0.0, %v2698_v27  ;;  %4919 = vmatmul.mubr.f32.gmra.mrb[110].mxu1 %v2761_v44 }
 0x379   :  { %v2484_v7 = vpop.f32.mrb[83].mxu0  ;;  %v2795_v15 = vmax.f32 %v2779_v5, 0.0 }
 0x37a   :  { %v4790_v60 = vpop.f32.mrb[82].mxu1  ;;  %v2794_v31 = vmax.f32 %v2778_v17, 0.0  ;;  %4953 = vmatprep.mubr.f32.mxu0 %v2762_v26 }
 0x37b   :  { %v2701_v48 = vsub.f32 %v4734_v49, %v4790_v60  ;;  %v2629_v55 = vpop.f32.mrb[83].mxu1  ;;  %4954 = vmatmul.mubr.f32.vlgmr.msra.gmra.mrb[112].mxu0 %v2763_v4 }
 0x37c   :  { %v2700_v19 = vsub.f32 %v2484_v7, %v2629_v55  ;;  %5009 = vmatprep.mubr.f32.mxu1 %v2794_v31 }
 0x37d   :  { %v2781_v30 = vsub.f32 0.0, %v2701_v48  ;;  %v4737_v3 = vpop.f32.mrb[84].mxu0  ;;  %v2765_v13 = vmax.f32 %v2701_v48, 0.0  ;;  %5010 = vmatmul.mubr.f32.vlgmr.msra.gmra.mrb[112].mxu1 %v2795_v15 }
 0x37e   :  { %v2764_v34 = vmax.f32 %v2700_v19, 0.0  ;;  %v2780_v63 = vsub.f32 0.0, %v2700_v19  ;;  %v2494_v37 = vpop.f32.mrb[85].mxu0 }
 0x37f   :  { %v4793_v57 = vpop.f32.mrb[84].mxu1  ;;  %v2797_v16 = vmax.f32 %v2781_v30, 0.0 }
 0x380   :  { %v2796_v8 = vmax.f32 %v2780_v63, 0.0  ;;  %4956 = vmatprep.mubr.f32.mxu0 %v2764_v34  ;;  %v2703_v56 = vsub.f32 %v4737_v3, %v4793_v57  ;;  %v2639_v12 = vpop.f32.mrb[85].mxu1 }
 0x381   :  { %4957 = vmatmul.mubr.f32.gmra.mrb[114].mxu0 %v2765_v13  ;;  %v2702_v25 = vsub.f32 %v2494_v37, %v2639_v12  ;;  %v4740_v32 = vpop.f32.mrb[86].mxu0 }
 0x382   :  { %5012 = vmatprep.mubr.f32.mxu1 %v2796_v8  ;;  %v2783_v62 = vsub.f32 0.0, %v2703_v56  ;;  %v2504_v42 = vpop.f32.mrb[87].mxu0  ;;  %v2767_v53 = vmax.f32 %v2703_v56, 0.0 }
 0x383   :  { %5013 = vmatmul.mubr.f32.gmra.mrb[114].mxu1 %v2797_v16  ;;  %v2766_v22 = vmax.f32 %v2702_v25, 0.0  ;;  %v2782_v35 = vsub.f32 0.0, %v2702_v25  ;;  %v4796_v58 = vpop.f32.mrb[86].mxu1 }
 0x384   :  { %v2705_v20 = vsub.f32 %v4740_v32, %v4796_v58  ;;  %v2649_v14 = vpop.f32.mrb[87].mxu1  ;;  %v2799_v33 = vmax.f32 %v2783_v62, 0.0 }
 0x385   :  { %v2798_v6 = vmax.f32 %v2782_v35, 0.0  ;;  %v2704_v28 = vsub.f32 %v2504_v42, %v2649_v14  ;;  %4959 = vmatprep.mubr.f32.mxu0 %v2766_v22 }
 0x386   :  { %v2785_v54 = vsub.f32 0.0, %v2705_v20  ;;  %4960 = vmatmul.mubr.f32.gmra.mrb[116].mxu0 %v2767_v53  ;;  %v2769_v0 = vmax.f32 %v2705_v20, 0.0 }
 0x387   :  { %v4743_v61 = vpop.f32.mrb[88].mxu0  ;;  %v2768_v21 = vmax.f32 %v2704_v28, 0.0  ;;  %v2784_v2 = vsub.f32 0.0, %v2704_v28  ;;  %5015 = vmatprep.mubr.f32.mxu1 %v2798_v6 }
 0x388   :  { %v2514_v41 = vpop.f32.mrb[89].mxu0  ;;  %5016 = vmatmul.mubr.f32.gmra.mrb[116].mxu1 %v2799_v33  ;;  %v2801_v36 = vmax.f32 %v2785_v54, 0.0 }
 0x389   :  { %v4799_v45 = vpop.f32.mrb[88].mxu1  ;;  %v2800_v52 = vmax.f32 %v2784_v2, 0.0  ;;  %4962 = vmatprep.mubr.f32.mxu0 %v2768_v21 }
 0x38a   :  { %v2707_v46 = vsub.f32 %v4743_v61, %v4799_v45  ;;  %v2659_v9 = vpop.f32.mrb[89].mxu1  ;;  %4963 = vmatmul.mubr.f32.gmra.mrb[118].mxu0 %v2769_v0 }
 0x38b   :  { %v2706_v43 = vsub.f32 %v2514_v41, %v2659_v9  ;;  %v4746_v39 = vpop.f32.mrb[90].mxu0  ;;  %5018 = vmatprep.mubr.f32.mxu1 %v2800_v52 }
 0x38c   :  { %v2787_v47 = vsub.f32 0.0, %v2707_v46  ;;  %v2524_v23 = vpop.f32.mrb[91].mxu0  ;;  %5019 = vmatmul.mubr.f32.gmra.mrb[118].mxu1 %v2801_v36  ;;  %v2771_v50 = vmax.f32 %v2707_v46, 0.0 }
 0x38d   :  { %v2770_v59 = vmax.f32 %v2706_v43, 0.0  ;;  %v2786_v18 = vsub.f32 0.0, %v2706_v43  ;;  %v4802_v38 = vpop.f32.mrb[90].mxu1 }
 0x38e   :  { %v2709_v29 = vsub.f32 %v4746_v39, %v4802_v38  ;;  %v2669_v10 = vpop.f32.mrb[91].mxu1  ;;  %v2803_v51 = vmax.f32 %v2787_v47, 0.0 }
 0x38f   :  { %v2802_v1 = vmax.f32 %v2786_v18, 0.0  ;;  %v2708_v11 = vsub.f32 %v2524_v23, %v2669_v10  ;;  %v4749_v24 = vpop.f32.mrb[92].mxu0  ;;  %4965 = vmatprep.mubr.f32.mxu0 %v2770_v59 }
 0x390   :  { %v2789_v40 = vsub.f32 0.0, %v2709_v29  ;;  %v2534_v44 = vpop.f32.mrb[93].mxu0  ;;  %4966 = vmatmul.mubr.f32.gmra.mrb[120].mxu0 %v2771_v50  ;;  %v2773_v7 = vmax.f32 %v2709_v29, 0.0 }
 0x391   :  { %v2772_v27 = vmax.f32 %v2708_v11, 0.0  ;;  %v2788_v49 = vsub.f32 0.0, %v2708_v11  ;;  %v4805_v5 = vpop.f32.mrb[92].mxu1  ;;  %5021 = vmatprep.mubr.f32.mxu1 %v2802_v1 }
 0x392   :  { %v2711_v26 = vsub.f32 %v4749_v24, %v4805_v5  ;;  %v2679_v17 = vpop.f32.mrb[93].mxu1  ;;  %5022 = vmatmul.mubr.f32.gmra.mrb[120].mxu1 %v2803_v51  ;;  %v2805_v55 = vmax.f32 %v2789_v40, 0.0 }
 0x393   :  { %v2804_v60 = vmax.f32 %v2788_v49, 0.0  ;;  %v2710_v4 = vsub.f32 %v2534_v44, %v2679_v17  ;;  %v4752_v48 = vpop.f32.mrb[94].mxu0  ;;  %4968 = vmatprep.mubr.f32.mxu0 %v2772_v27 }
 0x394   :  { %v2791_v31 = vsub.f32 0.0, %v2711_v26  ;;  %v2544_v19 = vpop.f32.mrb[95].mxu0  ;;  %4969 = vmatmul.mubr.f32.gmra.mrb[122].mxu0 %v2773_v7  ;;  %v2775_v63 = vmax.f32 %v2711_v26, 0.0 }
 0x395   :  { %v2774_v15 = vmax.f32 %v2710_v4, 0.0  ;;  %v2790_v30 = vsub.f32 0.0, %v2710_v4  ;;  %v4808_v34 = vpop.f32.mrb[94].mxu1  ;;  %5024 = vmatprep.mubr.f32.mxu1 %v2804_v60 }
 0x396   :  { %v2713_v3 = vsub.f32 %v4752_v48, %v4808_v34  ;;  %v2689_v13 = vpop.f32.mrb[95].mxu1  ;;  %5025 = vmatmul.mubr.f32.gmra.mrb[122].mxu1 %v2805_v55  ;;  %v2807_v57 = vmax.f32 %v2791_v31, 0.0 }
 0x397   :  { %v2806_v37 = vmax.f32 %v2790_v30, 0.0  ;;  %v2712_v8 = vsub.f32 %v2544_v19, %v2689_v13  ;;  %4971 = vmatprep.mubr.f32.mxu0 %v2774_v15 }
 0x398   :  { %v2793_v16 = vsub.f32 0.0, %v2713_v3  ;;  %4972 = vmatmul.mubr.f32.gmra.mrb[124].mxu0 %v2775_v63  ;;  %v2777_v25 = vmax.f32 %v2713_v3, 0.0 }
 0x399   :  { %v2776_v56 = vmax.f32 %v2712_v8, 0.0  ;;  %v2792_v12 = vsub.f32 0.0, %v2712_v8  ;;  %5027 = vmatprep.mubr.f32.mxu1 %v2806_v37 }
 0x39a   :  { %5028 = vmatmul.mubr.f32.gmra.mrb[124].mxu1 %v2807_v57  ;;  %v2809_v62 = vmax.f32 %v2793_v16, 0.0 }
 0x39b   :  { %v2808_v32 = vmax.f32 %v2792_v12, 0.0  ;;  %4974 = vmatprep.mubr.f32.mxu0 %v2776_v56 }
 0x39c   :  { %4975 = vmatmul.mubr.f32.gmra.mrb[126].mxu0 %v2777_v25 }
 0x39d   :  { %5030 = vmatprep.mubr.f32.mxu1 %v2808_v32 }
 0x39e   :  { %5031 = vmatmul.mubr.f32.gmra.mrb[126].mxu1 %v2809_v62 }
 0x427   :  { %v4843_v42 = vpop.f32.mrb[96].mxu0 }
 0x428   :  { %v2908_v22 = vpop.f32.mrb[97].mxu0 }
 0x429   :  { %v4899_v35 = vpop.f32.mrb[96].mxu1 }
 0x42a   :  { %v3133_v58 = vsub.f32 %v4843_v42, %v4899_v35  ;;  %v3053_v53 = vpop.f32.mrb[97].mxu1 }
 0x42b   :  { %v3132_v20 = vsub.f32 %v2908_v22, %v3053_v53  ;;  %v4846_v14 = vpop.f32.mrb[98].mxu0 }
 0x42c   :  { %3455 = vst [vmem:[%s7134_s2 + $0x8] sm:$0xff] %v3133_v58  ;;  %v2918_v6 = vpop.f32.mrb[99].mxu0 }
 0x42d   :  { %3454 = vst [vmem:[%s7134_s2] sm:$0xff] %v3132_v20  ;;  %v4902_v28 = vpop.f32.mrb[98].mxu1 }
 0x42e   :  { %v3135_v33 = vsub.f32 %v4846_v14, %v4902_v28  ;;  %v3063_v54 = vpop.f32.mrb[99].mxu1 }
 0x42f   :  { %v3134_v61 = vsub.f32 %v2918_v6, %v3063_v54 }
 0x430   :  { %3457 = vst [vmem:[%s7134_s2 + $0x18] sm:$0xff] %v3135_v33  ;;  %v4849_v21 = vpop.f32.mrb[100].mxu0 }
 0x431   :  { %3456 = vst [vmem:[%s7134_s2 + $0x10] sm:$0xff] %v3134_v61  ;;  %v2928_v2 = vpop.f32.mrb[101].mxu0 }
 0x432   :  { %v4905_v41 = vpop.f32.mrb[100].mxu1 }
 0x433   :  { %v3137_v0 = vsub.f32 %v4849_v21, %v4905_v41  ;;  %v3073_v45 = vpop.f32.mrb[101].mxu1 }
 0x434   :  { %v3136_v52 = vsub.f32 %v2928_v2, %v3073_v45 }
 0x435   :  { %3459 = vst [vmem:[%s7134_s2 + $0x28] sm:$0xff] %v3137_v0 }
 0x436   :  { %3458 = vst [vmem:[%s7134_s2 + $0x20] sm:$0xff] %v3136_v52  ;;  %v4852_v46 = vpop.f32.mrb[102].mxu0 }
 0x437   :  { %v2938_v9 = vpop.f32.mrb[103].mxu0 }
 0x438   :  { %v4908_v36 = vpop.f32.mrb[102].mxu1 }
 0x439   :  { %v3139_v43 = vsub.f32 %v4852_v46, %v4908_v36  ;;  %v3083_v39 = vpop.f32.mrb[103].mxu1 }
 0x43a   :  { %v3138_v47 = vsub.f32 %v2938_v9, %v3083_v39 }
 0x43b   :  { %3461 = vst [vmem:[%s7134_s2 + $0x38] sm:$0xff] %v3139_v43 }
 0x43c   :  { %v4855_v23 = vpop.f32.mrb[104].mxu0  ;;  %3460 = vst [vmem:[%s7134_s2 + $0x30] sm:$0xff] %v3138_v47 }
 0x43d   :  { %v2948_v59 = vpop.f32.mrb[105].mxu0 }
 0x43e   :  { %v4911_v18 = vpop.f32.mrb[104].mxu1 }
 0x43f   :  { %v3141_v38 = vsub.f32 %v4855_v23, %v4911_v18  ;;  %v3093_v50 = vpop.f32.mrb[105].mxu1 }
 0x440   :  { %v3140_v29 = vsub.f32 %v2948_v59, %v3093_v50 }
 0x441   :  { %3463 = vst [vmem:[%s7134_s2 + $0x48] sm:$0xff] %v3141_v38  ;;  %v4858_v10 = vpop.f32.mrb[106].mxu0 }
 0x442   :  { %3462 = vst [vmem:[%s7134_s2 + $0x40] sm:$0xff] %v3140_v29  ;;  %v2958_v1 = vpop.f32.mrb[107].mxu0 }
 0x443   :  { %v4914_v11 = vpop.f32.mrb[106].mxu1 }
 0x444   :  { %v3143_v24 = vsub.f32 %v4858_v10, %v4914_v11  ;;  %v3103_v51 = vpop.f32.mrb[107].mxu1 }
 0x445   :  { %v3142_v40 = vsub.f32 %v2958_v1, %v3103_v51  ;;  %v4861_v44 = vpop.f32.mrb[108].mxu0 }
 0x446   :  { %3465 = vst [vmem:[%s7134_s2 + $0x58] sm:$0xff] %v3143_v24  ;;  %v2968_v27 = vpop.f32.mrb[109].mxu0 }
 0x447   :  { %3464 = vst [vmem:[%s7134_s2 + $0x50] sm:$0xff] %v3142_v40  ;;  %v4917_v49 = vpop.f32.mrb[108].mxu1 }
 0x448   :  { %v3145_v5 = vsub.f32 %v4861_v44, %v4917_v49  ;;  %v3113_v7 = vpop.f32.mrb[109].mxu1 }
 0x449   :  { %v3144_v26 = vsub.f32 %v2968_v27, %v3113_v7  ;;  %v4864_v17 = vpop.f32.mrb[110].mxu0 }
 0x44a   :  { %3467 = vst [vmem:[%s7134_s2 + $0x68] sm:$0xff] %v3145_v5  ;;  %v2978_v60 = vpop.f32.mrb[111].mxu0 }
 0x44b   :  { %3466 = vst [vmem:[%s7134_s2 + $0x60] sm:$0xff] %v3144_v26  ;;  %v4920_v4 = vpop.f32.mrb[110].mxu1 }
 0x44c   :  { %v3147_v48 = vsub.f32 %v4864_v17, %v4920_v4  ;;  %v3123_v55 = vpop.f32.mrb[111].mxu1 }
 0x44d   :  { %v3146_v31 = vsub.f32 %v2978_v60, %v3123_v55 }
 0x44e   :  { %3469 = vst [vmem:[%s7134_s2 + $0x78] sm:$0xff] %v3147_v48  ;;  %v4955_v19 = vpop.f32.mrb[112].mxu0 }
 0x44f   :  { %3468 = vst [vmem:[%s7134_s2 + $0x70] sm:$0xff] %v3146_v31  ;;  %v3214_v15 = vpop.f32.mrb[113].mxu0 }
 0x450   :  { %v5011_v30 = vpop.f32.mrb[112].mxu1 }
 0x451   :  { %v3439_v34 = vsub.f32 %v4955_v19, %v5011_v30  ;;  %v3359_v63 = vpop.f32.mrb[113].mxu1 }
 0x452   :  { %v3438_v3 = vsub.f32 %v3214_v15, %v3359_v63 }
 0x453   :  { %3471 = vst [vmem:[%s7135_s3 + $0x8] sm:$0xff] %v3439_v34 }
 0x454   :  { %v4958_v13 = vpop.f32.mrb[114].mxu0  ;;  %3470 = vst [vmem:[%s7135_s3] sm:$0xff] %v3438_v3 }
 0x455   :  { %v3224_v37 = vpop.f32.mrb[115].mxu0 }
 0x456   :  { %v5014_v8 = vpop.f32.mrb[114].mxu1 }
 0x457   :  { %v3441_v57 = vsub.f32 %v4958_v13, %v5014_v8  ;;  %v3369_v16 = vpop.f32.mrb[115].mxu1 }
 0x458   :  { %v3440_v56 = vsub.f32 %v3224_v37, %v3369_v16 }
 0x459   :  { %3473 = vst [vmem:[%s7135_s3 + $0x18] sm:$0xff] %v3441_v57  ;;  %v4961_v12 = vpop.f32.mrb[116].mxu0 }
 0x45a   :  { %3472 = vst [vmem:[%s7135_s3 + $0x10] sm:$0xff] %v3440_v56  ;;  %v3234_v25 = vpop.f32.mrb[117].mxu0 }
 0x45b   :  { %v5017_v32 = vpop.f32.mrb[116].mxu1 }
 0x45c   :  { %v3443_v62 = vsub.f32 %v4961_v12, %v5017_v32  ;;  %v3379_v42 = vpop.f32.mrb[117].mxu1 }
 0x45d   :  { %v3442_v22 = vsub.f32 %v3234_v25, %v3379_v42  ;;  %v4964_v35 = vpop.f32.mrb[118].mxu0 }
 0x45e   :  { %3475 = vst [vmem:[%s7135_s3 + $0x28] sm:$0xff] %v3443_v62  ;;  %v3244_v58 = vpop.f32.mrb[119].mxu0 }
 0x45f   :  { %3474 = vst [vmem:[%s7135_s3 + $0x20] sm:$0xff] %v3442_v22  ;;  %v5020_v53 = vpop.f32.mrb[118].mxu1 }
 0x460   :  { %v3445_v20 = vsub.f32 %v4964_v35, %v5020_v53  ;;  %v3389_v14 = vpop.f32.mrb[119].mxu1 }
 0x461   :  { %v3444_v6 = vsub.f32 %v3244_v58, %v3389_v14 }
 0x462   :  { %3477 = vst [vmem:[%s7135_s3 + $0x38] sm:$0xff] %v3445_v20 }
 0x463   :  { %v4967_v28 = vpop.f32.mrb[120].mxu0  ;;  %3476 = vst [vmem:[%s7135_s3 + $0x30] sm:$0xff] %v3444_v6 }
 0x464   :  { %v3254_v33 = vpop.f32.mrb[121].mxu0 }
 0x465   :  { %v5023_v54 = vpop.f32.mrb[120].mxu1 }
 0x466   :  { %v3447_v61 = vsub.f32 %v4967_v28, %v5023_v54  ;;  %v3399_v21 = vpop.f32.mrb[121].mxu1 }
 0x467   :  { %v3446_v2 = vsub.f32 %v3254_v33, %v3399_v21  ;;  %v4970_v41 = vpop.f32.mrb[122].mxu0 }
 0x468   :  { %3479 = vst [vmem:[%s7135_s3 + $0x48] sm:$0xff] %v3447_v61  ;;  %v3264_v0 = vpop.f32.mrb[123].mxu0 }
 0x469   :  { %3478 = vst [vmem:[%s7135_s3 + $0x40] sm:$0xff] %v3446_v2  ;;  %v5026_v45 = vpop.f32.mrb[122].mxu1 }
 0x46a   :  { %v3449_v52 = vsub.f32 %v4970_v41, %v5026_v45  ;;  %v3409_v46 = vpop.f32.mrb[123].mxu1 }
 0x46b   :  { %v3448_v9 = vsub.f32 %v3264_v0, %v3409_v46  ;;  %v4973_v36 = vpop.f32.mrb[124].mxu0 }
 0x46c   :  { %3481 = vst [vmem:[%s7135_s3 + $0x58] sm:$0xff] %v3449_v52  ;;  %v3274_v43 = vpop.f32.mrb[125].mxu0 }
 0x46d   :  { %3480 = vst [vmem:[%s7135_s3 + $0x50] sm:$0xff] %v3448_v9  ;;  %v5029_v39 = vpop.f32.mrb[124].mxu1 }
 0x46e   :  { %v3451_v47 = vsub.f32 %v4973_v36, %v5029_v39  ;;  %v3419_v23 = vpop.f32.mrb[125].mxu1 }
 0x46f   :  { %v3450_v59 = vsub.f32 %v3274_v43, %v3419_v23  ;;  %v4976_v18 = vpop.f32.mrb[126].mxu0 }
 0x470   :  { %3483 = vst [vmem:[%s7135_s3 + $0x68] sm:$0xff] %v3451_v47  ;;  %v3284_v38 = vpop.f32.mrb[127].mxu0 }
 0x471   :  { %3482 = vst [vmem:[%s7135_s3 + $0x60] sm:$0xff] %v3450_v59  ;;  %v5032_v50 = vpop.f32.mrb[126].mxu1 }
 0x472   :  { %v3453_v29 = vsub.f32 %v4976_v18, %v5032_v50  ;;  %v3429_v10 = vpop.f32.mrb[127].mxu1 }
 0x473   :  { %v3452_v1 = vsub.f32 %v3284_v38, %v3429_v10 }
 0x474   :  { %3485 = vst [vmem:[%s7135_s3 + $0x78] sm:$0xff] %v3453_v29 }
 0x475   :  { %3484 = vst [vmem:[%s7135_s3 + $0x70] sm:$0xff] %v3452_v1 }

</bundles_post_ra>
